<compile_context>
chip_gen: v6e
topology: v6e:2x2x1
jax: 0.10.0
libtpu: 0.0.40
codegen_flags: <defaults>
</compile_context>

<pallas_src>
import functools

import jax
import jax.numpy as jnp
from jax import lax
from jax.experimental import pallas as pl
from jax.experimental.pallas import tpu as pltpu

EPS = 1e-5
LANE = 128


def _round_up(x, m):
    return (x + m - 1) // m * m


# --------------------------------------------------------------------------------------
# Pass 1: conv3x3 (9 shifted bf16 MXU matmuls, f32 accumulation) + per-tile BN partials.
# --------------------------------------------------------------------------------------
def _conv_stats_kernel(xlo_ref, xhi_ref, w_ref, mask_ref, y_ref, ss_ref, *,
                       tile_m, offsets):
    # xlo/xhi : (tile_m, Cin) bf16 — row-tile i and row-tile i+1 of the flat padded input
    # w_ref   : (9, Cin, Cpad) bf16 — resident across the whole grid
    # mask_ref: (tile_m, 1) f32 — 1.0 on rows that are real (non-padding) output pixels
    # y_ref   : (tile_m, Cpad) f32 — conv output (pre-BN), lane-dense
    # ss_ref  : (1, 2, Cpad) f32 — per-tile [sum, sum_sq] over valid rows
    x2 = jnp.concatenate(
        [xlo_ref[...].astype(jnp.float32), xhi_ref[...].astype(jnp.float32)], axis=0)

    for k, off in enumerate(offsets):            # static unroll over the 9 taps
        a = x2[off:off + tile_m, :].astype(jnp.bfloat16)   # lossless: data was bf16
        contrib = jnp.dot(a, w_ref[k], preferred_element_type=jnp.float32)
        if k == 0:
            y_ref[...] = contrib
        else:
            y_ref[...] += contrib

    acc = y_ref[...]
    am = acc * mask_ref[...]                     # mask out padded / halo / tail rows
    s = jnp.sum(am, axis=0, keepdims=True)
    ssq = jnp.sum(am * acc, axis=0, keepdims=True)
    ss_ref[0] = jnp.concatenate([s, ssq], axis=0)


# --------------------------------------------------------------------------------------
# Pass 2: y * scale + shift, ReLU (mem-bound, lane-dense).
# --------------------------------------------------------------------------------------
def _bn_relu_kernel(y_ref, scale_ref, shift_ref, o_ref):
    o_ref[...] = jnp.maximum(y_ref[...] * scale_ref[...] + shift_ref[...], 0.0)


def conv3x3_bn_relu(x_nhwc, w_hwio, gamma, beta, *, tile_m=512):
    """Fused Conv2d(3x3, pad=1, no bias*) + BatchNorm2d(batch stats) + ReLU.

    *conv bias cancels exactly under training-mode BatchNorm, so it is not needed.
    """
    N, H, W, Cin = x_nhwc.shape
    Cout = w_hwio.shape[-1]
    Hp, Wp = H + 2, W + 2
    R = Hp * Wp                      # rows of the padded grid per image
    M = N * R                        # total padded-grid rows (conv computed on all)
    c_pad = _round_up(Cout, LANE)    # lane-dense output channels

    tile_m = min(tile_m, _round_up(M, 8))
    tile_m = max(tile_m, _round_up(2 * Wp + 2, 8))   # halo must fit in the next tile
    num_tiles = pl.cdiv(M, tile_m)
    m_pad = num_tiles * tile_m

    # ---- JAX glue: spatial zero-pad, flatten to (rows, Cin), bf16 for the MXU ----
    xp = jnp.pad(x_nhwc, ((0, 0), (1, 1), (1, 1), (0, 0)))
    xp = xp.reshape(M, Cin).astype(jnp.bfloat16)
    xp = jnp.pad(xp, ((0, m_pad + tile_m - M), (0, 0)))      # tail + one halo tile

    w = jnp.pad(w_hwio, ((0, 0), (0, 0), (0, 0), (0, c_pad - Cout)))
    w = w.reshape(9, Cin, c_pad).astype(jnp.bfloat16)

    # Validity of each padded-grid output row (excludes pad rows/cols and the tail).
    q = jnp.arange(m_pad, dtype=jnp.int32)
    valid = (q < M) & ((q % R) < H * Wp) & ((q % Wp) < W)
    mask = valid.astype(jnp.float32)[:, None]                # (m_pad, 1)

    # Flat-row offsets of the 9 taps: output row q reads padded row q + dy*Wp + dx.
    offsets = tuple(dy * Wp + dx for dy in range(3) for dx in range(3))

    kernel1 = functools.partial(_conv_stats_kernel, tile_m=tile_m, offsets=offsets)
    y, part = pl.pallas_call(
        kernel1,
        grid=(num_tiles,),
        in_specs=[
            pl.BlockSpec((tile_m, Cin), lambda i: (i, 0)),       # row-tile i
            pl.BlockSpec((tile_m, Cin), lambda i: (i + 1, 0)),   # row-tile i+1 (halo)
            pl.BlockSpec((9, Cin, c_pad), lambda i: (0, 0, 0)),  # resident weights
            pl.BlockSpec((tile_m, 1), lambda i: (i, 0)),         # valid-row mask
        ],
        out_specs=[
            pl.BlockSpec((tile_m, c_pad), lambda i: (i, 0)),     # conv output
            pl.BlockSpec((1, 2, c_pad), lambda i: (i, 0, 0)),    # per-tile BN partials
        ],
        out_shape=[
            jax.ShapeDtypeStruct((m_pad, c_pad), jnp.float32),
            jax.ShapeDtypeStruct((num_tiles, 2, c_pad), jnp.float32),
        ],
        compiler_params=pltpu.CompilerParams(dimension_semantics=("parallel",)),
    )(xp, xp, w, mask)

    # ---- finalize batch statistics: tiny (2, Cpad) reduction, plain-JAX glue ----
    count = jnp.float32(N * H * W)
    sums = jnp.sum(part, axis=0)
    mean = sums[0] / count
    var = jnp.maximum(sums[1] / count - mean * mean, 0.0)
    g = jnp.pad(gamma.astype(jnp.float32), (0, c_pad - Cout))
    b = jnp.pad(beta.astype(jnp.float32), (0, c_pad - Cout))
    inv = lax.rsqrt(var + EPS)
    scale = (g * inv).reshape(1, c_pad)
    shift = (b - mean * g * inv).reshape(1, c_pad)

    out = pl.pallas_call(
        _bn_relu_kernel,
        grid=(num_tiles,),
        in_specs=[
            pl.BlockSpec((tile_m, c_pad), lambda i: (i, 0)),
            pl.BlockSpec((1, c_pad), lambda i: (0, 0)),
            pl.BlockSpec((1, c_pad), lambda i: (0, 0)),
        ],
        out_specs=pl.BlockSpec((tile_m, c_pad), lambda i: (i, 0)),
        out_shape=jax.ShapeDtypeStruct((m_pad, c_pad), jnp.float32),
        compiler_params=pltpu.CompilerParams(dimension_semantics=("parallel",)),
    )(y, scale, shift)

    # Drop padded rows / cols / channels and restore NHWC.
    return out[:M].reshape(N, Hp, Wp, c_pad)[:, :H, :W, :Cout]


def vgg_block(x_nchw, params, *, tile_m=512):
    """VGGBlock forward: conv3x3 -> BN -> ReLU -> conv3x3 -> BN -> ReLU (NCHW API)."""
    x = jnp.transpose(x_nchw, (0, 2, 3, 1))
    y = conv3x3_bn_relu(x, params["w1"], params["g1"], params["beta1"], tile_m=tile_m)
    y = conv3x3_bn_relu(y, params["w2"], params["g2"], params["beta2"], tile_m=tile_m)
    return jnp.transpose(y, (0, 3, 1, 2))


# -------- pure-JAX reference (mirrors the kernel's bf16 MXU numerics; keeps the conv
# -------- bias to verify that it indeed cancels under batch-stat BatchNorm) --------
def _ref_conv_bn_relu(x_nhwc, w_hwio, bias, gamma, beta):
    y = lax.conv_general_dilated(
        x_nhwc.astype(jnp.bfloat16), w_hwio.astype(jnp.bfloat16),
        window_strides=(1, 1), padding=((1, 1), (1, 1)),
        dimension_numbers=("NHWC", "HWIO", "NHWC"),
        preferred_element_type=jnp.float32) + bias
    mu = jnp.mean(y, axis=(0, 1, 2))
    var = jnp.mean((y - mu) ** 2, axis=(0, 1, 2))
    return jnp.maximum((y - mu) * lax.rsqrt(var + EPS) * gamma + beta, 0.0)


def _ref_vgg_block(x_nchw, p):
    x = jnp.transpose(x_nchw, (0, 2, 3, 1))
    y = _ref_conv_bn_relu(x, p["w1"], p["b1"], p["g1"], p["beta1"])
    y = _ref_conv_bn_relu(y, p["w2"], p["b2"], p["g2"], p["beta2"])
    return jnp.transpose(y, (0, 3, 1, 2))


if __name__ == "__main__":
    # VGGBlock(in_channels=4, middle_channels=8, out_channels=4) at a small shape.
    N, Cin, Cmid, Cout, H, W = 2, 4, 8, 4, 16, 16

    key = jax.random.PRNGKey(0)
    ks = jax.random.split(key, 9)
    x = jax.random.normal(ks[0], (N, Cin, H, W), jnp.float32)

    params = {
        # conv weights in HWIO (= PyTorch OIHW weight transposed (2, 3, 1, 0))
        "w1": 0.1 * jax.random.normal(ks[1], (3, 3, Cin, Cmid), jnp.float32),
        "b1": 0.1 * jax.random.normal(ks[2], (Cmid,), jnp.float32),
        "g1": 1.0 + 0.1 * jax.random.normal(ks[3], (Cmid,), jnp.float32),
        "beta1": 0.1 * jax.random.normal(ks[4], (Cmid,), jnp.float32),
        "w2": 0.1 * jax.random.normal(ks[5], (3, 3, Cmid, Cout), jnp.float32),
        "b2": 0.1 * jax.random.normal(ks[6], (Cout,), jnp.float32),
        "g2": 1.0 + 0.1 * jax.random.normal(ks[7], (Cout,), jnp.float32),
        "beta2": 0.1 * jax.random.normal(ks[8], (Cout,), jnp.float32),
    }

    out = jax.block_until_ready(vgg_block(x, params))
    ref = jax.block_until_ready(_ref_vgg_block(x, params))

    assert out.shape == (N, Cout, H, W), out.shape
    err = float(jnp.max(jnp.abs(out - ref)))
    assert err < 1e-2, err
    print("KERNEL_OK")
</pallas_src>

<mosaic_0001>
module attributes {stable_mosaic.version = 11 : i64} {
  func.func @_conv_stats_kernel(%arg0: i32, %arg1: memref<512x4xbf16, #tpu.memory_space<vmem>>, %arg2: memref<512x4xbf16, #tpu.memory_space<vmem>>, %arg3: memref<9x4x128xbf16, #tpu.memory_space<vmem>>, %arg4: memref<512x1xf32, #tpu.memory_space<vmem>>, %arg5: memref<512x128xf32, #tpu.memory_space<vmem>>, %arg6: memref<1x2x128xf32, #tpu.memory_space<vmem>>) attributes {dimension_semantics = [#tpu.dimension_semantics<parallel>], iteration_bounds = array<i64: 2>, scalar_prefetch = 0 : i64, scratch_operands = 0 : i64, tpu.core_type = #tpu.core_type<tc>, window_params = [{transform_indices = @transform_0, window_bounds = array<i64: 512, 4>}, {transform_indices = @transform_1, window_bounds = array<i64: 512, 4>}, {pipeline_mode = #tpu.pipeline_mode<synchronous>, transform_indices = @transform_2, window_bounds = array<i64: 9, 4, 128>}, {transform_indices = @transform_3, window_bounds = array<i64: 512, 1>}, {transform_indices = @transform_4, window_bounds = array<i64: 512, 128>}, {transform_indices = @transform_5, window_bounds = array<i64: 1, 2, 128>}]} {
    %c0 = arith.constant 0 : index
    %c0_0 = arith.constant 0 : index
    %0 = vector.load %arg1[%c0, %c0_0] : memref<512x4xbf16, #tpu.memory_space<vmem>>, vector<512x4xbf16>
    %1 = arith.extf %0 : vector<512x4xbf16> to vector<512x4xf32>
    %c0_1 = arith.constant 0 : index
    %c0_2 = arith.constant 0 : index
    %2 = vector.load %arg2[%c0_1, %c0_2] : memref<512x4xbf16, #tpu.memory_space<vmem>>, vector<512x4xbf16>
    %3 = arith.extf %2 : vector<512x4xbf16> to vector<512x4xf32>
    %4 = tpu.concatenate %1, %3 in 0 : vector<512x4xf32>, vector<512x4xf32> -> vector<1024x4xf32>
    %5 = vector.extract_strided_slice %4 {offsets = [0, 0], sizes = [512, 4], strides = [1, 1]} : vector<1024x4xf32> to vector<512x4xf32>
    %6 = arith.truncf %5 : vector<512x4xf32> to vector<512x4xbf16>
    %c0_3 = arith.constant 0 : index
    %c0_4 = arith.constant 0 : index
    %c0_5 = arith.constant 0 : index
    %7 = vector.load %arg3[%c0_3, %c0_4, %c0_5] : memref<9x4x128xbf16, #tpu.memory_space<vmem>>, vector<1x4x128xbf16>
    %8 = vector.shape_cast %7 : vector<1x4x128xbf16> to vector<4x128xbf16>
    %cst = arith.constant dense<0.000000e+00> : vector<512x128xf32>
    %9 = tpu.matmul %6, %8, %cst {dimension_numbers = #tpu.dot_dimension_numbers<[1], [0], [0], [1], [0, 0, 1, 1], [], []>} : vector<512x4xbf16>, vector<4x128xbf16>, vector<512x128xf32> -> vector<512x128xf32>
    %c0_6 = arith.constant 0 : index
    %c0_7 = arith.constant 0 : index
    %10 = vector.load %arg5[%c0_6, %c0_7] : memref<512x128xf32, #tpu.memory_space<vmem>>, vector<512x128xf32>
    tpu.vector_store %arg5[%c0_6, %c0_7], %9 {strides = array<i32>} : memref<512x128xf32, #tpu.memory_space<vmem>>, vector<512x128xf32>,
    %11 = vector.extract_strided_slice %4 {offsets = [1, 0], sizes = [512, 4], strides = [1, 1]} : vector<1024x4xf32> to vector<512x4xf32>
    %12 = arith.truncf %11 : vector<512x4xf32> to vector<512x4xbf16>
    %c1 = arith.constant 1 : index
    %c0_8 = arith.constant 0 : index
    %c0_9 = arith.constant 0 : index
    %13 = vector.load %arg3[%c1, %c0_8, %c0_9] : memref<9x4x128xbf16, #tpu.memory_space<vmem>>, vector<1x4x128xbf16>
    %14 = vector.shape_cast %13 : vector<1x4x128xbf16> to vector<4x128xbf16>
    %cst_10 = arith.constant dense<0.000000e+00> : vector<512x128xf32>
    %15 = tpu.matmul %12, %14, %cst_10 {dimension_numbers = #tpu.dot_dimension_numbers<[1], [0], [0], [1], [0, 0, 1, 1], [], []>} : vector<512x4xbf16>, vector<4x128xbf16>, vector<512x128xf32> -> vector<512x128xf32>
    %c0_11 = arith.constant 0 : index
    %c0_12 = arith.constant 0 : index
    %16 = vector.load %arg5[%c0_11, %c0_12] : memref<512x128xf32, #tpu.memory_space<vmem>>, vector<512x128xf32>
    %17 = arith.addf %16, %15 : vector<512x128xf32>
    %c0_13 = arith.constant 0 : index
    %c0_14 = arith.constant 0 : index
    %18 = vector.load %arg5[%c0_13, %c0_14] : memref<512x128xf32, #tpu.memory_space<vmem>>, vector<512x128xf32>
    tpu.vector_store %arg5[%c0_13, %c0_14], %17 {strides = array<i32>} : memref<512x128xf32, #tpu.memory_space<vmem>>, vector<512x128xf32>,
    %19 = vector.extract_strided_slice %4 {offsets = [2, 0], sizes = [512, 4], strides = [1, 1]} : vector<1024x4xf32> to vector<512x4xf32>
    %20 = arith.truncf %19 : vector<512x4xf32> to vector<512x4xbf16>
    %c2 = arith.constant 2 : index
    %c0_15 = arith.constant 0 : index
    %c0_16 = arith.constant 0 : index
    %21 = vector.load %arg3[%c2, %c0_15, %c0_16] : memref<9x4x128xbf16, #tpu.memory_space<vmem>>, vector<1x4x128xbf16>
    %22 = vector.shape_cast %21 : vector<1x4x128xbf16> to vector<4x128xbf16>
    %cst_17 = arith.constant dense<0.000000e+00> : vector<512x128xf32>
    %23 = tpu.matmul %20, %22, %cst_17 {dimension_numbers = #tpu.dot_dimension_numbers<[1], [0], [0], [1], [0, 0, 1, 1], [], []>} : vector<512x4xbf16>, vector<4x128xbf16>, vector<512x128xf32> -> vector<512x128xf32>
    %c0_18 = arith.constant 0 : index
    %c0_19 = arith.constant 0 : index
    %24 = vector.load %arg5[%c0_18, %c0_19] : memref<512x128xf32, #tpu.memory_space<vmem>>, vector<512x128xf32>
    %25 = arith.addf %24, %23 : vector<512x128xf32>
    %c0_20 = arith.constant 0 : index
    %c0_21 = arith.constant 0 : index
    %26 = vector.load %arg5[%c0_20, %c0_21] : memref<512x128xf32, #tpu.memory_space<vmem>>, vector<512x128xf32>
    tpu.vector_store %arg5[%c0_20, %c0_21], %25 {strides = array<i32>} : memref<512x128xf32, #tpu.memory_space<vmem>>, vector<512x128xf32>,
    %27 = vector.extract_strided_slice %4 {offsets = [18, 0], sizes = [512, 4], strides = [1, 1]} : vector<1024x4xf32> to vector<512x4xf32>
    %28 = arith.truncf %27 : vector<512x4xf32> to vector<512x4xbf16>
    %c3 = arith.constant 3 : index
    %c0_22 = arith.constant 0 : index
    %c0_23 = arith.constant 0 : index
    %29 = vector.load %arg3[%c3, %c0_22, %c0_23] : memref<9x4x128xbf16, #tpu.memory_space<vmem>>, vector<1x4x128xbf16>
    %30 = vector.shape_cast %29 : vector<1x4x128xbf16> to vector<4x128xbf16>
    %cst_24 = arith.constant dense<0.000000e+00> : vector<512x128xf32>
    %31 = tpu.matmul %28, %30, %cst_24 {dimension_numbers = #tpu.dot_dimension_numbers<[1], [0], [0], [1], [0, 0, 1, 1], [], []>} : vector<512x4xbf16>, vector<4x128xbf16>, vector<512x128xf32> -> vector<512x128xf32>
    %c0_25 = arith.constant 0 : index
    %c0_26 = arith.constant 0 : index
    %32 = vector.load %arg5[%c0_25, %c0_26] : memref<512x128xf32, #tpu.memory_space<vmem>>, vector<512x128xf32>
    %33 = arith.addf %32, %31 : vector<512x128xf32>
    %c0_27 = arith.constant 0 : index
    %c0_28 = arith.constant 0 : index
    %34 = vector.load %arg5[%c0_27, %c0_28] : memref<512x128xf32, #tpu.memory_space<vmem>>, vector<512x128xf32>
    tpu.vector_store %arg5[%c0_27, %c0_28], %33 {strides = array<i32>} : memref<512x128xf32, #tpu.memory_space<vmem>>, vector<512x128xf32>,
    %35 = vector.extract_strided_slice %4 {offsets = [19, 0], sizes = [512, 4], strides = [1, 1]} : vector<1024x4xf32> to vector<512x4xf32>
    %36 = arith.truncf %35 : vector<512x4xf32> to vector<512x4xbf16>
    %c4 = arith.constant 4 : index
    %c0_29 = arith.constant 0 : index
    %c0_30 = arith.constant 0 : index
    %37 = vector.load %arg3[%c4, %c0_29, %c0_30] : memref<9x4x128xbf16, #tpu.memory_space<vmem>>, vector<1x4x128xbf16>
    %38 = vector.shape_cast %37 : vector<1x4x128xbf16> to vector<4x128xbf16>
    %cst_31 = arith.constant dense<0.000000e+00> : vector<512x128xf32>
    %39 = tpu.matmul %36, %38, %cst_31 {dimension_numbers = #tpu.dot_dimension_numbers<[1], [0], [0], [1], [0, 0, 1, 1], [], []>} : vector<512x4xbf16>, vector<4x128xbf16>, vector<512x128xf32> -> vector<512x128xf32>
    %c0_32 = arith.constant 0 : index
    %c0_33 = arith.constant 0 : index
    %40 = vector.load %arg5[%c0_32, %c0_33] : memref<512x128xf32, #tpu.memory_space<vmem>>, vector<512x128xf32>
    %41 = arith.addf %40, %39 : vector<512x128xf32>
    %c0_34 = arith.constant 0 : index
    %c0_35 = arith.constant 0 : index
    %42 = vector.load %arg5[%c0_34, %c0_35] : memref<512x128xf32, #tpu.memory_space<vmem>>, vector<512x128xf32>
    tpu.vector_store %arg5[%c0_34, %c0_35], %41 {strides = array<i32>} : memref<512x128xf32, #tpu.memory_space<vmem>>, vector<512x128xf32>,
    %43 = vector.extract_strided_slice %4 {offsets = [20, 0], sizes = [512, 4], strides = [1, 1]} : vector<1024x4xf32> to vector<512x4xf32>
    %44 = arith.truncf %43 : vector<512x4xf32> to vector<512x4xbf16>
    %c5 = arith.constant 5 : index
    %c0_36 = arith.constant 0 : index
    %c0_37 = arith.constant 0 : index
    %45 = vector.load %arg3[%c5, %c0_36, %c0_37] : memref<9x4x128xbf16, #tpu.memory_space<vmem>>, vector<1x4x128xbf16>
    %46 = vector.shape_cast %45 : vector<1x4x128xbf16> to vector<4x128xbf16>
    %cst_38 = arith.constant dense<0.000000e+00> : vector<512x128xf32>
    %47 = tpu.matmul %44, %46, %cst_38 {dimension_numbers = #tpu.dot_dimension_numbers<[1], [0], [0], [1], [0, 0, 1, 1], [], []>} : vector<512x4xbf16>, vector<4x128xbf16>, vector<512x128xf32> -> vector<512x128xf32>
    %c0_39 = arith.constant 0 : index
    %c0_40 = arith.constant 0 : index
    %48 = vector.load %arg5[%c0_39, %c0_40] : memref<512x128xf32, #tpu.memory_space<vmem>>, vector<512x128xf32>
    %49 = arith.addf %48, %47 : vector<512x128xf32>
    %c0_41 = arith.constant 0 : index
    %c0_42 = arith.constant 0 : index
    %50 = vector.load %arg5[%c0_41, %c0_42] : memref<512x128xf32, #tpu.memory_space<vmem>>, vector<512x128xf32>
    tpu.vector_store %arg5[%c0_41, %c0_42], %49 {strides = array<i32>} : memref<512x128xf32, #tpu.memory_space<vmem>>, vector<512x128xf32>,
    %51 = vector.extract_strided_slice %4 {offsets = [36, 0], sizes = [512, 4], strides = [1, 1]} : vector<1024x4xf32> to vector<512x4xf32>
    %52 = arith.truncf %51 : vector<512x4xf32> to vector<512x4xbf16>
    %c6 = arith.constant 6 : index
    %c0_43 = arith.constant 0 : index
    %c0_44 = arith.constant 0 : index
    %53 = vector.load %arg3[%c6, %c0_43, %c0_44] : memref<9x4x128xbf16, #tpu.memory_space<vmem>>, vector<1x4x128xbf16>
    %54 = vector.shape_cast %53 : vector<1x4x128xbf16> to vector<4x128xbf16>
    %cst_45 = arith.constant dense<0.000000e+00> : vector<512x128xf32>
    %55 = tpu.matmul %52, %54, %cst_45 {dimension_numbers = #tpu.dot_dimension_numbers<[1], [0], [0], [1], [0, 0, 1, 1], [], []>} : vector<512x4xbf16>, vector<4x128xbf16>, vector<512x128xf32> -> vector<512x128xf32>
    %c0_46 = arith.constant 0 : index
    %c0_47 = arith.constant 0 : index
    %56 = vector.load %arg5[%c0_46, %c0_47] : memref<512x128xf32, #tpu.memory_space<vmem>>, vector<512x128xf32>
    %57 = arith.addf %56, %55 : vector<512x128xf32>
    %c0_48 = arith.constant 0 : index
    %c0_49 = arith.constant 0 : index
    %58 = vector.load %arg5[%c0_48, %c0_49] : memref<512x128xf32, #tpu.memory_space<vmem>>, vector<512x128xf32>
    tpu.vector_store %arg5[%c0_48, %c0_49], %57 {strides = array<i32>} : memref<512x128xf32, #tpu.memory_space<vmem>>, vector<512x128xf32>,
    %59 = vector.extract_strided_slice %4 {offsets = [37, 0], sizes = [512, 4], strides = [1, 1]} : vector<1024x4xf32> to vector<512x4xf32>
    %60 = arith.truncf %59 : vector<512x4xf32> to vector<512x4xbf16>
    %c7 = arith.constant 7 : index
    %c0_50 = arith.constant 0 : index
    %c0_51 = arith.constant 0 : index
    %61 = vector.load %arg3[%c7, %c0_50, %c0_51] : memref<9x4x128xbf16, #tpu.memory_space<vmem>>, vector<1x4x128xbf16>
    %62 = vector.shape_cast %61 : vector<1x4x128xbf16> to vector<4x128xbf16>
    %cst_52 = arith.constant dense<0.000000e+00> : vector<512x128xf32>
    %63 = tpu.matmul %60, %62, %cst_52 {dimension_numbers = #tpu.dot_dimension_numbers<[1], [0], [0], [1], [0, 0, 1, 1], [], []>} : vector<512x4xbf16>, vector<4x128xbf16>, vector<512x128xf32> -> vector<512x128xf32>
    %c0_53 = arith.constant 0 : index
    %c0_54 = arith.constant 0 : index
    %64 = vector.load %arg5[%c0_53, %c0_54] : memref<512x128xf32, #tpu.memory_space<vmem>>, vector<512x128xf32>
    %65 = arith.addf %64, %63 : vector<512x128xf32>
    %c0_55 = arith.constant 0 : index
    %c0_56 = arith.constant 0 : index
    %66 = vector.load %arg5[%c0_55, %c0_56] : memref<512x128xf32, #tpu.memory_space<vmem>>, vector<512x128xf32>
    tpu.vector_store %arg5[%c0_55, %c0_56], %65 {strides = array<i32>} : memref<512x128xf32, #tpu.memory_space<vmem>>, vector<512x128xf32>,
    %67 = vector.extract_strided_slice %4 {offsets = [38, 0], sizes = [512, 4], strides = [1, 1]} : vector<1024x4xf32> to vector<512x4xf32>
    %68 = arith.truncf %67 : vector<512x4xf32> to vector<512x4xbf16>
    %c8 = arith.constant 8 : index
    %c0_57 = arith.constant 0 : index
    %c0_58 = arith.constant 0 : index
    %69 = vector.load %arg3[%c8, %c0_57, %c0_58] : memref<9x4x128xbf16, #tpu.memory_space<vmem>>, vector<1x4x128xbf16>
    %70 = vector.shape_cast %69 : vector<1x4x128xbf16> to vector<4x128xbf16>
    %cst_59 = arith.constant dense<0.000000e+00> : vector<512x128xf32>
    %71 = tpu.matmul %68, %70, %cst_59 {dimension_numbers = #tpu.dot_dimension_numbers<[1], [0], [0], [1], [0, 0, 1, 1], [], []>} : vector<512x4xbf16>, vector<4x128xbf16>, vector<512x128xf32> -> vector<512x128xf32>
    %c0_60 = arith.constant 0 : index
    %c0_61 = arith.constant 0 : index
    %72 = vector.load %arg5[%c0_60, %c0_61] : memref<512x128xf32, #tpu.memory_space<vmem>>, vector<512x128xf32>
    %73 = arith.addf %72, %71 : vector<512x128xf32>
    %c0_62 = arith.constant 0 : index
    %c0_63 = arith.constant 0 : index
    %74 = vector.load %arg5[%c0_62, %c0_63] : memref<512x128xf32, #tpu.memory_space<vmem>>, vector<512x128xf32>
    tpu.vector_store %arg5[%c0_62, %c0_63], %73 {strides = array<i32>} : memref<512x128xf32, #tpu.memory_space<vmem>>, vector<512x128xf32>,
    %c0_64 = arith.constant 0 : index
    %c0_65 = arith.constant 0 : index
    %75 = vector.load %arg5[%c0_64, %c0_65] : memref<512x128xf32, #tpu.memory_space<vmem>>, vector<512x128xf32>
    %c0_66 = arith.constant 0 : index
    %c0_67 = arith.constant 0 : index
    %76 = vector.load %arg4[%c0_66, %c0_67] : memref<512x1xf32, #tpu.memory_space<vmem>>, vector<512x1xf32>
    %77 = vector.broadcast %76 : vector<512x1xf32> to vector<512x128xf32>
    %78 = arith.mulf %75, %77 : vector<512x128xf32>
    %cst_68 = arith.constant dense<0.000000e+00> : vector<128xf32>
    %79 = vector.multi_reduction <add>, %78, %cst_68 [0] : vector<512x128xf32> to vector<128xf32>
    %80 = vector.shape_cast %79 : vector<128xf32> to vector<1x128xf32>
    %81 = arith.mulf %78, %75 : vector<512x128xf32>
    %cst_69 = arith.constant dense<0.000000e+00> : vector<128xf32>
    %82 = vector.multi_reduction <add>, %81, %cst_69 [0] : vector<512x128xf32> to vector<128xf32>
    %83 = vector.shape_cast %82 : vector<128xf32> to vector<1x128xf32>
    %84 = tpu.concatenate %80, %83 in 0 : vector<1x128xf32>, vector<1x128xf32> -> vector<2x128xf32>
    %c0_70 = arith.constant 0 : index
    %c0_71 = arith.constant 0 : index
    %c0_72 = arith.constant 0 : index
    %85 = vector.load %arg6[%c0_70, %c0_71, %c0_72] : memref<1x2x128xf32, #tpu.memory_space<vmem>>, vector<1x2x128xf32>
    %86 = vector.shape_cast %85 : vector<1x2x128xf32> to vector<2x128xf32>
    %87 = vector.shape_cast %84 : vector<2x128xf32> to vector<1x2x128xf32>
    tpu.vector_store %arg6[%c0_70, %c0_71, %c0_72], %87 {strides = array<i32>} : memref<1x2x128xf32, #tpu.memory_space<vmem>>, vector<1x2x128xf32>,
    return
  }
  func.func @transform_0(%arg0: i32) -> (i32, i32) {
    %c0_i32 = arith.constant 0 : i32
    %c0_i32_0 = arith.constant 0 : i32
    return %arg0, %c0_i32 : i32, i32
  }
  func.func @transform_1(%arg0: i32) -> (i32, i32) {
    %c1_i32 = arith.constant 1 : i32
    %0 = arith.addi %arg0, %c1_i32 : i32
    %c0_i32 = arith.constant 0 : i32
    %c0_i32_0 = arith.constant 0 : i32
    return %0, %c0_i32 : i32, i32
  }
  func.func @transform_2(%arg0: i32) -> (i32, i32, i32) {
    %c0_i32 = arith.constant 0 : i32
    %c0_i32_0 = arith.constant 0 : i32
    %c0_i32_1 = arith.constant 0 : i32
    %c0_i32_2 = arith.constant 0 : i32
    return %c0_i32, %c0_i32_0, %c0_i32_1 : i32, i32, i32
  }
  func.func @transform_3(%arg0: i32) -> (i32, i32) {
    %c0_i32 = arith.constant 0 : i32
    %c0_i32_0 = arith.constant 0 : i32
    return %arg0, %c0_i32 : i32, i32
  }
  func.func @transform_4(%arg0: i32) -> (i32, i32) {
    %c0_i32 = arith.constant 0 : i32
    %c0_i32_0 = arith.constant 0 : i32
    return %arg0, %c0_i32 : i32, i32
  }
  func.func @transform_5(%arg0: i32) -> (i32, i32, i32) {
    %c0_i32 = arith.constant 0 : i32
    %c0_i32_0 = arith.constant 0 : i32
    %c0_i32_1 = arith.constant 0 : i32
    return %arg0, %c0_i32, %c0_i32_0 : i32, i32, i32
  }
}

</mosaic_0001>

<bundles_post_ra>
// kernel: tpu_custom_call.1
= control target key start
LH: loop header
LB: loop body
LE: loop exit
PB: predicated region body
PF: predicated region fallthrough
CT: control target
= control target key end

     0   :  { %11 = vsyncpa [#allocation3], 0  ;;  %s10895_s0 = inlined_call_operand.vmem [shape: bf16[1536,4], index: 0, kind: input, shape index: {}]   ;;  %s10896_s1 = inlined_call_operand.vmem [shape: bf16[1536,4], index: 1, kind: input, shape index: {}]   ;;  %s10897_s2 = inlined_call_operand.vmem [shape: bf16[9,4,128], index: 2, kind: input, shape index: {}]   ;;  %s10898_s3 = inlined_call_operand.vmem [shape: f32[1024,1], index: 3, kind: input, shape index: {}]   ;;  %s10899_s4 = inlined_call_operand.hbm [shape: f32[1024,128], index: 4, kind: output, shape index: {0}]   ;;  %s10900_s5 = inlined_call_operand.hbm [shape: f32[2,2,128], index: 5, kind: output, shape index: {1}]  }
   0x1   :  { %13 = vsyncpa [#allocation3 + $0x1], 0 }
   0x2   :  { %14 = vsyncpa [#allocation5], 0 }
   0x3   :  { %16 = vsyncpa [#allocation5 + $0x1], 0  ;;  %s8552_s18 = smov 0   ;;  %s8554_s19 = smov 0  }
   0x4   :  { %s8556_s20 = smov 0   ;;  %s8558_s21 = smov 0  }
   0x5 LB: > { %s8573_s22 = sadd.s32 4294967295, %s8515_s21   ;;  %s7018_s23 = sadd.s32 4294967294, %s8515_s21   ;;  %s8515_s21 = sphi %s8558_s21, %s11171_s21   ;;  %s8511_s20 = sphi %s8556_s20, %s11170_s20   ;;  %s8507_s19 = sphi %s8554_s19, %s11169_s19   ;;  %s8503_s18 = sphi %s8552_s18, %s11168_s18  }
   0x6   : > { %s8577_s24 = sadd.s32 1, %s8515_s21   ;;  %s130_s25 = sadd.s32 1, %s8511_s20 }
   0x7   : > { %s127_s26 = ssub.s32 %s8515_s21, %s8577_s24  ;;  %p140_p0 = scmp.ne.s32.totalorder %s8511_s20, %s8507_s19 }
   0x8   : > { %p128_p1 = scmp.eq.s32.totalorder %s127_s26, 0  ;;  %p141_p2 = scmp.eq.s32.totalorder %s8573_s22, 1 }
   0x9   : > { %p146_p3 = scmp.ne.s32.totalorder %s8507_s19, %s8503_s18  ;;  %p147_p4 = scmp.eq.s32.totalorder %s7018_s23, 1 }
   0xa   : > { %s8588_s27 = scalar_select %p128_p1, %s8511_s20, %s130_s25  }
   0xb   : > { %p8590_p5 = por %p141_p2, %p140_p0  ;;  %p8594_p6 = por %p147_p4, %p146_p3 }
   0xc   : > { %p7021_p7 = scmp.ge.s32.totalorder %s8515_s21, 1  ;;  %p223_p8 = scmp.lt.s32.totalorder %s8515_s21, 3 }
   0xe   : > { %p224_p9 = pnand %p7021_p7, %p223_p8 }
  0x10   : > { %227 = sbr.rel (%p224_p9) target bundleno = 855 (0x357), region = 36 }
  0x15   : > { %v459_v0 = vld [vmem:[%s10897_s2] sm:$0x3]  ;;  %vm557_vm0 = vcmask 1041408   ;;  %s8604_s7 = sshll.u32 %s8573_s22, 6  ;;  %v7095_v2 = vld [vmem:[%s10897_s2 + $0x2] sm:$0x3] }
  0x16   : > { %8267 = vmatprep.subr.msk.bf16.mxu1 %vm557_vm0, %v459_v0  ;;  %v559_v1 = vsel %vm557_vm0, %v459_v0, 0  ;;  %p268_p10 = scmp.lt.s32.totalorder %s8604_s7, 191  ;;  %8266 = vmatprep.subr.msk.bf16.mxu0 %vm557_vm0, %v459_v0  ;;  %v7128_v3 = vld [vmem:[%s10897_s2 + $0x4] sm:$0x3]  ;;  %vm460_vm1 = vcmask 31744   ;;  %v1243_v7 = vsel %vm557_vm0, %v7095_v2, 0 }
  0x17   : > { %8265 = vmatpush3.bf16.msra.mxu1 %v559_v1  ;;  %7671 = vmatpush3.bf16.msra.mxu0 %v559_v1  ;;  %v8630_v5 = vld [vmem:[%s10897_s2 + $0x6] sm:$0x3]  ;;  %v8644_v9 = vld [vmem:[%s10897_s2 + $0x8] sm:$0x3]  ;;  %v1924_v11 = vsel %vm557_vm0, %v7128_v3, 0  ;;  %s7371_s30 = sadd.s32 64, %s8604_s7 }
  0x18   : > { %s269_s12 = scalar_select %p268_p10, %s8604_s7, 191  ;;  %8268 = vmatprep.subr.msk.bf16.mxu1 %vm557_vm0, %v7095_v2  ;;  %8269 = vmatprep.subr.msk.bf16.mxu0 %vm557_vm0, %v7128_v3  ;;  %vm917_vm2 = vsmask.f32 7424  ;;  %vm1761_vm3 = vcmask 1046528   ;;  %v2424_v63 = vsel %vm557_vm0, %v8630_v5, 0  ;;  %vm3633_vm5 = vcmask 1045504  }
  0x19   : > { %p275_p11 = scmp.lt.s32.totalorder %s7371_s30, 191  ;;  %vm2909_vm4 = vsmask.f32 6400  ;;  %s9343_s15 = sand.u32 1, %s8507_s19   ;;  %vm4781_vm6 = vsmask.f32 5376 }
  0x1a   : > { %s7025_s13 = sshll.u32 %s269_s12, 2  ;;  %s7022_s17 = sshll.u32 %s9343_s15, 9  ;;  %vm5505_vm7 = vcmask 1044480  }
  0x1b   : > { %s8622_s16 = scalar_lea.vmem %s10895_s0, %s7025_s13  ;;  %s11173_s30 = smov (!%p275_p11, %s7371_s30), 191 }
  0x1c   : > { %v8625_v4 = vld [vmem:[%s8622_s16 + $0x80] sm:$0xff]   ;;  %v8633_v6 = vld [vmem:[%s8622_s16 + $0x88] sm:$0xff]   ;;  %v8655_v12 = vld [vmem:[%s8622_s16 + $0x90] sm:$0xff]   ;;  %s7027_s6 = sshll.u32 %s11173_s30, 2  ;;  %s9369_s26 = scalar_lea.vmem [#allocation2], %s7022_s17 }
  0x1d   : > { %7704 = vmatprep.mubr.msk.bf16.mxu1 %vm460_vm1, %v8625_v4  ;;  %v8639_v8 = vld [vmem:[%s8622_s16] sm:$0xff]   ;;  %v8649_v10 = vld [vmem:[%s8622_s16 + $0x8] sm:$0xff]   ;;  %v8664_v13 = vld [vmem:[%s8622_s16 + $0x10] sm:$0xff]   ;;  %s8797_s10 = scalar_lea.vmem %s10896_s1, %s7027_s6  ;;  %p282_p12 = scmp.lt.s32.totalorder %s8604_s7, 127 }
  0x1e   : > { %7705 = vmatmul.mubr.msk.bf16.vlgmr.msra.gmra.mxu1 %vm460_vm1, %v8633_v6  ;;  %7672 = vmatprep.mubr.msk.bf16.mxu0 %vm460_vm1, %v8639_v8  ;;  %v8667_v14 = vld [vmem:[%s8622_s16 + $0x98] sm:$0xff]   ;;  %v8674_v15 = vld [vmem:[%s8622_s16 + $0xa0] sm:$0xff]   ;;  %v8691_v18 = vld [vmem:[%s8622_s16 + $0xa8] sm:$0xff]   ;;  %v920_v34 = vshll.u32 %v8639_v8, 16  ;;  %v918_v38 = vshrl.u32 %v8639_v8, 16  ;;  %v10901_v40 = vshll.u32 %v8649_v10, 16 }
  0x1f   : > { %7737 = vmatpush3.bf16.msra.mxu1 %v1243_v7  ;;  %7673 = vmatmul.mubr.msk.bf16.vlgmr.msra.gmra.mxu0 %vm460_vm1, %v8649_v10  ;;  %v8677_v16 = vld [vmem:[%s8622_s16 + $0x18] sm:$0xff]   ;;  %v8680_v17 = vld [vmem:[%s8622_s16 + $0x20] sm:$0xff]   ;;  %v8694_v19 = vld [vmem:[%s8622_s16 + $0xb0] sm:$0xff]   ;;  %v8805_v45 = vshll.u32 %v8664_v13, 16  ;;  %v1762_v46 = vrot.slane %v8639_v8, 1  ;;  %v1763_v47 = vrot.slane %v8649_v10, 1 }
  0x20   : > { %8270 = vmatprep.subr.msk.bf16.mxu1 %vm557_vm0, %v8630_v5  ;;  %7708 = vmatprep.mubr.msk.bf16.mxu1 %vm460_vm1, %v8655_v12  ;;  %v8697_v20 = vld [vmem:[%s8622_s16 + $0x28] sm:$0xff]   ;;  %v8700_v21 = vld [vmem:[%s8622_s16 + $0x30] sm:$0xff]   ;;  %v8711_v22 = vld [vmem:[%s8622_s16 + $0xb8] sm:$0xff]   ;;  %v922_v39 = vrot.slane %v920_v34, 1  ;;  %v926_v43 = vrot.slane %v10901_v40, 1  ;;  %v10902_v48 = vshrl.u32 %v8649_v10, 16 }
  0x21   : > { %7803 = vmatpush3.bf16.msra.mxu0 %v1924_v11  ;;  %7676 = vmatprep.mubr.msk.bf16.mxu0 %vm460_vm1, %v8664_v13  ;;  %v8714_v23 = vld [vmem:[%s8622_s16 + $0xc0] sm:$0xff]   ;;  %v8717_v24 = vld [vmem:[%s8622_s16 + $0x38] sm:$0xff]   ;;  %v8731_v26 = vld [vmem:[%s8622_s16 + $0xc8] sm:$0xff]   ;;  %11003 = vst [vmem:[#allocation8_spill] sm:$0xff] %v8805_v45  ;;  %v8815_v51 = vshrl.u32 %v8664_v13, 16  ;;  %v8818_v52 = vshll.u32 %v8677_v16, 16  ;;  %v1764_v54 = vsel %vm1761_vm3, %v1762_v46, %v1763_v47 }
  0x22   : > { %8271 = vmatprep.subr.msk.bf16.mxu0 %vm557_vm0, %v8644_v9  ;;  %v8720_v25 = vld [vmem:[%s8622_s16 + $0x40] sm:$0xff]   ;;  %v8734_v27 = vld [vmem:[%s8622_s16 + $0xd0] sm:$0xff]   ;;  %v8737_v28 = vld [vmem:[%s8622_s16 + $0x48] sm:$0xff]   ;;  %v923_v42 = vor.u32 %v922_v39, %v918_v38  ;;  %v933_v53 = vrot.slane %v8805_v45, 1  ;;  %v930_v55 = vor.u32 %v10902_v48, %v926_v43  ;;  %v1765_v58 = vrot.slane %v8664_v13, 1  ;;  %s11175_s7 = smov (!%p282_p12, %s8604_s7), 127 }
  0x23   : > { %v8740_v29 = vld [vmem:[%s8622_s16 + $0x50] sm:$0xff]   ;;  %v8751_v30 = vld [vmem:[%s8622_s16 + $0xd8] sm:$0xff]   ;;  %v8754_v31 = vld [vmem:[%s8622_s16 + $0xe0] sm:$0xff]   ;;  %11004 = vst [vmem:[#allocation9_spill] sm:$0xff] %v8815_v51  ;;  %v940_v57 = vrot.slane %v8818_v52, 1  ;;  %v8834_v59 = vshll.u32 %v8680_v17, 16 }
  0x24   : > { %v8757_v32 = vld [vmem:[%s8622_s16 + $0x58] sm:$0xff]   ;;  %v8760_v33 = vld [vmem:[%s8622_s16 + $0x60] sm:$0xff]   ;;  %v8773_v35 = vld [vmem:[%s8622_s16 + $0xe8] sm:$0xff]   ;;  %v927_v50 = vsel %vm917_vm2, %v923_v42, %v926_v43  ;;  %11005 = vst [vmem:[#allocation10_spill] sm:$0xff] %v8818_v52  ;;  %v937_v56 = vor.u32 %v8815_v51, %v933_v53  ;;  %v1767_v60 = vrot.slane %v8677_v16, 1  ;;  %v934_v61 = vsel %vm917_vm2, %v930_v55, %v933_v53  ;;  %s7029_s8 = sshll.u32 %s11175_s7, 3 }
  0x25   : > { %v8776_v36 = vld [vmem:[%s8622_s16 + $0xf0] sm:$0xff]   ;;  %v8779_v37 = vld [vmem:[%s8622_s16 + $0x68] sm:$0xff]   ;;  %v8802_v44 = vld [vmem:[%s8622_s16 + $0xf8] sm:$0xff]   ;;  %11006 = vst [vmem:[#allocation11_spill] sm:$0xff] %v8834_v59  ;;  %v8839_v62 = vshrl.u32 %v8677_v16, 16  ;;  %v8845_v1 = vshrl.u32 %v8680_v17, 16  ;;  %v8851_v3 = vsel %vm1761_vm3, %v1763_v47, %v1765_v58  ;;  %s9631_s12 = scalar_lea.vmem %s10898_s3, %s7029_s8 }
  0x26   : > { %7709 = vmatmul.mubr.msk.bf16.gmra.mxu1 %vm460_vm1, %v8667_v14  ;;  %v8784_v41 = vld [vmem:[%s8622_s16 + $0x70] sm:$0xff]   ;;  %v8811_v49 = vld [vmem:[%s8622_s16 + $0x78] sm:$0xff]   ;;  %v941_v0 = vsel %vm917_vm2, %v937_v56, %v940_v57  ;;  %v8848_v2 = vshll.u32 %v8697_v20, 16  ;;  %v8856_v7 = vld [vmem:[%s10897_s2 + $0xa] sm:$0x3]  ;;  %v947_v5 = vrot.slane %v8834_v59, 1  ;;  %v8863_v11 = vsel %vm1761_vm3, %v1765_v58, %v1767_v60 }
  0x27   : > { %7712 = vmatprep.mubr.msk.bf16.mxu1 %vm460_vm1, %v8674_v15  ;;  %7677 = vmatmul.mubr.msk.bf16.gmra.mxu0 %vm460_vm1, %v8677_v16  ;;  %11007 = vst [vmem:[#allocation12_spill] sm:$0xff] %v8839_v62  ;;  %11008 = vst [vmem:[#allocation13_spill] sm:$0xff] %v8845_v1  ;;  %v3148_v8 = vsel %vm557_vm0, %v8644_v9, 0  ;;  %v944_v13 = vor.u32 %v8839_v62, %v940_v57  ;;  %v1769_v9 = vrot.slane %v8680_v17, 1  ;;  %v8877_v38 = vshll.u32 %v8700_v21, 16  ;;  %s7372_s7 = sshll.u32 %s8573_s22, 13 }
  0x28   : > { %7680 = vmatprep.mubr.msk.bf16.mxu0 %vm460_vm1, %v8680_v17  ;;  %11009 = vst [vmem:[#allocation14_spill] sm:$0xff] %v8848_v2  ;;  %v951_v16 = vor.u32 %v8845_v1, %v947_v5  ;;  %v954_v34 = vrot.slane %v8848_v2, 1  ;;  %v1771_v39 = vrot.slane %v8697_v20, 1  ;;  %v8882_v43 = vshrl.u32 %v8697_v20, 16  ;;  %v8904_v55 = vld [vmem:[%s10897_s2 + $0xc] sm:$0x3]  ;;  %s10818_s14 = scalar_lea.hbm %s10899_s4, %s7372_s7 }
  0x29   : > { %11010 = vst [vmem:[#allocation15_spill] sm:$0xff] %v8877_v38  ;;  %v948_v42 = vsel %vm917_vm2, %v944_v13, %v947_v5  ;;  %v8886_v47 = vshrl.u32 %v8700_v21, 16  ;;  %v8892_v17 = vsel %vm1761_vm3, %v1767_v60, %v1769_v9  ;;  %v961_v53 = vrot.slane %v8877_v38, 1  ;;  %s6869_s17 = scalar_lea.sflag [#allocation3], %s9343_s15  ;;  %s8518_s25 = smov [#allocation2]  }
  0x2a   : > { %11011 = vst [vmem:[#allocation16_spill] sm:$0xff] %v8882_v43  ;;  %v955_v46 = vsel %vm917_vm2, %v951_v16, %v954_v34  ;;  %v1773_v58 = vrot.slane %v8700_v21, 1  ;;  %v8916_v60 = vshll.u32 %v8720_v25, 16  ;;  %v2921_v5 = vrot.slane %v8845_v1, 1  ;;  %s8429_s30 = sshll.u32 %s8518_s25, 4  ;;  %s8430_s30 = int_to_ptr.vmem [resolvable:$false] %s8429_s30 }
  0x2b   : > { %11012 = vst [vmem:[#allocation17_spill] sm:$0xff] %v8886_v47  ;;  %v965_v56 = vor.u32 %v8886_v47, %v961_v53  ;;  %v8926_v13 = vshrl.u32 %v8720_v25, 16  ;;  %v8929_v16 = vshll.u32 %v8737_v28, 16  ;;  %v8993_v1 = vshrl.u32 %v8760_v33, 16  ;;  %s8431_s6 = scalar_lea.vmem %s8430_s30, 16384 }
  0x2c   : > { %11014 = vst [vmem:[#allocation19_spill] sm:$0xff] %v8916_v60 }
  0x2d   : > { %11016 = vst [vmem:[#allocation21_spill] sm:$0xff] %v8926_v13  ;;  %11017 = vst [vmem:[#allocation22_spill] sm:$0xff] %v8929_v16 }
  0x2e   : > { %7713 = vmatmul.mubr.msk.bf16.gmra.mxu1 %vm460_vm1, %v8691_v18  ;;  %11025 = vst [vmem:[#allocation30_spill] sm:$0xff] %v8993_v1 }
  0x2f   : > { %7716 = vmatprep.mubr.msk.bf16.mxu1 %vm460_vm1, %v8694_v19  ;;  %7681 = vmatmul.mubr.msk.bf16.gmra.mxu0 %vm460_vm1, %v8697_v20  ;;  %v958_v20 = vor.u32 %v8882_v43, %v954_v34  ;;  %v8933_v34 = vsel %vm1761_vm3, %v1771_v39, %v1773_v58 }
  0x30   : > { %7684 = vmatprep.mubr.msk.bf16.mxu0 %vm460_vm1, %v8700_v21  ;;  %v2922_v21 = vrot.slane %v8834_v59, 2  ;;  %v8996_v59 = vshll.u32 %v8779_v37, 16 }
  0x32   : > { %11026 = vst [vmem:[#allocation31_spill] sm:$0xff] %v8996_v59 }
  0x36   : > { %7717 = vmatmul.mubr.msk.bf16.gmra.mxu1 %vm460_vm1, %v8711_v22 }
  0x37   : > { %7720 = vmatprep.mubr.msk.bf16.mxu1 %vm460_vm1, %v8714_v23  ;;  %7685 = vmatmul.mubr.msk.bf16.gmra.mxu0 %vm460_vm1, %v8717_v24 }
  0x38   : > { %7688 = vmatprep.mubr.msk.bf16.mxu0 %vm460_vm1, %v8720_v25 }
  0x3e   : > { %7721 = vmatmul.mubr.msk.bf16.gmra.mxu1 %vm460_vm1, %v8731_v26 }
  0x3f   : > { %7724 = vmatprep.mubr.msk.bf16.mxu1 %vm460_vm1, %v8734_v27  ;;  %7689 = vmatmul.mubr.msk.bf16.gmra.mxu0 %vm460_vm1, %v8737_v28 }
  0x40   : > { %7692 = vmatprep.mubr.msk.bf16.mxu0 %vm460_vm1, %v8740_v29 }
  0x46   : > { %7725 = vmatmul.mubr.msk.bf16.gmra.mxu1 %vm460_vm1, %v8751_v30 }
  0x47   : > { %7728 = vmatprep.mubr.msk.bf16.mxu1 %vm460_vm1, %v8754_v31  ;;  %7693 = vmatmul.mubr.msk.bf16.gmra.mxu0 %vm460_vm1, %v8757_v32 }
  0x48   : > { %7696 = vmatprep.mubr.msk.bf16.mxu0 %vm460_vm1, %v8760_v33 }
  0x4e   : > { %7729 = vmatmul.mubr.msk.bf16.gmra.mxu1 %vm460_vm1, %v8773_v35 }
  0x4f   : > { %7732 = vmatprep.mubr.msk.bf16.mxu1 %vm460_vm1, %v8776_v36  ;;  %7697 = vmatmul.mubr.msk.bf16.gmra.mxu0 %vm460_vm1, %v8779_v37 }
  0x50   : > { %7700 = vmatprep.mubr.msk.bf16.mxu0 %vm460_vm1, %v8784_v41 }
  0x56   : > { %7733 = vmatmul.mubr.msk.bf16.gmra.mxu1 %vm460_vm1, %v8802_v44 }
  0x57   : > { %7738 = vmatprep.mubr.msk.bf16.mxu1 %vm460_vm1, %v927_v50  ;;  %7701 = vmatmul.mubr.msk.bf16.gmra.mxu0 %vm460_vm1, %v8811_v49  ;;  %v8889_v50 = vshll.u32 %v8717_v24, 16 }
  0x58   : > { %7804 = vmatprep.mubr.msk.bf16.mxu0 %vm460_vm1, %v1764_v54  ;;  %v8897_v54 = vsel %vm1761_vm3, %v1769_v9, %v1771_v39  ;;  %v982_v39 = vrot.slane %v8929_v16, 1 }
  0x59   : > { %11013 = vst [vmem:[#allocation18_spill] sm:$0xff] %v8889_v50  ;;  %v968_v57 = vrot.slane %v8889_v50, 1 }
  0x5e   : > { %7739 = vmatmul.mubr.msk.bf16.vlgmr.msra.gmra.mxu1 %vm460_vm1, %v934_v61  ;;  %v1775_v61 = vrot.slane %v8717_v24, 1 }
  0x5f   : > { %7869 = vmatpush3.bf16.msra.mxu1 %v2424_v63  ;;  %7742 = vmatprep.mubr.msk.bf16.mxu1 %vm460_vm1, %v941_v0  ;;  %v962_v63 = vsel %vm917_vm2, %v958_v20, %v961_v53  ;;  %v8921_v0 = vshrl.u32 %v8717_v24, 16  ;;  %v975_v24 = vrot.slane %v8916_v60, 1  ;;  %v1777_v20 = vrot.slane %v8720_v25, 1 }
  0x60   : > { %7805 = vmatmul.mubr.msk.bf16.vlgmr.msra.gmra.mxu0 %vm460_vm1, %v8851_v3  ;;  %8272 = vmatprep.subr.msk.bf16.mxu1 %vm557_vm0, %v8856_v7  ;;  %v8938_v9 = vsel %vm1761_vm3, %v1773_v58, %v1775_v61  ;;  %v1779_v58 = vrot.slane %v8737_v28, 1 }
  0x61   : > { %7935 = vmatpush3.bf16.msra.mxu0 %v3148_v8  ;;  %7808 = vmatprep.mubr.msk.bf16.mxu0 %vm460_vm1, %v8863_v11  ;;  %11015 = vst [vmem:[#allocation20_spill] sm:$0xff] %v8921_v0  ;;  %v969_v8 = vsel %vm917_vm2, %v965_v56, %v968_v57  ;;  %v979_v53 = vor.u32 %v8926_v13, %v975_v24  ;;  %v8952_v56 = vshll.u32 %v8740_v29, 16 }
  0x62   : > { %8273 = vmatprep.subr.msk.bf16.mxu0 %vm557_vm0, %v8904_v55  ;;  %v8967_v25 = vsel %vm1761_vm3, %v1775_v61, %v1777_v20  ;;  %v1781_v61 = vrot.slane %v8740_v29, 1 }
  0x63   : > { %11018 = vst [vmem:[#allocation23_spill] sm:$0xff] %v8952_v56  ;;  %v989_v40 = vrot.slane %v8952_v56, 1 }
  0x66   : > { %7743 = vmatmul.mubr.msk.bf16.gmra.mxu1 %vm460_vm1, %v948_v42  ;;  %v8940_v42 = vor.u32 %v2922_v21, %v2921_v5  ;;  %v983_v5 = vsel %vm917_vm2, %v979_v53, %v982_v39  ;;  %v8964_v21 = vshll.u32 %v8757_v32, 16 }
  0x67   : > { %7746 = vmatprep.mubr.msk.bf16.mxu1 %vm460_vm1, %v955_v46  ;;  %v972_v46 = vor.u32 %v8921_v0, %v968_v57  ;;  %v8957_v57 = vshrl.u32 %v8737_v28, 16 }
  0x68   : > { %7809 = vmatmul.mubr.msk.bf16.gmra.mxu0 %vm460_vm1, %v8892_v17  ;;  %11021 = vst [vmem:[#allocation26_spill] sm:$0xff] %v8964_v21  ;;  %v996_v53 = vrot.slane %v8964_v21, 1 }
  0x69   : > { %7812 = vmatprep.mubr.msk.bf16.mxu0 %vm460_vm1, %v8897_v54  ;;  %11019 = vst [vmem:[#allocation24_spill] sm:$0xff] %v8957_v57  ;;  %v986_v28 = vor.u32 %v8957_v57, %v982_v39  ;;  %v8989_v39 = vshrl.u32 %v8757_v32, 16 }
  0x6b   : > { %11024 = vst [vmem:[#allocation29_spill] sm:$0xff] %v8989_v39 }
  0x6e   : > { %7747 = vmatmul.mubr.msk.bf16.gmra.mxu1 %vm460_vm1, %v962_v63  ;;  %v976_v63 = vsel %vm917_vm2, %v972_v46, %v975_v24  ;;  %v8972_v24 = vsel %vm1761_vm3, %v1777_v20, %v1779_v58  ;;  %v1783_v20 = vrot.slane %v8757_v32, 1  ;;  %v1000_v32 = vor.u32 %v8989_v39, %v996_v53 }
  0x6f   : > { %7750 = vmatprep.mubr.msk.bf16.mxu1 %vm460_vm1, %v969_v8  ;;  %v8961_v8 = vshrl.u32 %v8740_v29, 16  ;;  %11022 = vst [vmem:[#allocation27_spill] sm:$0xff] %v8972_v24  ;;  %v8999_v29 = vsel %vm1761_vm3, %v1779_v58, %v1781_v61  ;;  %v1785_v58 = vrot.slane %v8760_v33, 1 }
  0x70   : > { %7813 = vmatmul.mubr.msk.bf16.gmra.mxu0 %vm460_vm1, %v8933_v34  ;;  %11027 = vst [vmem:[#allocation32_spill] sm:$0xff] %v8999_v29 }
  0x71   : > { %7816 = vmatprep.mubr.msk.bf16.mxu0 %vm460_vm1, %v8938_v9  ;;  %11020 = vst [vmem:[#allocation25_spill] sm:$0xff] %v8961_v8  ;;  %v993_v46 = vor.u32 %v8961_v8, %v989_v40 }
  0x73   : > { %v997_v48 = vsel %vm917_vm2, %v993_v46, %v996_v53  ;;  %v1010_v46 = vrot.slane %v8996_v59, 1  ;;  %v9021_v53 = vshrl.u32 %v8779_v37, 16  ;;  %v9028_v59 = vshll.u32 %v8811_v49, 16 }
  0x75   : > { %11030 = vst [vmem:[#allocation35_spill] sm:$0xff] %v9021_v53  ;;  %11032 = vst [vmem:[#allocation37_spill] sm:$0xff] %v9028_v59 }
  0x76   : > { %7751 = vmatmul.mubr.msk.bf16.gmra.mxu1 %vm460_vm1, %v976_v63  ;;  %v8984_v63 = vshll.u32 %v8760_v33, 16  ;;  %v9031_v33 = vsel %vm1761_vm3, %v1783_v20, %v1785_v58 }
  0x77   : > { %7754 = vmatprep.mubr.msk.bf16.mxu1 %vm460_vm1, %v983_v5  ;;  %v990_v5 = vsel %vm917_vm2, %v986_v28, %v989_v40  ;;  %v9004_v40 = vsel %vm1761_vm3, %v1781_v61, %v1783_v20  ;;  %v1787_v61 = vrot.slane %v8779_v37, 1  ;;  %11033 = vst [vmem:[#allocation38_spill] sm:$0xff] %v9031_v33  ;;  %v1014_v37 = vor.u32 %v9021_v53, %v1010_v46 }
  0x78   : > { %7817 = vmatmul.mubr.msk.bf16.gmra.mxu0 %vm460_vm1, %v8967_v25  ;;  %11023 = vst [vmem:[#allocation28_spill] sm:$0xff] %v8984_v63  ;;  %11028 = vst [vmem:[#allocation33_spill] sm:$0xff] %v9004_v40  ;;  %v1789_v20 = vrot.slane %v8784_v41, 1 }
  0x79   : > { %7820 = vmatprep.mubr.msk.bf16.mxu0 %vm460_vm1, %v8972_v24  ;;  %v1003_v24 = vrot.slane %v8984_v63, 1  ;;  %v9025_v63 = vshrl.u32 %v8784_v41, 16 }
  0x7b   : > { %v1007_v28 = vor.u32 %v8993_v1, %v1003_v24  ;;  %11031 = vst [vmem:[#allocation36_spill] sm:$0xff] %v9025_v63 }
  0x7e   : > { %7755 = vmatmul.mubr.msk.bf16.gmra.mxu1 %vm460_vm1, %v990_v5  ;;  %v9016_v5 = vshll.u32 %v8784_v41, 16  ;;  %v9063_v41 = vsel %vm1761_vm3, %v1787_v61, %v1789_v20 }
  0x7f   : > { %7758 = vmatprep.mubr.msk.bf16.mxu1 %vm460_vm1, %v997_v48  ;;  %v1004_v48 = vsel %vm917_vm2, %v1000_v32, %v1003_v24  ;;  %v9036_v24 = vsel %vm1761_vm3, %v1785_v58, %v1787_v61  ;;  %v1791_v58 = vrot.slane %v8811_v49, 1  ;;  %11039 = vst [vmem:[#allocation44_spill] sm:$0xff] %v9063_v41  ;;  %v1793_v61 = vrot.slane %v8625_v4, 1 }
  0x80   : > { %7821 = vmatmul.mubr.msk.bf16.gmra.mxu0 %vm460_vm1, %v8999_v29  ;;  %11029 = vst [vmem:[#allocation34_spill] sm:$0xff] %v9016_v5  ;;  %v1011_v29 = vsel %vm917_vm2, %v1007_v28, %v1010_v46  ;;  %11034 = vst [vmem:[#allocation39_spill] sm:$0xff] %v9036_v24  ;;  %v1024_v28 = vrot.slane %v9028_v59, 1  ;;  %v9053_v46 = vshrl.u32 %v8811_v49, 16  ;;  %v9060_v59 = vshll.u32 %v8633_v6, 16 }
  0x81   : > { %7824 = vmatprep.mubr.msk.bf16.mxu0 %vm460_vm1, %v9004_v40  ;;  %v1017_v40 = vrot.slane %v9016_v5, 1  ;;  %v9057_v5 = vshrl.u32 %v8625_v4, 16 }
  0x82   : > { %11036 = vst [vmem:[#allocation41_spill] sm:$0xff] %v9053_v46  ;;  %11038 = vst [vmem:[#allocation43_spill] sm:$0xff] %v9060_v59  ;;  %v1028_v49 = vor.u32 %v9053_v46, %v1024_v28 }
  0x83   : > { %v1021_v32 = vor.u32 %v9025_v63, %v1017_v40  ;;  %11037 = vst [vmem:[#allocation42_spill] sm:$0xff] %v9057_v5 }
  0x86   : > { %7759 = vmatmul.mubr.msk.bf16.gmra.mxu1 %vm460_vm1, %v1004_v48  ;;  %v9048_v48 = vshll.u32 %v8625_v4, 16  ;;  %v9095_v4 = vsel %vm1761_vm3, %v1791_v58, %v1793_v61 }
  0x87   : > { %7762 = vmatprep.mubr.msk.bf16.mxu1 %vm460_vm1, %v1011_v29  ;;  %v1018_v29 = vsel %vm917_vm2, %v1014_v37, %v1017_v40  ;;  %v9068_v40 = vsel %vm1761_vm3, %v1789_v20, %v1791_v58  ;;  %v1795_v20 = vrot.slane %v8633_v6, 1  ;;  %11045 = vst [vmem:[#allocation50_spill] sm:$0xff] %v9095_v4  ;;  %v1797_v58 = vrot.slane %v8655_v12, 1 }
  0x88   : > { %7825 = vmatmul.mubr.msk.bf16.gmra.mxu0 %vm460_vm1, %v9031_v33  ;;  %11035 = vst [vmem:[#allocation40_spill] sm:$0xff] %v9048_v48  ;;  %v1025_v33 = vsel %vm917_vm2, %v1021_v32, %v1024_v28  ;;  %11040 = vst [vmem:[#allocation45_spill] sm:$0xff] %v9068_v40  ;;  %v1038_v32 = vrot.slane %v9060_v59, 1  ;;  %v9085_v28 = vshrl.u32 %v8633_v6, 16  ;;  %v9092_v59 = vshll.u32 %v8667_v14, 16 }
  0x89   : > { %7828 = vmatprep.mubr.msk.bf16.mxu0 %vm460_vm1, %v9036_v24  ;;  %v1031_v24 = vrot.slane %v9048_v48, 1  ;;  %v9089_v48 = vshrl.u32 %v8655_v12, 16 }
  0x8a   : > { %11042 = vst [vmem:[#allocation47_spill] sm:$0xff] %v9085_v28  ;;  %11044 = vst [vmem:[#allocation49_spill] sm:$0xff] %v9092_v59  ;;  %v1042_v6 = vor.u32 %v9085_v28, %v1038_v32 }
  0x8b   : > { %v1035_v37 = vor.u32 %v9057_v5, %v1031_v24  ;;  %11043 = vst [vmem:[#allocation48_spill] sm:$0xff] %v9089_v48 }
  0x8e   : > { %7763 = vmatmul.mubr.msk.bf16.gmra.mxu1 %vm460_vm1, %v1018_v29  ;;  %v9080_v29 = vshll.u32 %v8655_v12, 16  ;;  %v9127_v12 = vsel %vm1761_vm3, %v1795_v20, %v1797_v58 }
  0x8f   : > { %7766 = vmatprep.mubr.msk.bf16.mxu1 %vm460_vm1, %v1025_v33  ;;  %v1032_v33 = vsel %vm917_vm2, %v1028_v49, %v1031_v24  ;;  %v9100_v24 = vsel %vm1761_vm3, %v1793_v61, %v1795_v20  ;;  %v1799_v61 = vrot.slane %v8667_v14, 1  ;;  %11051 = vst [vmem:[#allocation56_spill] sm:$0xff] %v9127_v12  ;;  %v1801_v20 = vrot.slane %v8674_v15, 1 }
  0x90   : > { %7829 = vmatmul.mubr.msk.bf16.gmra.mxu0 %vm460_vm1, %v9063_v41  ;;  %11041 = vst [vmem:[#allocation46_spill] sm:$0xff] %v9080_v29  ;;  %v1039_v41 = vsel %vm917_vm2, %v1035_v37, %v1038_v32  ;;  %11046 = vst [vmem:[#allocation51_spill] sm:$0xff] %v9100_v24  ;;  %v1052_v37 = vrot.slane %v9092_v59, 1  ;;  %v9117_v32 = vshrl.u32 %v8667_v14, 16  ;;  %v9124_v59 = vshll.u32 %v8691_v18, 16 }
  0x91   : > { %7832 = vmatprep.mubr.msk.bf16.mxu0 %vm460_vm1, %v9068_v40  ;;  %v1045_v40 = vrot.slane %v9080_v29, 1  ;;  %v9121_v29 = vshrl.u32 %v8674_v15, 16 }
  0x92   : > { %11048 = vst [vmem:[#allocation53_spill] sm:$0xff] %v9117_v32  ;;  %11050 = vst [vmem:[#allocation55_spill] sm:$0xff] %v9124_v59  ;;  %v1056_v14 = vor.u32 %v9117_v32, %v1052_v37 }
  0x93   : > { %v1049_v49 = vor.u32 %v9089_v48, %v1045_v40  ;;  %11049 = vst [vmem:[#allocation54_spill] sm:$0xff] %v9121_v29 }
  0x96   : > { %7767 = vmatmul.mubr.msk.bf16.gmra.mxu1 %vm460_vm1, %v1032_v33  ;;  %v9112_v33 = vshll.u32 %v8674_v15, 16  ;;  %v9159_v15 = vsel %vm1761_vm3, %v1799_v61, %v1801_v20 }
  0x97   : > { %7770 = vmatprep.mubr.msk.bf16.mxu1 %vm460_vm1, %v1039_v41  ;;  %v1046_v41 = vsel %vm917_vm2, %v1042_v6, %v1045_v40  ;;  %v9132_v40 = vsel %vm1761_vm3, %v1797_v58, %v1799_v61  ;;  %v1803_v58 = vrot.slane %v8691_v18, 1  ;;  %11057 = vst [vmem:[#allocation62_spill] sm:$0xff] %v9159_v15  ;;  %v1805_v61 = vrot.slane %v8694_v19, 1 }
  0x98   : > { %7833 = vmatmul.mubr.msk.bf16.gmra.mxu0 %vm460_vm1, %v9095_v4  ;;  %11047 = vst [vmem:[#allocation52_spill] sm:$0xff] %v9112_v33  ;;  %v1053_v4 = vsel %vm917_vm2, %v1049_v49, %v1052_v37  ;;  %11052 = vst [vmem:[#allocation57_spill] sm:$0xff] %v9132_v40  ;;  %v1066_v49 = vrot.slane %v9124_v59, 1  ;;  %v9149_v37 = vshrl.u32 %v8691_v18, 16  ;;  %v9156_v59 = vshll.u32 %v8711_v22, 16 }
  0x99   : > { %7836 = vmatprep.mubr.msk.bf16.mxu0 %vm460_vm1, %v9100_v24  ;;  %v1059_v24 = vrot.slane %v9112_v33, 1  ;;  %v9153_v33 = vshrl.u32 %v8694_v19, 16 }
  0x9a   : > { %11054 = vst [vmem:[#allocation59_spill] sm:$0xff] %v9149_v37  ;;  %11056 = vst [vmem:[#allocation61_spill] sm:$0xff] %v9156_v59  ;;  %v1070_v18 = vor.u32 %v9149_v37, %v1066_v49 }
  0x9b   : > { %v1063_v6 = vor.u32 %v9121_v29, %v1059_v24  ;;  %11055 = vst [vmem:[#allocation60_spill] sm:$0xff] %v9153_v33 }
  0x9e   : > { %7771 = vmatmul.mubr.msk.bf16.gmra.mxu1 %vm460_vm1, %v1046_v41  ;;  %v9144_v41 = vshll.u32 %v8694_v19, 16  ;;  %v9191_v19 = vsel %vm1761_vm3, %v1803_v58, %v1805_v61 }
  0x9f   : > { %7774 = vmatprep.mubr.msk.bf16.mxu1 %vm460_vm1, %v1053_v4  ;;  %v1060_v4 = vsel %vm917_vm2, %v1056_v14, %v1059_v24  ;;  %v9164_v24 = vsel %vm1761_vm3, %v1801_v20, %v1803_v58  ;;  %v1807_v20 = vrot.slane %v8711_v22, 1  ;;  %11061 = vst [vmem:[#allocation66_spill] sm:$0xff] %v9191_v19  ;;  %v1809_v58 = vrot.slane %v8714_v23, 1 }
  0xa0   : > { %7837 = vmatmul.mubr.msk.bf16.gmra.mxu0 %vm460_vm1, %v9127_v12  ;;  %11053 = vst [vmem:[#allocation58_spill] sm:$0xff] %v9144_v41  ;;  %v1067_v12 = vsel %vm917_vm2, %v1063_v6, %v1066_v49  ;;  %11058 = vst [vmem:[#allocation63_spill] sm:$0xff] %v9164_v24  ;;  %v1080_v6 = vrot.slane %v9156_v59, 1  ;;  %v9181_v49 = vshrl.u32 %v8711_v22, 16  ;;  %v9188_v59 = vshll.u32 %v8731_v26, 16 }
  0xa1   : > { %7840 = vmatprep.mubr.msk.bf16.mxu0 %vm460_vm1, %v9132_v40  ;;  %v1073_v40 = vrot.slane %v9144_v41, 1  ;;  %v9185_v41 = vshrl.u32 %v8714_v23, 16 }
  0xa2   : > { %11060 = vst [vmem:[#allocation65_spill] sm:$0xff] %v9188_v59  ;;  %v1084_v22 = vor.u32 %v9181_v49, %v1080_v6 }
  0xa3   : > { %v1077_v14 = vor.u32 %v9153_v33, %v1073_v40 }
  0xa6   : > { %7775 = vmatmul.mubr.msk.bf16.gmra.mxu1 %vm460_vm1, %v1060_v4  ;;  %v9176_v4 = vshll.u32 %v8714_v23, 16  ;;  %v9223_v23 = vsel %vm1761_vm3, %v1807_v20, %v1809_v58 }
  0xa7   : > { %7778 = vmatprep.mubr.msk.bf16.mxu1 %vm460_vm1, %v1067_v12  ;;  %v1074_v12 = vsel %vm917_vm2, %v1070_v18, %v1073_v40  ;;  %v9196_v40 = vsel %vm1761_vm3, %v1805_v61, %v1807_v20  ;;  %v1811_v61 = vrot.slane %v8731_v26, 1  ;;  %11065 = vst [vmem:[#allocation70_spill] sm:$0xff] %v9223_v23  ;;  %v1813_v20 = vrot.slane %v8734_v27, 1 }
  0xa8   : > { %7841 = vmatmul.mubr.msk.bf16.gmra.mxu0 %vm460_vm1, %v9159_v15  ;;  %11059 = vst [vmem:[#allocation64_spill] sm:$0xff] %v9176_v4  ;;  %v1081_v15 = vsel %vm917_vm2, %v1077_v14, %v1080_v6  ;;  %11062 = vst [vmem:[#allocation67_spill] sm:$0xff] %v9196_v40  ;;  %v1094_v14 = vrot.slane %v9188_v59, 1  ;;  %v9213_v6 = vshrl.u32 %v8731_v26, 16  ;;  %v9220_v59 = vshll.u32 %v8751_v30, 16 }
  0xa9   : > { %7844 = vmatprep.mubr.msk.bf16.mxu0 %vm460_vm1, %v9164_v24  ;;  %v1087_v24 = vrot.slane %v9176_v4, 1  ;;  %v9217_v4 = vshrl.u32 %v8734_v27, 16 }
  0xaa   : > { %11064 = vst [vmem:[#allocation69_spill] sm:$0xff] %v9220_v59  ;;  %v1098_v26 = vor.u32 %v9213_v6, %v1094_v14 }
  0xab   : > { %v1091_v18 = vor.u32 %v9185_v41, %v1087_v24 }
  0xae   : > { %7779 = vmatmul.mubr.msk.bf16.gmra.mxu1 %vm460_vm1, %v1074_v12  ;;  %v9208_v12 = vshll.u32 %v8734_v27, 16  ;;  %v9255_v27 = vsel %vm1761_vm3, %v1811_v61, %v1813_v20 }
  0xaf   : > { %7782 = vmatprep.mubr.msk.bf16.mxu1 %vm460_vm1, %v1081_v15  ;;  %v1088_v15 = vsel %vm917_vm2, %v1084_v22, %v1087_v24  ;;  %v9228_v24 = vsel %vm1761_vm3, %v1809_v58, %v1811_v61  ;;  %v1815_v58 = vrot.slane %v8751_v30, 1  ;;  %11070 = vst [vmem:[#allocation75_spill] sm:$0xff] %v9255_v27 }
  0xb0   : > { %7845 = vmatmul.mubr.msk.bf16.gmra.mxu0 %vm460_vm1, %v9191_v19  ;;  %11063 = vst [vmem:[#allocation68_spill] sm:$0xff] %v9208_v12  ;;  %v1095_v19 = vsel %vm917_vm2, %v1091_v18, %v1094_v14  ;;  %11066 = vst [vmem:[#allocation71_spill] sm:$0xff] %v9228_v24  ;;  %v1108_v18 = vrot.slane %v9220_v59, 1  ;;  %v9245_v14 = vshrl.u32 %v8751_v30, 16  ;;  %v9252_v59 = vshll.u32 %v8773_v35, 16 }
  0xb1   : > { %7848 = vmatprep.mubr.msk.bf16.mxu0 %vm460_vm1, %v9196_v40  ;;  %v1101_v40 = vrot.slane %v9208_v12, 1  ;;  %v9249_v12 = vshrl.u32 %v8754_v31, 16 }
  0xb2   : > { %11069 = vst [vmem:[#allocation74_spill] sm:$0xff] %v9252_v59  ;;  %v1112_v30 = vor.u32 %v9245_v14, %v1108_v18  ;;  %v1122_v61 = vrot.slane %v9252_v59, 1  ;;  %v9284_v59 = vshll.u32 %v8802_v44, 16 }
  0xb3   : > { %v1105_v22 = vor.u32 %v9217_v4, %v1101_v40  ;;  %11068 = vst [vmem:[#allocation73_spill] sm:$0xff] %v9249_v12 }
  0xb4   : > { %11074 = vst [vmem:[#allocation79_spill] sm:$0xff] %v9284_v59 }
  0xb6   : > { %7783 = vmatmul.mubr.msk.bf16.gmra.mxu1 %vm460_vm1, %v1088_v15  ;;  %v9240_v15 = vshll.u32 %v8754_v31, 16 }
  0xb7   : > { %7786 = vmatprep.mubr.msk.bf16.mxu1 %vm460_vm1, %v1095_v19  ;;  %v1102_v19 = vsel %vm917_vm2, %v1098_v26, %v1101_v40  ;;  %v9260_v40 = vsel %vm1761_vm3, %v1813_v20, %v1815_v58  ;;  %v1819_v20 = vrot.slane %v8773_v35, 1 }
  0xb8   : > { %7849 = vmatmul.mubr.msk.bf16.gmra.mxu0 %vm460_vm1, %v9223_v23  ;;  %11067 = vst [vmem:[#allocation72_spill] sm:$0xff] %v9240_v15  ;;  %v1109_v23 = vsel %vm917_vm2, %v1105_v22, %v1108_v18  ;;  %11071 = vst [vmem:[#allocation76_spill] sm:$0xff] %v9260_v40  ;;  %v1817_v22 = vrot.slane %v8754_v31, 1  ;;  %v9277_v18 = vshrl.u32 %v8773_v35, 16 }
  0xb9   : > { %7852 = vmatprep.mubr.msk.bf16.mxu0 %vm460_vm1, %v9228_v24  ;;  %v1115_v24 = vrot.slane %v9240_v15, 1  ;;  %v9281_v15 = vshrl.u32 %v8776_v36, 16 }
  0xba   : > { %v9290_v31 = vsel %vm1761_vm3, %v1815_v58, %v1817_v22  ;;  %v9295_v35 = vsel %vm1761_vm3, %v1817_v22, %v1819_v20  ;;  %v1821_v22 = vrot.slane %v8776_v36, 1 }
  0xbb   : > { %v1119_v26 = vor.u32 %v9249_v12, %v1115_v24  ;;  %11073 = vst [vmem:[#allocation78_spill] sm:$0xff] %v9281_v15  ;;  %11076 = vst [vmem:[#allocation81_spill] sm:$0xff] %v9290_v31  ;;  %v1136_v12 = vrot.slane %v9284_v59, 1 }
  0xbc   : > { %11077 = vst [vmem:[#allocation82_spill] sm:$0xff] %v9295_v35 }
  0xbe   : > { %7787 = vmatmul.mubr.msk.bf16.gmra.mxu1 %vm460_vm1, %v1102_v19  ;;  %v9272_v19 = vshll.u32 %v8776_v36, 16  ;;  %v11078_v36 = vshrl.u32 %v8649_v10, 16 }
  0xbf   : > { %7790 = vmatprep.mubr.msk.bf16.mxu1 %vm460_vm1, %v1109_v23  ;;  %v1116_v23 = vsel %vm917_vm2, %v1112_v30, %v1115_v24  ;;  %v1126_v30 = vor.u32 %v9277_v18, %v1122_v61 }
  0xc0   : > { %7853 = vmatmul.mubr.msk.bf16.gmra.mxu0 %vm460_vm1, %v9255_v27  ;;  %11072 = vst [vmem:[#allocation77_spill] sm:$0xff] %v9272_v19  ;;  %v1123_v27 = vsel %vm917_vm2, %v1119_v26, %v1122_v61  ;;  %v1129_v24 = vrot.slane %v9272_v19, 1  ;;  %v9313_v61 = vshrl.u32 %v8802_v44, 16 }
  0xc1   : > { %7856 = vmatprep.mubr.msk.bf16.mxu0 %vm460_vm1, %v9260_v40  ;;  %v9287_v40 = vld [vmem:[%s8797_s10] sm:$0xf] }
  0xc2   : > { %11075 = vst [vmem:[#allocation80_spill] sm:$0xff] %v9287_v40  ;;  %v7094_v26 = vcombine.low %v9287_v40, %v9287_v40  ;;  %v1133_v58 = vor.u32 %v9281_v15, %v1129_v24  ;;  %v9317_v15 = vsel %vm1761_vm3, %v1819_v20, %v1821_v22  ;;  %v1140_v20 = vor.u32 %v9313_v61, %v1136_v12 }
  0xc4   : > { %v1142_v19 = vshll.u32 %v7094_v26, 16 }
  0xc6   : > { %7791 = vmatmul.mubr.msk.bf16.gmra.mxu1 %vm460_vm1, %v1116_v23  ;;  %v9309_v23 = vrot.slane %v8802_v44, 1  ;;  %v2913_v44 = vrot.slane %v8815_v51, 1  ;;  %v1144_v40 = vrot.slane %v1142_v19, 1  ;;  %v2997_v51 = vrot.slane %v9181_v49, 1 }
  0xc7   : > { %7794 = vmatprep.mubr.msk.bf16.mxu1 %vm460_vm1, %v1123_v27  ;;  %v1130_v27 = vsel %vm917_vm2, %v1126_v30, %v1129_v24  ;;  %v11079_v24 = vshll.u32 %v8649_v10, 16 }
  0xc8   : > { %7857 = vmatmul.mubr.msk.bf16.gmra.mxu0 %vm460_vm1, %v9290_v31  ;;  %v1137_v31 = vsel %vm917_vm2, %v1133_v58, %v1136_v12  ;;  %v9321_v59 = vsel %vm1761_vm3, %v1821_v22, %v9309_v23  ;;  %v2914_v58 = vrot.slane %v8805_v45, 2  ;;  %v1825_v22 = vrot.slane %v7094_v26, 1 }
  0xc9   : > { %7860 = vmatprep.mubr.msk.bf16.mxu0 %vm460_vm1, %v9295_v35  ;;  %v2910_v35 = vrot.slane %v11078_v36, 1  ;;  %v2911_v30 = vrot.slane %v11079_v24, 2  ;;  %v1145_v36 = vsel %vm917_vm2, %v1140_v20, %v1144_v40  ;;  %v2918_v12 = vrot.slane %v8818_v52, 2 }
  0xca   : > { %v2915_v10 = vor.u32 %v2914_v58, %v2913_v44  ;;  %v1826_v24 = vsel %vm1761_vm3, %v9309_v23, %v1825_v22  ;;  %v2926_v44 = vrot.slane %v8848_v2, 2  ;;  %v9359_v58 = vld [vmem:[%s10897_s2 + $0xe] sm:$0x3]  ;;  %v4296_v20 = vsel %vm557_vm0, %v8904_v55, 0 }
  0xcb   : > { %v2929_v22 = vrot.slane %v8886_v47, 1 }
  0xce   : > { %7795 = vmatmul.mubr.msk.bf16.gmra.mxu1 %vm460_vm1, %v1130_v27  ;;  %v2912_v27 = vor.u32 %v2911_v30, %v2910_v35  ;;  %v3796_v35 = vsel %vm557_vm0, %v8856_v7, 0  ;;  %v2925_v30 = vrot.slane %v8882_v43, 1  ;;  %v11100_v43 = vld [vmem:[#allocation55_spill] sm:$0xff] }
  0xcf   : > { %7798 = vmatprep.mubr.msk.bf16.mxu1 %vm460_vm1, %v1137_v31  ;;  %v2917_v31 = vrot.slane %v8839_v62, 1  ;;  %v2990_v52 = vrot.slane %v11100_v43, 2 }
  0xd0   : > { %7861 = vmatmul.mubr.msk.bf16.gmra.mxu0 %vm460_vm1, %v9317_v15  ;;  %v2916_v19 = vsel %vm2909_vm4, %v2912_v27, %v2915_v10  ;;  %v2930_v27 = vrot.slane %v8877_v38, 2  ;;  %v2981_v38 = vrot.slane %v9117_v32, 1 }
  0xd1   : > { %7864 = vmatprep.mubr.msk.bf16.mxu0 %vm460_vm1, %v9321_v59  ;;  %v2919_v40 = vor.u32 %v2918_v12, %v2917_v31 }
  0xd2   : > { %v2931_v31 = vor.u32 %v2930_v27, %v2929_v22 }
  0xd3   : > { %v2920_v26 = vsel %vm2909_vm4, %v2915_v10, %v2919_v40  ;;  %v2924_v7 = vsel %vm2909_vm4, %v2919_v40, %v8940_v42  ;;  %v2927_v10 = vor.u32 %v2926_v44, %v2925_v30  ;;  %v2933_v40 = vrot.slane %v8921_v0, 1 }
  0xd5   : > { %v2932_v44 = vsel %vm2909_vm4, %v2927_v10, %v2931_v31 }
  0xd6   : > { %7799 = vmatmul.mubr.msk.bf16.gmra.mxu1 %vm460_vm1, %v1145_v36 }
  0xd7   : > { %7870 = vmatprep.mubr.msk.bf16.mxu1 %vm460_vm1, %v8851_v3 }
  0xd8   : > { %7865 = vmatmul.mubr.msk.bf16.gmra.mxu0 %vm460_vm1, %v1826_v24 }
  0xd9   : > { %7936 = vmatprep.mubr.msk.bf16.mxu0 %vm460_vm1, %v2916_v19  ;;  %v2928_v19 = vsel %vm2909_vm4, %v8940_v42, %v2927_v10  ;;  %v9404_v42 = vld [vmem:[%s10897_s2 + $0x10] sm:$0x3] }
  0xda   : > { %11080 = vst [vmem:[#allocation83_spill] sm:$0xff] %v9404_v42 }
  0xde   : > { %v7706_v3 = vpop.f32.mrf.mxu1  ;;  %7871 = vmatmul.mubr.msk.bf16.vlgmr.msra.gmra.mxu1 %vm460_vm1, %v8863_v11 }
  0xdf   : > { %884 = vst [vmem:[%s9369_s26 + $0x110] sm:$0xff] %v7706_v3  ;;  %8001 = vmatpush3.bf16.msra.mxu1 %v3796_v35  ;;  %7874 = vmatprep.mubr.msk.bf16.mxu1 %vm460_vm1, %v8892_v17  ;;  %v9374_v55 = vpop.f32.mrf.mxu0  ;;  %v2934_v35 = vrot.slane %v8889_v50, 2  ;;  %v2937_v3 = vrot.slane %v8926_v13, 1  ;;  %v2973_v50 = vrot.slane %v9085_v28, 1 }
  0xe0   : > { %v723_v11 = vpop.f32.mrf.mxu1  ;;  %7937 = vmatmul.mubr.msk.bf16.vlgmr.msra.gmra.mxu0 %vm460_vm1, %v2920_v26  ;;  %8274 = vmatprep.subr.msk.bf16.mxu1 %vm557_vm0, %v9359_v58 }
  0xe1   : > { %882 = vst [vmem:[%s9369_s26 + $0x100] sm:$0xff] %v723_v11  ;;  %8067 = vmatpush3.bf16.msra.mxu0 %v4296_v20  ;;  %7940 = vmatprep.mubr.msk.bf16.mxu0 %vm460_vm1, %v2924_v7  ;;  %v9381_v24 = vpop.f32.mrf.mxu0  ;;  %v2938_v20 = vrot.slane %v8916_v60, 2  ;;  %v2935_v22 = vor.u32 %v2934_v35, %v2933_v40  ;;  %v2965_v60 = vrot.slane %v9053_v46, 1 }
  0xe2   : > { %v7707_v36 = vpop.f32.mrf.mxu1  ;;  %8275 = vmatprep.subr.msk.bf16.mxu0 %vm557_vm0, %v9404_v42 }
  0xe3   : > { %885 = vst [vmem:[%s9369_s26 + $0x118] sm:$0xff] %v7707_v36  ;;  %v9384_v12 = vpop.f32.mrf.mxu0  ;;  %v2939_v11 = vor.u32 %v2938_v20, %v2937_v3  ;;  %v2946_v3 = vrot.slane %v8952_v56, 2 }
  0xe4   : > { %v726_v17 = vpop.f32.mrf.mxu1 }
  0xe5   : > { %883 = vst [vmem:[%s9369_s26 + $0x108] sm:$0xff] %v726_v17  ;;  %v9393_v30 = vpop.f32.mrf.mxu0  ;;  %v2936_v17 = vsel %vm2909_vm4, %v2931_v31, %v2935_v22  ;;  %v2940_v35 = vsel %vm2909_vm4, %v2935_v22, %v2939_v11 }
  0xe6   : > { %v7710_v26 = vpop.f32.mrf.mxu1  ;;  %7875 = vmatmul.mubr.msk.bf16.gmra.mxu1 %vm460_vm1, %v8897_v54 }
  0xe7   : > { %888 = vst [vmem:[%s9369_s26 + $0x130] sm:$0xff] %v7710_v26  ;;  %7878 = vmatprep.mubr.msk.bf16.mxu1 %vm460_vm1, %v8933_v34  ;;  %v9406_v7 = vpop.f32.mrf.mxu0  ;;  %v2942_v26 = vrot.slane %v8929_v16, 2  ;;  %v2957_v16 = vrot.slane %v9021_v53, 1 }
  0xe8   : > { %v739_v54 = vpop.f32.mrf.mxu1  ;;  %7941 = vmatmul.mubr.msk.bf16.gmra.mxu0 %vm460_vm1, %v2928_v19  ;;  %v2941_v19 = vrot.slane %v8957_v57, 1 }
  0xe9   : > { %886 = vst [vmem:[%s9369_s26 + $0x120] sm:$0xff] %v739_v54  ;;  %7944 = vmatprep.mubr.msk.bf16.mxu0 %vm460_vm1, %v2932_v44  ;;  %v9413_v34 = vpop.f32.mrf.mxu0  ;;  %v2945_v44 = vrot.slane %v8961_v8, 1  ;;  %v2949_v8 = vrot.slane %v8989_v39, 1 }
  0xea   : > { %v7711_v27 = vpop.f32.mrf.mxu1 }
  0xeb   : > { %889 = vst [vmem:[%s9369_s26 + $0x138] sm:$0xff] %v7711_v27  ;;  %v9416_v36 = vpop.f32.mrf.mxu0 }
  0xec   : > { %v742_v10 = vpop.f32.mrf.mxu1 }
  0xed   : > { %887 = vst [vmem:[%s9369_s26 + $0x128] sm:$0xff] %v742_v10  ;;  %v9424_v40 = vpop.f32.mrf.mxu0  ;;  %v2947_v10 = vor.u32 %v2946_v3, %v2945_v44  ;;  %v2953_v44 = vrot.slane %v8993_v1, 1  ;;  %v11082_v3 = vld [vmem:[#allocation28_spill] sm:$0xff] }
  0xee   : > { %v7714_v54 = vpop.f32.mrf.mxu1  ;;  %7879 = vmatmul.mubr.msk.bf16.gmra.mxu1 %vm460_vm1, %v8938_v9  ;;  %v2943_v9 = vor.u32 %v2942_v26, %v2941_v19 }
  0xef   : > { %892 = vst [vmem:[%s9369_s26 + $0x150] sm:$0xff] %v7714_v54  ;;  %7882 = vmatprep.mubr.msk.bf16.mxu1 %vm460_vm1, %v8967_v25  ;;  %v9432_v20 = vpop.f32.mrf.mxu0 }
  0xf0   : > { %v755_v31 = vpop.f32.mrf.mxu1  ;;  %7945 = vmatmul.mubr.msk.bf16.gmra.mxu0 %vm460_vm1, %v2936_v17  ;;  %v2944_v25 = vsel %vm2909_vm4, %v2939_v11, %v2943_v9  ;;  %v2950_v17 = vrot.slane %v8964_v21, 2  ;;  %v2948_v26 = vsel %vm2909_vm4, %v2943_v9, %v2947_v10  ;;  %v11083_v11 = vld [vmem:[#allocation32_spill] sm:$0xff] }
  0xf1   : > { %890 = vst [vmem:[%s9369_s26 + $0x140] sm:$0xff] %v755_v31  ;;  %7948 = vmatprep.mubr.msk.bf16.mxu0 %vm460_vm1, %v2940_v35  ;;  %v9437_v22 = vpop.f32.mrf.mxu0  ;;  %v11081_v35 = vld [vmem:[#allocation27_spill] sm:$0xff] }
  0xf2   : > { %v7715_v27 = vpop.f32.mrf.mxu1 }
  0xf3   : > { %893 = vst [vmem:[%s9369_s26 + $0x158] sm:$0xff] %v7715_v27  ;;  %v9440_v54 = vpop.f32.mrf.mxu0 }
  0xf4   : > { %v758_v56 = vpop.f32.mrf.mxu1 }
  0xf5   : > { %891 = vst [vmem:[%s9369_s26 + $0x148] sm:$0xff] %v758_v56  ;;  %v9448_v19 = vpop.f32.mrf.mxu0  ;;  %v2954_v56 = vrot.slane %v11082_v3, 2 }
  0xf6   : > { %v7718_v31 = vpop.f32.mrf.mxu1  ;;  %7883 = vmatmul.mubr.msk.bf16.gmra.mxu1 %vm460_vm1, %v11081_v35  ;;  %v2951_v35 = vor.u32 %v2950_v17, %v2949_v8  ;;  %v2961_v17 = vrot.slane %v9025_v63, 1 }
  0xf7   : > { %896 = vst [vmem:[%s9369_s26 + $0x170] sm:$0xff] %v7718_v31  ;;  %7886 = vmatprep.mubr.msk.bf16.mxu1 %vm460_vm1, %v11083_v11  ;;  %v9456_v21 = vpop.f32.mrf.mxu0  ;;  %v2955_v1 = vor.u32 %v2954_v56, %v2953_v44  ;;  %v11086_v44 = vld [vmem:[#allocation34_spill] sm:$0xff] }
  0xf8   : > { %v771_v27 = vpop.f32.mrf.mxu1  ;;  %7949 = vmatmul.mubr.msk.bf16.gmra.mxu0 %vm460_vm1, %v2944_v25  ;;  %v2952_v11 = vsel %vm2909_vm4, %v2947_v10, %v2951_v35  ;;  %v11084_v25 = vld [vmem:[#allocation31_spill] sm:$0xff]  ;;  %v11087_v10 = vld [vmem:[#allocation38_spill] sm:$0xff] }
  0xf9   : > { %894 = vst [vmem:[%s9369_s26 + $0x160] sm:$0xff] %v771_v27  ;;  %7952 = vmatprep.mubr.msk.bf16.mxu0 %vm460_vm1, %v2948_v26  ;;  %v9461_v9 = vpop.f32.mrf.mxu0  ;;  %v2958_v27 = vrot.slane %v11084_v25, 2  ;;  %v11085_v26 = vld [vmem:[#allocation33_spill] sm:$0xff] }
  0xfa   : > { %v7719_v39 = vpop.f32.mrf.mxu1 }
  0xfb   : > { %897 = vst [vmem:[%s9369_s26 + $0x178] sm:$0xff] %v7719_v39  ;;  %v9464_v31 = vpop.f32.mrf.mxu0  ;;  %v2956_v39 = vsel %vm2909_vm4, %v2951_v35, %v2955_v1 }
  0xfc   : > { %v774_v3 = vpop.f32.mrf.mxu1 }
  0xfd   : > { %895 = vst [vmem:[%s9369_s26 + $0x168] sm:$0xff] %v774_v3  ;;  %v9472_v8 = vpop.f32.mrf.mxu0  ;;  %v2962_v3 = vrot.slane %v11086_v44, 2 }
  0xfe   : > { %v7722_v57 = vpop.f32.mrf.mxu1  ;;  %7887 = vmatmul.mubr.msk.bf16.gmra.mxu1 %vm460_vm1, %v11085_v26  ;;  %v2959_v26 = vor.u32 %v2958_v27, %v2957_v16  ;;  %v2969_v27 = vrot.slane %v9057_v5, 1 }
  0xff   : > { %900 = vst [vmem:[%s9369_s26 + $0x190] sm:$0xff] %v7722_v57  ;;  %7890 = vmatprep.mubr.msk.bf16.mxu1 %vm460_vm1, %v11087_v10  ;;  %v9480_v25 = vpop.f32.mrf.mxu0  ;;  %v2963_v63 = vor.u32 %v2962_v3, %v2961_v17  ;;  %v11090_v17 = vld [vmem:[#allocation40_spill] sm:$0xff] }
 0x100   : > { %v787_v56 = vpop.f32.mrf.mxu1  ;;  %7953 = vmatmul.mubr.msk.bf16.gmra.mxu0 %vm460_vm1, %v2952_v11  ;;  %v2960_v10 = vsel %vm2909_vm4, %v2955_v1, %v2959_v26  ;;  %v11088_v11 = vld [vmem:[#allocation37_spill] sm:$0xff]  ;;  %v11091_v1 = vld [vmem:[#allocation44_spill] sm:$0xff] }
 0x101   : > { %898 = vst [vmem:[%s9369_s26 + $0x180] sm:$0xff] %v787_v56  ;;  %7956 = vmatprep.mubr.msk.bf16.mxu0 %vm460_vm1, %v2956_v39  ;;  %v9485_v35 = vpop.f32.mrf.mxu0  ;;  %v2966_v56 = vrot.slane %v11088_v11, 2  ;;  %v11089_v39 = vld [vmem:[#allocation39_spill] sm:$0xff] }
 0x102   : > { %v7723_v53 = vpop.f32.mrf.mxu1 }
 0x103   : > { %901 = vst [vmem:[%s9369_s26 + $0x198] sm:$0xff] %v7723_v53  ;;  %v9488_v57 = vpop.f32.mrf.mxu0  ;;  %v2964_v53 = vsel %vm2909_vm4, %v2959_v26, %v2963_v63 }
 0x104   : > { %v790_v44 = vpop.f32.mrf.mxu1 }
 0x105   : > { %899 = vst [vmem:[%s9369_s26 + $0x188] sm:$0xff] %v790_v44  ;;  %v9496_v16 = vpop.f32.mrf.mxu0  ;;  %v2970_v44 = vrot.slane %v11090_v17, 2 }
 0x106   : > { %v7726_v13 = vpop.f32.mrf.mxu1  ;;  %7891 = vmatmul.mubr.msk.bf16.gmra.mxu1 %vm460_vm1, %v11089_v39  ;;  %v2967_v39 = vor.u32 %v2966_v56, %v2965_v60  ;;  %v2977_v56 = vrot.slane %v9089_v48, 1 }
 0x107   : > { %904 = vst [vmem:[%s9369_s26 + $0x1b0] sm:$0xff] %v7726_v13  ;;  %7894 = vmatprep.mubr.msk.bf16.mxu1 %vm460_vm1, %v11091_v1  ;;  %v9504_v11 = vpop.f32.mrf.mxu0  ;;  %v2971_v5 = vor.u32 %v2970_v44, %v2969_v27  ;;  %v11094_v27 = vld [vmem:[#allocation46_spill] sm:$0xff] }
 0x108   : > { %v803_v3 = vpop.f32.mrf.mxu1  ;;  %7957 = vmatmul.mubr.msk.bf16.gmra.mxu0 %vm460_vm1, %v2960_v10  ;;  %v2968_v1 = vsel %vm2909_vm4, %v2963_v63, %v2967_v39  ;;  %v11092_v10 = vld [vmem:[#allocation43_spill] sm:$0xff]  ;;  %v11095_v63 = vld [vmem:[#allocation50_spill] sm:$0xff] }
 0x109   : > { %902 = vst [vmem:[%s9369_s26 + $0x1a0] sm:$0xff] %v803_v3  ;;  %7960 = vmatprep.mubr.msk.bf16.mxu0 %vm460_vm1, %v2964_v53  ;;  %v9509_v26 = vpop.f32.mrf.mxu0  ;;  %v2974_v3 = vrot.slane %v11092_v10, 2  ;;  %v11093_v53 = vld [vmem:[#allocation45_spill] sm:$0xff] }
 0x10a   : > { %v7727_v46 = vpop.f32.mrf.mxu1 }
 0x10b   : > { %905 = vst [vmem:[%s9369_s26 + $0x1b8] sm:$0xff] %v7727_v46  ;;  %v9512_v13 = vpop.f32.mrf.mxu0  ;;  %v2972_v46 = vsel %vm2909_vm4, %v2967_v39, %v2971_v5 }
 0x10c   : > { %v806_v17 = vpop.f32.mrf.mxu1 }
 0x10d   : > { %903 = vst [vmem:[%s9369_s26 + $0x1a8] sm:$0xff] %v806_v17  ;;  %v9520_v60 = vpop.f32.mrf.mxu0  ;;  %v2978_v17 = vrot.slane %v11094_v27, 2 }
 0x10e   : > { %v7730_v0 = vpop.f32.mrf.mxu1  ;;  %7895 = vmatmul.mubr.msk.bf16.gmra.mxu1 %vm460_vm1, %v11093_v53  ;;  %v2975_v53 = vor.u32 %v2974_v3, %v2973_v50  ;;  %v2985_v3 = vrot.slane %v9121_v29, 1 }
 0x10f   : > { %908 = vst [vmem:[%s9369_s26 + $0x1d0] sm:$0xff] %v7730_v0  ;;  %7898 = vmatprep.mubr.msk.bf16.mxu1 %vm460_vm1, %v11095_v63  ;;  %v9528_v10 = vpop.f32.mrf.mxu0  ;;  %v2979_v48 = vor.u32 %v2978_v17, %v2977_v56  ;;  %v11098_v56 = vld [vmem:[#allocation52_spill] sm:$0xff] }
 0x110   : > { %v819_v44 = vpop.f32.mrf.mxu1  ;;  %7961 = vmatmul.mubr.msk.bf16.gmra.mxu0 %vm460_vm1, %v2968_v1  ;;  %v2976_v63 = vsel %vm2909_vm4, %v2971_v5, %v2975_v53  ;;  %v11096_v1 = vld [vmem:[#allocation49_spill] sm:$0xff]  ;;  %v11099_v5 = vld [vmem:[#allocation56_spill] sm:$0xff] }
 0x111   : > { %906 = vst [vmem:[%s9369_s26 + $0x1c0] sm:$0xff] %v819_v44  ;;  %7964 = vmatprep.mubr.msk.bf16.mxu0 %vm460_vm1, %v2972_v46  ;;  %v9533_v39 = vpop.f32.mrf.mxu0  ;;  %v2982_v44 = vrot.slane %v11096_v1, 2  ;;  %v11097_v46 = vld [vmem:[#allocation51_spill] sm:$0xff] }
 0x112   : > { %v7731_v28 = vpop.f32.mrf.mxu1 }
 0x113   : > { %909 = vst [vmem:[%s9369_s26 + $0x1d8] sm:$0xff] %v7731_v28  ;;  %v9536_v0 = vpop.f32.mrf.mxu0  ;;  %v2980_v28 = vsel %vm2909_vm4, %v2975_v53, %v2979_v48 }
 0x114   : > { %v822_v27 = vpop.f32.mrf.mxu1 }
 0x115   : > { %907 = vst [vmem:[%s9369_s26 + $0x1c8] sm:$0xff] %v822_v27  ;;  %v9544_v50 = vpop.f32.mrf.mxu0  ;;  %v2986_v27 = vrot.slane %v11098_v56, 2 }
 0x116   : > { %v7734_v47 = vpop.f32.mrf.mxu1  ;;  %7899 = vmatmul.mubr.msk.bf16.gmra.mxu1 %vm460_vm1, %v11097_v46  ;;  %v2983_v46 = vor.u32 %v2982_v44, %v2981_v38 }
 0x117   : > { %912 = vst [vmem:[%s9369_s26 + $0x1f0] sm:$0xff] %v7734_v47  ;;  %7902 = vmatprep.mubr.msk.bf16.mxu1 %vm460_vm1, %v11099_v5  ;;  %v9552_v1 = vpop.f32.mrf.mxu0  ;;  %v2987_v29 = vor.u32 %v2986_v27, %v2985_v3  ;;  %v2989_v5 = vrot.slane %v9149_v37, 1 }
 0x118   : > { %v835_v17 = vpop.f32.mrf.mxu1  ;;  %7965 = vmatmul.mubr.msk.bf16.gmra.mxu0 %vm460_vm1, %v2976_v63  ;;  %v2984_v47 = vsel %vm2909_vm4, %v2979_v48, %v2983_v46  ;;  %v11103_v48 = vld [vmem:[#allocation62_spill] sm:$0xff] }
 0x119   : > { %910 = vst [vmem:[%s9369_s26 + $0x1e0] sm:$0xff] %v835_v17  ;;  %7968 = vmatprep.mubr.msk.bf16.mxu0 %vm460_vm1, %v2980_v28  ;;  %v9557_v53 = vpop.f32.mrf.mxu0  ;;  %v11101_v17 = vld [vmem:[#allocation57_spill] sm:$0xff]  ;;  %v2988_v44 = vsel %vm2909_vm4, %v2983_v46, %v2987_v29  ;;  %v11102_v28 = vld [vmem:[#allocation58_spill] sm:$0xff]  ;;  %v2991_v46 = vor.u32 %v2990_v52, %v2989_v5 }
 0x11a   : > { %v7735_v32 = vpop.f32.mrf.mxu1  ;;  %v2994_v3 = vrot.slane %v11102_v28, 2 }
 0x11b   : > { %913 = vst [vmem:[%s9369_s26 + $0x1f8] sm:$0xff] %v7735_v32  ;;  %v9560_v56 = vpop.f32.mrf.mxu0  ;;  %v2993_v32 = vrot.slane %v9153_v33, 1  ;;  %v2992_v52 = vsel %vm2909_vm4, %v2987_v29, %v2991_v46 }
 0x11c   : > { %v838_v2 = vpop.f32.mrf.mxu1 }
 0x11d   : > { %911 = vst [vmem:[%s9369_s26 + $0x1e8] sm:$0xff] %v838_v2  ;;  %v9568_v38 = vpop.f32.mrf.mxu0  ;;  %v2995_v45 = vor.u32 %v2994_v3, %v2993_v32 }
 0x11e   : > { %v7740_v63 = vpop.f32.mrf.mxu1  ;;  %7903 = vmatmul.mubr.msk.bf16.gmra.mxu1 %vm460_vm1, %v11101_v17 }
 0x11f   : > { %v1600_v2 = vadd.f32 %v7740_v63, %v9374_v55  ;;  %7906 = vmatprep.mubr.msk.bf16.mxu1 %vm460_vm1, %v11103_v48 }
 0x120   : > { %v1279_v27 = vpop.f32.mrf.mxu1  ;;  %v7806_v43 = vpop.f32.mrf.mxu0  ;;  %7969 = vmatmul.mubr.msk.bf16.gmra.mxu0 %vm460_vm1, %v2984_v47  ;;  %v11104_v47 = vld [vmem:[#allocation61_spill] sm:$0xff] }
 0x121   : > { %v1598_v17 = vadd.f32 %v1279_v27, %v9381_v24  ;;  %v2281_v37 = vadd.f32 %v7806_v43, %v1600_v2  ;;  %7972 = vmatprep.mubr.msk.bf16.mxu0 %vm460_vm1, %v2988_v44  ;;  %v2998_v42 = vrot.slane %v11104_v47, 2  ;;  %v11105_v44 = vld [vmem:[#allocation63_spill] sm:$0xff] }
 0x122   : > { %v7741_v62 = vpop.f32.mrf.mxu1  ;;  %v1960_v33 = vpop.f32.mrf.mxu0 }
 0x123   : > { %v1601_v28 = vadd.f32 %v7741_v62, %v9384_v12  ;;  %2345 = vst [vmem:[%s9369_s26 + $0x10] sm:$0xff] %v2281_v37  ;;  %v2279_v55 = vadd.f32 %v1960_v33, %v1598_v17  ;;  %v2996_v33 = vsel %vm2909_vm4, %v2991_v46, %v2995_v45  ;;  %v3001_v37 = vrot.slane %v9185_v41, 1  ;;  %v11106_v12 = vld [vmem:[#allocation64_spill] sm:$0xff] }
 0x124   : > { %v1282_v63 = vpop.f32.mrf.mxu1  ;;  %v7807_v48 = vpop.f32.mrf.mxu0  ;;  %v3002_v32 = vrot.slane %v11106_v12, 2  ;;  %v2999_v27 = vor.u32 %v2998_v42, %v2997_v51 }
 0x125   : > { %v1599_v24 = vadd.f32 %v1282_v63, %v9393_v30  ;;  %2343 = vst [vmem:[%s9369_s26] sm:$0xff] %v2279_v55  ;;  %v2282_v43 = vadd.f32 %v7807_v48, %v1601_v28  ;;  %v11107_v28 = vld [vmem:[#allocation66_spill] sm:$0xff] }
 0x126   : > { %v7744_v5 = vpop.f32.mrf.mxu1  ;;  %7907 = vmatmul.mubr.msk.bf16.gmra.mxu1 %vm460_vm1, %v11105_v44  ;;  %v1963_v62 = vpop.f32.mrf.mxu0  ;;  %v3003_v63 = vor.u32 %v3002_v32, %v3001_v37  ;;  %v11108_v44 = vld [vmem:[#allocation65_spill] sm:$0xff]  ;;  %v11109_v37 = vld [vmem:[#allocation67_spill] sm:$0xff] }
 0x127   : > { %v1604_v3 = vadd.f32 %v7744_v5, %v9406_v7  ;;  %2346 = vst [vmem:[%s9369_s26 + $0x18] sm:$0xff] %v2282_v43  ;;  %v2280_v30 = vadd.f32 %v1963_v62, %v1599_v24  ;;  %7910 = vmatprep.mubr.msk.bf16.mxu1 %vm460_vm1, %v11107_v28  ;;  %v3006_v62 = vrot.slane %v11108_v44, 2 }
 0x128   : > { %v1295_v29 = vpop.f32.mrf.mxu1  ;;  %v7810_v2 = vpop.f32.mrf.mxu0  ;;  %7973 = vmatmul.mubr.msk.bf16.gmra.mxu0 %vm460_vm1, %v2992_v52  ;;  %v3000_v52 = vsel %vm2909_vm4, %v2995_v45, %v2999_v27  ;;  %v3004_v32 = vsel %vm2909_vm4, %v2999_v27, %v3003_v63  ;;  %v11110_v45 = vld [vmem:[#allocation68_spill] sm:$0xff] }
 0x129   : > { %v1602_v17 = vadd.f32 %v1295_v29, %v9413_v34  ;;  %2344 = vst [vmem:[%s9369_s26 + $0x8] sm:$0xff] %v2280_v30  ;;  %v2285_v46 = vadd.f32 %v7810_v2, %v1604_v3  ;;  %7976 = vmatprep.mubr.msk.bf16.mxu0 %vm460_vm1, %v2996_v33  ;;  %v3005_v34 = vrot.slane %v9213_v6, 1  ;;  %v3009_v3 = vrot.slane %v9217_v4, 1  ;;  %v11111_v29 = vld [vmem:[#allocation70_spill] sm:$0xff] }
 0x12a   : > { %v7745_v55 = vpop.f32.mrf.mxu1  ;;  %v1976_v7 = vpop.f32.mrf.mxu0  ;;  %v3010_v30 = vrot.slane %v11110_v45, 2 }
 0x12b   : > { %v1605_v48 = vadd.f32 %v7745_v55, %v9416_v36  ;;  %2349 = vst [vmem:[%s9369_s26 + $0x30] sm:$0xff] %v2285_v46  ;;  %v2283_v24 = vadd.f32 %v1976_v7, %v1602_v17 }
 0x12c   : > { %v1298_v43 = vpop.f32.mrf.mxu1  ;;  %v7811_v5 = vpop.f32.mrf.mxu0 }
 0x12d   : > { %v1603_v51 = vadd.f32 %v1298_v43, %v9424_v40  ;;  %2347 = vst [vmem:[%s9369_s26 + $0x20] sm:$0xff] %v2283_v24  ;;  %v2286_v42 = vadd.f32 %v7811_v5, %v1605_v48  ;;  %v3011_v48 = vor.u32 %v3010_v30, %v3009_v3  ;;  %v11114_v3 = vld [vmem:[#allocation73_spill] sm:$0xff] }
 0x12e   : > { %v7748_v33 = vpop.f32.mrf.mxu1  ;;  %7911 = vmatmul.mubr.msk.bf16.gmra.mxu1 %vm460_vm1, %v11109_v37  ;;  %v1979_v36 = vpop.f32.mrf.mxu0  ;;  %v11113_v37 = vld [vmem:[#allocation71_spill] sm:$0xff]  ;;  %v3017_v30 = vrot.slane %v11114_v3, 1 }
 0x12f   : > { %v1608_v40 = vadd.f32 %v7748_v33, %v9432_v20  ;;  %2350 = vst [vmem:[%s9369_s26 + $0x38] sm:$0xff] %v2286_v42  ;;  %v2284_v28 = vadd.f32 %v1979_v36, %v1603_v51  ;;  %7914 = vmatprep.mubr.msk.bf16.mxu1 %vm460_vm1, %v11111_v29  ;;  %v3007_v20 = vor.u32 %v3006_v62, %v3005_v34  ;;  %v11112_v42 = vld [vmem:[#allocation69_spill] sm:$0xff] }
 0x130   : > { %v1311_v2 = vpop.f32.mrf.mxu1  ;;  %v7814_v17 = vpop.f32.mrf.mxu0  ;;  %7977 = vmatmul.mubr.msk.bf16.gmra.mxu0 %vm460_vm1, %v3000_v52  ;;  %v3013_v52 = vrot.slane %v9245_v14, 1 }
 0x131   : > { %v1606_v27 = vadd.f32 %v1311_v2, %v9437_v22  ;;  %2348 = vst [vmem:[%s9369_s26 + $0x28] sm:$0xff] %v2284_v28  ;;  %v2289_v46 = vadd.f32 %v7814_v17, %v1608_v40  ;;  %7980 = vmatprep.mubr.msk.bf16.mxu0 %vm460_vm1, %v3004_v32  ;;  %v3014_v22 = vrot.slane %v11112_v42, 2  ;;  %v3008_v62 = vsel %vm2909_vm4, %v3003_v63, %v3007_v20  ;;  %v6215_v63 = vld [vmem:[%s9631_s12] sm:$0xff] }
 0x132   : > { %v7749_v55 = vpop.f32.mrf.mxu1  ;;  %v1992_v7 = vpop.f32.mrf.mxu0  ;;  %v3012_v32 = vsel %vm2909_vm4, %v3007_v20, %v3011_v48  ;;  %v8517_v28 = vmov 0   ;;  %v11116_v17 = vld [vmem:[#allocation75_spill] sm:$0xff] }
 0x133   : > { %v1609_v24 = vadd.f32 %v7749_v55, %v9440_v54  ;;  %2353 = vst [vmem:[%s9369_s26 + $0x50] sm:$0xff] %v2289_v46  ;;  %v2287_v43 = vadd.f32 %v1992_v7, %v1606_v27  ;;  %8323 = vset.pattern.permute.xlu0 %v8517_v28  ;;  %v3015_v20 = vor.u32 %v3014_v22, %v3013_v52 }
 0x134   : > { %v1314_v5 = vpop.f32.mrf.mxu1  ;;  %v7815_v51 = vpop.f32.mrf.mxu0  ;;  %6281 = vperm.xlu0 %8323, %v6215_v63   ;;  %8324 = vset.pattern.permute.xlu1 %v8517_v28  ;;  %v11119_v63 = vld [vmem:[#allocation76_spill] sm:$0xff] }
 0x135   : > { %v1607_v33 = vadd.f32 %v1314_v5, %v9448_v19  ;;  %2351 = vst [vmem:[%s9369_s26 + $0x40] sm:$0xff] %v2287_v43  ;;  %v2290_v34 = vadd.f32 %v7815_v51, %v1609_v24  ;;  %v11115_v19 = vld [vmem:[#allocation72_spill] sm:$0xff]  ;;  %v6217_v5 = vld [vmem:[%s9631_s12 + $0x10] sm:$0xff]  ;;  %v3016_v22 = vsel %vm2909_vm4, %v3011_v48, %v3015_v20 }
 0x136   : > { %v7752_v54 = vpop.f32.mrf.mxu1  ;;  %7915 = vmatmul.mubr.msk.bf16.gmra.mxu1 %vm460_vm1, %v11113_v37  ;;  %v1995_v36 = vpop.f32.mrf.mxu0  ;;  %v3018_v40 = vrot.slane %v11115_v19, 2  ;;  %v6216_v51 = vld [vmem:[%s9631_s12 + $0x8] sm:$0xff]  ;;  %6291 = vperm.xlu1 %8324, %v6217_v5  }
 0x137   : > { %v1612_v29 = vadd.f32 %v7752_v54, %v9456_v21  ;;  %2354 = vst [vmem:[%s9369_s26 + $0x58] sm:$0xff] %v2290_v34  ;;  %v2288_v2 = vadd.f32 %v1995_v36, %v1607_v33  ;;  %7918 = vmatprep.mubr.msk.bf16.mxu1 %vm460_vm1, %v11116_v17  ;;  %v418_v33 = vld [vmem:[%s8797_s10 + $0x4] sm:$0xf]  ;;  %v3021_v36 = vrot.slane %v9277_v18, 1 }
 0x138   : > { %v1327_v27 = vpop.f32.mrf.mxu1  ;;  %v7818_v46 = vpop.f32.mrf.mxu0  ;;  %7981 = vmatmul.mubr.msk.bf16.gmra.mxu0 %vm460_vm1, %v3008_v62  ;;  %v3019_v43 = vor.u32 %v3018_v40, %v3017_v30  ;;  %6286 = vperm.xlu0 %8323, %v6216_v51  }
 0x139   : > { %v1610_v55 = vadd.f32 %v1327_v27, %v9461_v9  ;;  %2352 = vst [vmem:[%s9369_s26 + $0x48] sm:$0xff] %v2288_v2  ;;  %v2293_v21 = vadd.f32 %v7818_v46, %v1612_v29  ;;  %7984 = vmatprep.mubr.msk.bf16.mxu0 %vm460_vm1, %v3012_v32  ;;  %v11117_v32 = vld [vmem:[#allocation74_spill] sm:$0xff] }
 0x13a   : > { %v7753_v7 = vpop.f32.mrf.mxu1  ;;  %v2008_v24 = vpop.f32.mrf.mxu0  ;;  %v3022_v30 = vrot.slane %v11117_v32, 2  ;;  %v3020_v48 = vsel %vm2909_vm4, %v3015_v20, %v3019_v43  ;;  %v11120_v2 = vld [vmem:[#allocation78_spill] sm:$0xff] }
 0x13b   : > { %v1613_v34 = vadd.f32 %v7753_v7, %v9464_v31  ;;  %2357 = vst [vmem:[%s9369_s26 + $0x70] sm:$0xff] %v2293_v21  ;;  %v2291_v54 = vadd.f32 %v2008_v24, %v1610_v55  ;;  %v11118_v31 = vld [vmem:[#allocation80_spill] sm:$0xff]  ;;  %v3025_v17 = vrot.slane %v11120_v2, 1  ;;  %v6218_v46 = vld [vmem:[%s9631_s12 + $0x18] sm:$0xff]  ;;  %v11122_v24 = vld [vmem:[#allocation81_spill] sm:$0xff] }
 0x13c   : > { %v1330_v52 = vpop.f32.mrf.mxu1  ;;  %v7819_v9 = vpop.f32.mrf.mxu0  ;;  %v9658_v40 = vcombine.low %v11118_v31, %v418_v33  ;;  %v6219_v55 = vld [vmem:[%s9631_s12 + $0x20] sm:$0xff]  ;;  %6296 = vperm.xlu1 %8324, %v6218_v46   ;;  %v6220_v31 = vld [vmem:[%s9631_s12 + $0x28] sm:$0xff] }
 0x13d   : > { %v1611_v62 = vadd.f32 %v1330_v52, %v9472_v8  ;;  %2355 = vst [vmem:[%s9369_s26 + $0x60] sm:$0xff] %v2291_v54  ;;  %v2294_v37 = vadd.f32 %v7819_v9, %v1613_v34  ;;  %v11121_v8 = vld [vmem:[#allocation77_spill] sm:$0xff]  ;;  %6301 = vperm.xlu0 %8323, %v6219_v55   ;;  %v419_v9 = vld [vmem:[%s8797_s10 + $0x8] sm:$0xf] }
 0x13e   : > { %v7756_v28 = vpop.f32.mrf.mxu1  ;;  %7919 = vmatmul.mubr.msk.bf16.gmra.mxu1 %vm460_vm1, %v11119_v63  ;;  %v2011_v29 = vpop.f32.mrf.mxu0  ;;  %v3026_v27 = vrot.slane %v11121_v8, 2 }
 0x13f   : > { %v1616_v21 = vadd.f32 %v7756_v28, %v9480_v25  ;;  %2358 = vst [vmem:[%s9369_s26 + $0x78] sm:$0xff] %v2294_v37  ;;  %v2292_v7 = vadd.f32 %v2011_v29, %v1611_v62  ;;  %7922 = vmatprep.mubr.msk.bf16.mxu1 %vm460_vm1, %v11122_v24  ;;  %v3023_v25 = vor.u32 %v3022_v30, %v3021_v36  ;;  %v3034_v62 = vshrl.u32 %v9658_v40, 16  ;;  %v11123_v30 = vld [vmem:[#allocation79_spill] sm:$0xff] }
 0x140   : > { %v1343_v5 = vpop.f32.mrf.mxu1  ;;  %v7822_v51 = vpop.f32.mrf.mxu0  ;;  %7985 = vmatmul.mubr.msk.bf16.gmra.mxu0 %vm460_vm1, %v3016_v22  ;;  %v3027_v52 = vor.u32 %v3026_v27, %v3025_v17  ;;  %v3037_v37 = vshll.u32 %v9658_v40, 16  ;;  %v6221_v22 = vld [vmem:[%s9631_s12 + $0x30] sm:$0xff]  ;;  %6306 = vperm.xlu1 %8324, %v6220_v31   ;;  %v3029_v36 = vrot.slane %v9313_v61, 1 }
 0x141   : > { %v1614_v20 = vadd.f32 %v1343_v5, %v9485_v35  ;;  %2356 = vst [vmem:[%s9369_s26 + $0x68] sm:$0xff] %v2292_v7  ;;  %v2297_v33 = vadd.f32 %v7822_v51, %v1616_v21  ;;  %7988 = vmatprep.mubr.msk.bf16.mxu0 %vm460_vm1, %v3020_v48  ;;  %v3030_v48 = vrot.slane %v11123_v30, 2  ;;  %6311 = vperm.xlu0 %8323, %v6221_v22   ;;  %v11124_v21 = vld [vmem:[#allocation82_spill] sm:$0xff]  ;;  %v3036_v5 = vrot.slane %v3034_v62, 1 }
 0x142   : > { %v7757_v34 = vpop.f32.mrf.mxu1  ;;  %v2024_v54 = vpop.f32.mrf.mxu0  ;;  %v3024_v46 = vsel %vm2909_vm4, %v3019_v43, %v3023_v25  ;;  %v3028_v24 = vsel %vm2909_vm4, %v3023_v25, %v3027_v52  ;;  %v6222_v51 = vld [vmem:[%s9631_s12 + $0x38] sm:$0xff] }
 0x143   : > { %v1617_v28 = vadd.f32 %v7757_v34, %v9488_v57  ;;  %2361 = vst [vmem:[%s9369_s26 + $0x90] sm:$0xff] %v2297_v33  ;;  %v2295_v35 = vadd.f32 %v2024_v54, %v1614_v20  ;;  %v9687_v57 = vcombine.low %v419_v9, %v419_v9  ;;  %v6223_v20 = vld [vmem:[%s9631_s12 + $0x40] sm:$0xff]  ;;  %v3031_v54 = vor.u32 %v3030_v48, %v3029_v36 }
 0x144   : > { %v1346_v63 = vpop.f32.mrf.mxu1  ;;  %v7823_v29 = vpop.f32.mrf.mxu0  ;;  %6316 = vperm.xlu1 %8324, %v6222_v51   ;;  %v2413_v9 = vrot.slane %v9658_v40, 1  ;;  %v6226_v51 = vld [vmem:[%s9631_s12 + $0x58] sm:$0xff] }
 0x145   : > { %v1615_v17 = vadd.f32 %v1346_v63, %v9496_v16  ;;  %2359 = vst [vmem:[%s9369_s26 + $0x80] sm:$0xff] %v2295_v35  ;;  %v2298_v27 = vadd.f32 %v7823_v29, %v1617_v28  ;;  %v3039_v16 = vrot.slane %v3037_v37, 2  ;;  %6321 = vperm.xlu0 %8323, %v6223_v20   ;;  %v3046_v22 = vshll.u32 %v9687_v57, 16  ;;  %v6224_v29 = vld [vmem:[%s9631_s12 + $0x48] sm:$0xff]  ;;  %v6227_v20 = vld [vmem:[%s9631_s12 + $0x60] sm:$0xff] }
 0x146   : > { %v7760_v55 = vpop.f32.mrf.mxu1  ;;  %7923 = vmatmul.mubr.msk.bf16.gmra.mxu1 %vm460_vm1, %v11124_v21  ;;  %v2027_v7 = vpop.f32.mrf.mxu0 }
 0x147   : > { %v1620_v43 = vadd.f32 %v7760_v55, %v9504_v11  ;;  %2362 = vst [vmem:[%s9369_s26 + $0x98] sm:$0xff] %v2298_v27  ;;  %v2296_v33 = vadd.f32 %v2027_v7, %v1615_v17  ;;  %7926 = vmatprep.mubr.msk.bf16.mxu1 %vm460_vm1, %v9317_v15  ;;  %v3043_v15 = vshrl.u32 %v9687_v57, 16  ;;  %v3040_v63 = vor.u32 %v3039_v16, %v3036_v5  ;;  %v6225_v17 = vld [vmem:[%s9631_s12 + $0x50] sm:$0xff] }
 0x148   : > { %v1359_v34 = vpop.f32.mrf.mxu1  ;;  %v7826_v25 = vpop.f32.mrf.mxu0  ;;  %7989 = vmatmul.mubr.msk.bf16.gmra.mxu0 %vm460_vm1, %v3024_v46  ;;  %6326 = vperm.xlu1 %8324, %v6224_v29   ;;  %v3032_v46 = vsel %vm2909_vm4, %v3027_v52, %v3031_v54  ;;  %v2414_v55 = vsel %vm1761_vm3, %v9309_v23, %v2413_v9 }
 0x149   : > { %v1618_v31 = vadd.f32 %v1359_v34, %v9509_v26  ;;  %2360 = vst [vmem:[%s9369_s26 + $0x88] sm:$0xff] %v2296_v33  ;;  %v2301_v11 = vadd.f32 %v7826_v25, %v1620_v43  ;;  %7992 = vmatprep.mubr.msk.bf16.mxu0 %vm460_vm1, %v3028_v24  ;;  %6331 = vperm.xlu0 %8323, %v6225_v17   ;;  %v3045_v7 = vrot.slane %v3043_v15, 1  ;;  %v3048_v24 = vrot.slane %v3046_v22, 2  ;;  %v6228_v17 = vld [vmem:[%s9631_s12 + $0x68] sm:$0xff] }
 0x14a   : > { %v7761_v28 = vpop.f32.mrf.mxu1  ;;  %v2040_v35 = vpop.f32.mrf.mxu0  ;;  %v3041_v52 = vsel %vm2909_vm4, %v3031_v54, %v3040_v63  ;;  %v2415_v43 = vrot.slane %v9687_v57, 1  ;;  %v8363_v54 = vld [vmem:[%s8622_s16 + $0x10] sm:$0xff]  }
 0x14b   : > { %v1621_v36 = vadd.f32 %v7761_v28, %v9512_v13  ;;  %2365 = vst [vmem:[%s9369_s26 + $0xb0] sm:$0xff] %v2301_v11  ;;  %v2299_v48 = vadd.f32 %v2040_v35, %v1618_v31  ;;  %v3635_v31 = vrot.slane %v8363_v54, 2  ;;  %v3049_v15 = vor.u32 %v3048_v24, %v3045_v7  ;;  %v8364_v35 = vld [vmem:[%s8622_s16 + $0x18] sm:$0xff]  }
 0x14c   : > { %v1362_v26 = vpop.f32.mrf.mxu1  ;;  %v7827_v27 = vpop.f32.mrf.mxu0  ;;  %6336 = vperm.xlu1 %8324, %v6226_v51   ;;  %v3637_v29 = vrot.slane %v8364_v35, 2 }
 0x14d   : > { %v1619_v21 = vadd.f32 %v1362_v26, %v9520_v60  ;;  %2363 = vst [vmem:[%s9369_s26 + $0xa0] sm:$0xff] %v2299_v48  ;;  %v2302_v13 = vadd.f32 %v7827_v27, %v1621_v36  ;;  %6341 = vperm.xlu0 %8323, %v6227_v20   ;;  %v6229_v36 = vld [vmem:[%s9631_s12 + $0x70] sm:$0xff] }
 0x14e   : > { %v7764_v5 = vpop.f32.mrf.mxu1  ;;  %7927 = vmatmul.mubr.msk.bf16.gmra.mxu1 %vm460_vm1, %v9321_v59  ;;  %v2043_v16 = vpop.f32.mrf.mxu0  ;;  %v8362_v59 = vld [vmem:[%s8622_s16 + $0x8] sm:$0xff]  }
 0x14f   : > { %v1624_v23 = vadd.f32 %v7764_v5, %v9528_v10  ;;  %2366 = vst [vmem:[%s9369_s26 + $0xb8] sm:$0xff] %v2302_v13  ;;  %v2300_v60 = vadd.f32 %v2043_v16, %v1619_v21  ;;  %7930 = vmatprep.mubr.msk.bf16.mxu1 %vm460_vm1, %v2414_v55  ;;  %v3634_v25 = vrot.slane %v8362_v59, 2  ;;  %v6230_v5 = vld [vmem:[%s9631_s12 + $0x78] sm:$0xff]  ;;  %v6231_v16 = vld [vmem:[%s9631_s12 + $0x80] sm:$0xff] }
 0x150   : > { %v1375_v33 = vpop.f32.mrf.mxu1  ;;  %v7830_v34 = vpop.f32.mrf.mxu0  ;;  %7993 = vmatmul.mubr.msk.bf16.gmra.mxu0 %vm460_vm1, %v3032_v46  ;;  %6346 = vperm.xlu1 %8324, %v6228_v17   ;;  %v5020_v17 = vsel %vm557_vm0, %v9359_v58, 0 }
 0x151   : > { %v1622_v10 = vadd.f32 %v1375_v33, %v9533_v39  ;;  %2364 = vst [vmem:[%s9369_s26 + $0xa8] sm:$0xff] %v2300_v60  ;;  %v2305_v11 = vadd.f32 %v7830_v34, %v1624_v23  ;;  %7996 = vmatprep.mubr.msk.bf16.mxu0 %vm460_vm1, %v3041_v52  ;;  %v2416_v39 = vsel %vm1761_vm3, %v2413_v9, %v2415_v43  ;;  %v11126_v60 = vld [vmem:[#allocation13_spill] sm:$0xff]  ;;  %v8365_v34 = vld [vmem:[%s8622_s16 + $0x20] sm:$0xff]  }
 0x152   : > { %v7765_v22 = vpop.f32.mrf.mxu1  ;;  %v2056_v28 = vpop.f32.mrf.mxu0  ;;  %v3636_v55 = vsel %vm3633_vm5, %v3634_v25, %v3635_v31  ;;  %6351 = vperm.xlu0 %8323, %v6229_v36   ;;  %v3638_v9 = vsel %vm3633_vm5, %v3635_v31, %v3637_v29  ;;  %v4789_v43 = vrot.slane %v11126_v60, 2  ;;  %v3639_v59 = vrot.slane %v8365_v34, 2  ;;  %v8366_v31 = vld [vmem:[%s8622_s16 + $0x28] sm:$0xff]   ;;  %v6237_v34 = vld [vmem:[%s9631_s12 + $0xb0] sm:$0xff] }
 0x153   : > { %v1625_v48 = vadd.f32 %v7765_v22, %v9536_v0  ;;  %2369 = vst [vmem:[%s9369_s26 + $0xd0] sm:$0xff] %v2305_v11  ;;  %v2303_v26 = vadd.f32 %v2056_v28, %v1622_v10  ;;  %v3050_v0 = vsel %vm2909_vm4, %v3040_v63, %v3049_v15  ;;  %v3641_v10 = vrot.slane %v8366_v31, 2  ;;  %v6232_v11 = vld [vmem:[%s9631_s12 + $0x88] sm:$0xff]  ;;  %v6233_v28 = vld [vmem:[%s9631_s12 + $0x90] sm:$0xff] }
 0x154   : > { %v1378_v27 = vpop.f32.mrf.mxu1  ;;  %v7831_v46 = vpop.f32.mrf.mxu0  ;;  %6356 = vperm.xlu1 %8324, %v6230_v5  }
 0x155   : > { %v1623_v21 = vadd.f32 %v1378_v27, %v9544_v50  ;;  %2367 = vst [vmem:[%s9369_s26 + $0xc0] sm:$0xff] %v2303_v26  ;;  %v2306_v13 = vadd.f32 %v7831_v46, %v1625_v48  ;;  %v11125_v50 = vld [vmem:[#allocation11_spill] sm:$0xff]  ;;  %v3640_v26 = vsel %vm3633_vm5, %v3637_v29, %v3639_v59  ;;  %v1568_v27 = vld [vmem:[%s9369_s26 + $0x110] sm:$0xff]  ;;  %v3642_v58 = vsel %vm3633_vm5, %v3639_v59, %v3641_v10 }
 0x156   : > { %v7768_v7 = vpop.f32.mrf.mxu1  ;;  %7931 = vmatmul.mubr.msk.bf16.gmra.mxu1 %vm460_vm1, %v2416_v39  ;;  %v2059_v24 = vpop.f32.mrf.mxu0  ;;  %v4790_v20 = vrot.slane %v11125_v50, 3  ;;  %6361 = vperm.xlu0 %8323, %v6231_v16  }
 0x157   : > { %v1628_v52 = vadd.f32 %v7768_v7, %v9552_v1  ;;  %2370 = vst [vmem:[%s9369_s26 + $0xd8] sm:$0xff] %v2306_v13  ;;  %v2304_v51 = vadd.f32 %v2059_v24, %v1623_v21  ;;  %8002 = vmatprep.mubr.msk.bf16.mxu1 %vm460_vm1, %v3636_v55  ;;  %v11127_v55 = vld [vmem:[#allocation83_spill] sm:$0xff] }
 0x158   : > { %v1391_v63 = vpop.f32.mrf.mxu1  ;;  %v7834_v23 = vpop.f32.mrf.mxu0  ;;  %7997 = vmatmul.mubr.msk.bf16.gmra.mxu0 %vm460_vm1, %v3050_v0  ;;  %6366 = vperm.xlu1 %8324, %v6232_v11   ;;  %v9771_v39 = vor.u32 %v4790_v20, %v4789_v43  ;;  %v6234_v21 = vld [vmem:[%s9631_s12 + $0x98] sm:$0xff]  ;;  %v6235_v0 = vld [vmem:[%s9631_s12 + $0xa0] sm:$0xff]  ;;  %v6236_v43 = vld [vmem:[%s9631_s12 + $0xa8] sm:$0xff] }
 0x159   : > { %v1626_v33 = vadd.f32 %v1391_v63, %v9557_v53  ;;  %2368 = vst [vmem:[%s9369_s26 + $0xc8] sm:$0xff] %v2304_v51  ;;  %v2309_v1 = vadd.f32 %v7834_v23, %v1628_v52  ;;  %8068 = vmatprep.mubr.msk.bf16.mxu0 %vm460_vm1, %v3638_v9  ;;  %v1566_v24 = vld [vmem:[%s9369_s26 + $0x100] sm:$0xff]  ;;  %v8367_v52 = vld [vmem:[%s8622_s16 + $0x30] sm:$0xff]   ;;  %v1569_v20 = vld [vmem:[%s9369_s26 + $0x118] sm:$0xff] }
 0x15a   : > { %v7769_v25 = vpop.f32.mrf.mxu1  ;;  %v2072_v54 = vpop.f32.mrf.mxu0  ;;  %6371 = vperm.xlu0 %8323, %v6233_v28   ;;  %v3643_v51 = vrot.slane %v8367_v52, 2  ;;  %v8368_v23 = vld [vmem:[%s8622_s16 + $0x38] sm:$0xff]   ;;  %v1572_v28 = vld [vmem:[%s9369_s26 + $0x130] sm:$0xff] }
 0x15b   : > { %v1629_v15 = vadd.f32 %v7769_v25, %v9560_v56  ;;  %2373 = vst [vmem:[%s9369_s26 + $0xf0] sm:$0xff] %v2309_v1  ;;  %v2307_v22 = vadd.f32 %v2072_v54, %v1626_v33  ;;  %v3645_v60 = vrot.slane %v8368_v23, 2  ;;  %v1567_v25 = vld [vmem:[%s9369_s26 + $0x108] sm:$0xff] }
 0x15c   : > { %v1394_v53 = vpop.f32.mrf.mxu1  ;;  %v7835_v35 = vpop.f32.mrf.mxu0  ;;  %6376 = vperm.xlu1 %8324, %v6234_v21  }
 0x15d   : > { %v1627_v36 = vadd.f32 %v1394_v53, %v9568_v38  ;;  %2371 = vst [vmem:[%s9369_s26 + $0xe0] sm:$0xff] %v2307_v22  ;;  %v2310_v48 = vadd.f32 %v7835_v35, %v1629_v15  ;;  %v5668_v38 = vsel %vm557_vm0, %v11127_v55, 0  ;;  %v3644_v15 = vsel %vm3633_vm5, %v3641_v10, %v3643_v51  ;;  %v8369_v55 = vld [vmem:[%s8622_s16 + $0x40] sm:$0xff]  }
 0x15e   : > { %v7772_v56 = vpop.f32.mrf.mxu1  ;;  %8003 = vmatmul.mubr.msk.bf16.vlgmr.msra.gmra.mxu1 %vm460_vm1, %v3638_v9  ;;  %v2075_v46 = vpop.f32.mrf.mxu0  ;;  %6381 = vperm.xlu0 %8323, %v6235_v0   ;;  %v3646_v35 = vsel %vm3633_vm5, %v3643_v51, %v3645_v60  ;;  %v8370_v0 = vld [vmem:[%s8622_s16 + $0x48] sm:$0xff]  }
 0x15f   : > { %v1632_v13 = vadd.f32 %v7772_v56, %v1568_v27  ;;  %2374 = vst [vmem:[%s9369_s26 + $0xf8] sm:$0xff] %v2310_v48  ;;  %8133 = vmatpush3.bf16.msra.mxu1 %v5020_v17  ;;  %v2308_v29 = vadd.f32 %v2075_v46, %v1627_v36  ;;  %8006 = vmatprep.mubr.msk.bf16.mxu1 %vm460_vm1, %v3640_v26  ;;  %v6238_v17 = vld [vmem:[%s9631_s12 + $0xb8] sm:$0xff]  ;;  %v1570_v56 = vld [vmem:[%s9369_s26 + $0x120] sm:$0xff]  ;;  %v1571_v51 = vld [vmem:[%s9369_s26 + $0x128] sm:$0xff] }
 0x160   : > { %v1407_v7 = vpop.f32.mrf.mxu1  ;;  %v7838_v9 = vpop.f32.mrf.mxu0  ;;  %8069 = vmatmul.mubr.msk.bf16.vlgmr.msra.gmra.mxu0 %vm460_vm1, %v3640_v26  ;;  %6386 = vperm.xlu1 %8324, %v6236_v43   ;;  %v6239_v26 = vld [vmem:[%s9631_s12 + $0xc0] sm:$0xff] }
 0x161   : > { %v1630_v5 = vadd.f32 %v1566_v24, %v1407_v7  ;;  %2372 = vst [vmem:[%s9369_s26 + $0xe8] sm:$0xff] %v2308_v29  ;;  %v2313_v16 = vadd.f32 %v7838_v9, %v1632_v13  ;;  %8199 = vmatpush3.bf16.msra.mxu0 %v5668_v38  ;;  %8072 = vmatprep.mubr.msk.bf16.mxu0 %vm460_vm1, %v3642_v58  ;;  %v3647_v38 = vrot.slane %v8369_v55, 2  ;;  %v1573_v13 = vld [vmem:[%s9369_s26 + $0x138] sm:$0xff]  ;;  %v3649_v7 = vrot.slane %v8370_v0, 2  ;;  %v6240_v24 = vld [vmem:[%s9631_s12 + $0xc8] sm:$0xff] }
 0x162   : > { %v7773_v50 = vpop.f32.mrf.mxu1  ;;  %v2088_v63 = vpop.f32.mrf.mxu0  ;;  %6391 = vperm.xlu0 %8323, %v6237_v34  }
 0x163   : > { %v1633_v33 = vadd.f32 %v7773_v50, %v1569_v20  ;;  %2377 = vst [vmem:[%s9369_s26 + $0x110] sm:$0xff] %v2313_v16  ;;  %v2311_v1 = vadd.f32 %v2088_v63, %v1630_v5  ;;  %v6241_v16 = vld [vmem:[%s9631_s12 + $0xd0] sm:$0xff]  ;;  %v3648_v23 = vsel %vm3633_vm5, %v3645_v60, %v3647_v38  ;;  %v3650_v34 = vsel %vm3633_vm5, %v3647_v38, %v3649_v7  ;;  %v1575_v38 = vld [vmem:[%s9369_s26 + $0x148] sm:$0xff] }
 0x164   : > { %v1410_v59 = vpop.f32.mrf.mxu1  ;;  %v7839_v54 = vpop.f32.mrf.mxu0  ;;  %6396 = vperm.xlu1 %8324, %v6238_v17  }
 0x165   : > { %v1631_v31 = vadd.f32 %v1567_v25, %v1410_v59  ;;  %2375 = vst [vmem:[%s9369_s26 + $0x100] sm:$0xff] %v2311_v1  ;;  %v2314_v11 = vadd.f32 %v7839_v54, %v1633_v33  ;;  %v1576_v33 = vld [vmem:[%s9369_s26 + $0x150] sm:$0xff]  ;;  %v6242_v59 = vld [vmem:[%s9631_s12 + $0xd8] sm:$0xff] }
 0x166   : > { %v7776_v22 = vpop.f32.mrf.mxu1  ;;  %8007 = vmatmul.mubr.msk.bf16.gmra.mxu1 %vm460_vm1, %v3642_v58  ;;  %v2091_v53 = vpop.f32.mrf.mxu0  ;;  %6401 = vperm.xlu0 %8323, %v6239_v26   ;;  %v8372_v26 = vld [vmem:[%s8622_s16 + $0x58] sm:$0xff]  }
 0x167   : > { %v1636_v36 = vadd.f32 %v7776_v22, %v1572_v28  ;;  %2378 = vst [vmem:[%s9369_s26 + $0x118] sm:$0xff] %v2314_v11  ;;  %v2312_v48 = vadd.f32 %v2091_v53, %v1631_v31  ;;  %8010 = vmatprep.mubr.msk.bf16.mxu1 %vm460_vm1, %v3644_v15  ;;  %v6243_v31 = vld [vmem:[%s9631_s12 + $0xe0] sm:$0xff]  ;;  %v8371_v53 = vld [vmem:[%s8622_s16 + $0x50] sm:$0xff]  }
 0x168   : > { %v1423_v10 = vpop.f32.mrf.mxu1  ;;  %v7842_v27 = vpop.f32.mrf.mxu0  ;;  %8073 = vmatmul.mubr.msk.bf16.gmra.mxu0 %vm460_vm1, %v3644_v15  ;;  %6406 = vperm.xlu1 %8324, %v6240_v24   ;;  %v1574_v11 = vld [vmem:[%s9369_s26 + $0x140] sm:$0xff] }
 0x169   : > { %v1634_v46 = vadd.f32 %v1570_v56, %v1423_v10  ;;  %2376 = vst [vmem:[%s9369_s26 + $0x108] sm:$0xff] %v2312_v48  ;;  %v2317_v58 = vadd.f32 %v7842_v27, %v1636_v36  ;;  %8076 = vmatprep.mubr.msk.bf16.mxu0 %vm460_vm1, %v3646_v35  ;;  %v1577_v36 = vld [vmem:[%s9369_s26 + $0x158] sm:$0xff]  ;;  %v3653_v10 = vrot.slane %v8372_v26, 2  ;;  %v6244_v56 = vld [vmem:[%s9631_s12 + $0xe8] sm:$0xff] }
 0x16a   : > { %v7777_v21 = vpop.f32.mrf.mxu1  ;;  %v2104_v29 = vpop.f32.mrf.mxu0  ;;  %6411 = vperm.xlu0 %8323, %v6241_v16  }
 0x16b   : > { %v1637_v9 = vadd.f32 %v7777_v21, %v1573_v13  ;;  %2381 = vst [vmem:[%s9369_s26 + $0x130] sm:$0xff] %v2317_v58  ;;  %v2315_v5 = vadd.f32 %v2104_v29, %v1634_v46  ;;  %v6245_v58 = vld [vmem:[%s9631_s12 + $0xf0] sm:$0xff] }
 0x16c   : > { %v1426_v52 = vpop.f32.mrf.mxu1  ;;  %v7843_v50 = vpop.f32.mrf.mxu0  ;;  %6416 = vperm.xlu1 %8324, %v6242_v59  }
 0x16d   : > { %v1635_v20 = vadd.f32 %v1571_v51, %v1426_v52  ;;  %2379 = vst [vmem:[%s9369_s26 + $0x120] sm:$0xff] %v2315_v5  ;;  %v2318_v63 = vadd.f32 %v7843_v50, %v1637_v9  ;;  %v1580_v9 = vld [vmem:[%s9369_s26 + $0x170] sm:$0xff]  ;;  %v6246_v52 = vld [vmem:[%s9631_s12 + $0xf8] sm:$0xff] }
 0x16e   : > { %v7780_v43 = vpop.f32.mrf.mxu1  ;;  %8011 = vmatmul.mubr.msk.bf16.gmra.mxu1 %vm460_vm1, %v3646_v35  ;;  %v2107_v1 = vpop.f32.mrf.mxu0  ;;  %v3651_v35 = vrot.slane %v8371_v53, 2  ;;  %6421 = vperm.xlu0 %8323, %v6243_v31   ;;  %v8374_v31 = vld [vmem:[%s8622_s16 + $0x68] sm:$0xff]  }
 0x16f   : > { %v1640_v25 = vadd.f32 %v7780_v43, %v1576_v33  ;;  %2382 = vst [vmem:[%s9369_s26 + $0x138] sm:$0xff] %v2318_v63  ;;  %v2316_v54 = vadd.f32 %v2107_v1, %v1635_v20  ;;  %8014 = vmatprep.mubr.msk.bf16.mxu1 %vm460_vm1, %v3648_v23  ;;  %v6247_v20 = vld [vmem:[%s9631_s12 + $0x100] sm:$0xff] }
 0x170   : > { %v1439_v60 = vpop.f32.mrf.mxu1  ;;  %v7846_v15 = vpop.f32.mrf.mxu0  ;;  %8077 = vmatmul.mubr.msk.bf16.gmra.mxu0 %vm460_vm1, %v3648_v23  ;;  %6426 = vperm.xlu1 %8324, %v6244_v56   ;;  %v3652_v0 = vsel %vm3633_vm5, %v3649_v7, %v3651_v35  ;;  %v3654_v16 = vsel %vm3633_vm5, %v3651_v35, %v3653_v10  ;;  %v1578_v63 = vld [vmem:[%s9369_s26 + $0x160] sm:$0xff]  ;;  %v1579_v35 = vld [vmem:[%s9369_s26 + $0x168] sm:$0xff] }
 0x171   : > { %v1638_v22 = vadd.f32 %v1574_v11, %v1439_v60  ;;  %2380 = vst [vmem:[%s9369_s26 + $0x128] sm:$0xff] %v2316_v54  ;;  %v2321_v28 = vadd.f32 %v7846_v15, %v1640_v25  ;;  %8080 = vmatprep.mubr.msk.bf16.mxu0 %vm460_vm1, %v3650_v34  ;;  %v8373_v1 = vld [vmem:[%s8622_s16 + $0x60] sm:$0xff]   ;;  %v1581_v25 = vld [vmem:[%s9369_s26 + $0x178] sm:$0xff]  ;;  %v3657_v60 = vrot.slane %v8374_v31, 2  ;;  %v6248_v11 = vld [vmem:[%s9631_s12 + $0x108] sm:$0xff] }
 0x172   : > { %v7781_v17 = vpop.f32.mrf.mxu1  ;;  %v2120_v48 = vpop.f32.mrf.mxu0  ;;  %6431 = vperm.xlu0 %8323, %v6245_v58  }
 0x173   : > { %v1641_v27 = vadd.f32 %v7781_v17, %v1577_v36  ;;  %2385 = vst [vmem:[%s9369_s26 + $0x150] sm:$0xff] %v2321_v28  ;;  %v2319_v46 = vadd.f32 %v2120_v48, %v1638_v22  ;;  %v6249_v28 = vld [vmem:[%s9631_s12 + $0x110] sm:$0xff] }
 0x174   : > { %v1442_v55 = vpop.f32.mrf.mxu1  ;;  %v7847_v21 = vpop.f32.mrf.mxu0  ;;  %6436 = vperm.xlu1 %8324, %v6246_v52  }
 0x175   : > { %v1639_v13 = vadd.f32 %v1575_v38, %v1442_v55  ;;  %2383 = vst [vmem:[%s9369_s26 + $0x140] sm:$0xff] %v2319_v46  ;;  %v2322_v29 = vadd.f32 %v7847_v21, %v1641_v27  ;;  %v1584_v27 = vld [vmem:[%s9369_s26 + $0x190] sm:$0xff]  ;;  %v6250_v55 = vld [vmem:[%s9631_s12 + $0x118] sm:$0xff] }
 0x176   : > { %v7784_v24 = vpop.f32.mrf.mxu1  ;;  %8015 = vmatmul.mubr.msk.bf16.gmra.mxu1 %vm460_vm1, %v3650_v34  ;;  %v2123_v5 = vpop.f32.mrf.mxu0  ;;  %v3655_v34 = vrot.slane %v8373_v1, 2  ;;  %6441 = vperm.xlu0 %8323, %v6247_v20   ;;  %v8376_v20 = vld [vmem:[%s8622_s16 + $0x78] sm:$0xff]  }
 0x177   : > { %v1644_v51 = vadd.f32 %v7784_v24, %v1580_v9  ;;  %2386 = vst [vmem:[%s9369_s26 + $0x158] sm:$0xff] %v2322_v29  ;;  %v2320_v50 = vadd.f32 %v2123_v5, %v1639_v13  ;;  %8018 = vmatprep.mubr.msk.bf16.mxu1 %vm460_vm1, %v3652_v0  ;;  %v6251_v13 = vld [vmem:[%s9631_s12 + $0x120] sm:$0xff]  ;;  %v8375_v5 = vld [vmem:[%s8622_s16 + $0x70] sm:$0xff]  }
 0x178   : > { %v1455_v7 = vpop.f32.mrf.mxu1  ;;  %v7850_v23 = vpop.f32.mrf.mxu0  ;;  %8081 = vmatmul.mubr.msk.bf16.gmra.mxu0 %vm460_vm1, %v3652_v0  ;;  %6446 = vperm.xlu1 %8324, %v6248_v11   ;;  %v3656_v26 = vsel %vm3633_vm5, %v3653_v10, %v3655_v34  ;;  %v3658_v58 = vsel %vm3633_vm5, %v3655_v34, %v3657_v60  ;;  %v1582_v29 = vld [vmem:[%s9369_s26 + $0x180] sm:$0xff]  ;;  %v1583_v34 = vld [vmem:[%s9369_s26 + $0x188] sm:$0xff] }
 0x179   : > { %v1642_v43 = vadd.f32 %v1578_v63, %v1455_v7  ;;  %2384 = vst [vmem:[%s9369_s26 + $0x148] sm:$0xff] %v2320_v50  ;;  %v2325_v33 = vadd.f32 %v7850_v23, %v1644_v51  ;;  %8084 = vmatprep.mubr.msk.bf16.mxu0 %vm460_vm1, %v3654_v16  ;;  %v1585_v51 = vld [vmem:[%s9369_s26 + $0x198] sm:$0xff]  ;;  %v3661_v7 = vrot.slane %v8376_v20, 2  ;;  %v6252_v63 = vld [vmem:[%s9631_s12 + $0x128] sm:$0xff] }
 0x17a   : > { %v7785_v59 = vpop.f32.mrf.mxu1  ;;  %v2136_v54 = vpop.f32.mrf.mxu0  ;;  %6451 = vperm.xlu0 %8323, %v6249_v28  }
 0x17b   : > { %v1645_v15 = vadd.f32 %v7785_v59, %v1581_v25  ;;  %2389 = vst [vmem:[%s9369_s26 + $0x170] sm:$0xff] %v2325_v33  ;;  %v2323_v22 = vadd.f32 %v2136_v54, %v1642_v43  ;;  %v6253_v33 = vld [vmem:[%s9631_s12 + $0x130] sm:$0xff] }
 0x17c   : > { %v1458_v53 = vpop.f32.mrf.mxu1  ;;  %v7851_v17 = vpop.f32.mrf.mxu0  ;;  %6456 = vperm.xlu1 %8324, %v6250_v55  }
 0x17d   : > { %v1643_v36 = vadd.f32 %v1579_v35, %v1458_v53  ;;  %2387 = vst [vmem:[%s9369_s26 + $0x160] sm:$0xff] %v2323_v22  ;;  %v2326_v48 = vadd.f32 %v7851_v17, %v1645_v15  ;;  %v1588_v15 = vld [vmem:[%s9369_s26 + $0x1b0] sm:$0xff]  ;;  %v6254_v53 = vld [vmem:[%s9631_s12 + $0x138] sm:$0xff] }
 0x17e   : > { %v7788_v56 = vpop.f32.mrf.mxu1  ;;  %8019 = vmatmul.mubr.msk.bf16.gmra.mxu1 %vm460_vm1, %v3654_v16  ;;  %v2139_v46 = vpop.f32.mrf.mxu0  ;;  %v3659_v16 = vrot.slane %v8375_v5, 2  ;;  %6461 = vperm.xlu0 %8323, %v6251_v13   ;;  %v8378_v13 = vld [vmem:[%s8622_s16 + $0x88] sm:$0xff]  }
 0x17f   : > { %v1648_v38 = vadd.f32 %v7788_v56, %v1584_v27  ;;  %2390 = vst [vmem:[%s9369_s26 + $0x178] sm:$0xff] %v2326_v48  ;;  %v2324_v21 = vadd.f32 %v2139_v46, %v1643_v36  ;;  %8022 = vmatprep.mubr.msk.bf16.mxu1 %vm460_vm1, %v3656_v26  ;;  %v6255_v36 = vld [vmem:[%s9631_s12 + $0x140] sm:$0xff] }
 0x180   : > { %v1471_v10 = vpop.f32.mrf.mxu1  ;;  %v7854_v0 = vpop.f32.mrf.mxu0  ;;  %8085 = vmatmul.mubr.msk.bf16.gmra.mxu0 %vm460_vm1, %v3656_v26  ;;  %6466 = vperm.xlu1 %8324, %v6252_v63   ;;  %v3660_v31 = vsel %vm3633_vm5, %v3657_v60, %v3659_v16  ;;  %v3662_v28 = vsel %vm3633_vm5, %v3659_v16, %v3661_v7  ;;  %v1586_v48 = vld [vmem:[%s9369_s26 + $0x1a0] sm:$0xff]  ;;  %v1587_v16 = vld [vmem:[%s9369_s26 + $0x1a8] sm:$0xff] }
 0x181   : > { %v1646_v24 = vadd.f32 %v1582_v29, %v1471_v10  ;;  %2388 = vst [vmem:[%s9369_s26 + $0x168] sm:$0xff] %v2324_v21  ;;  %v2329_v9 = vadd.f32 %v7854_v0, %v1648_v38  ;;  %8088 = vmatprep.mubr.msk.bf16.mxu0 %vm460_vm1, %v3658_v58  ;;  %v8377_v46 = vld [vmem:[%s8622_s16 + $0x80] sm:$0xff]   ;;  %v1589_v38 = vld [vmem:[%s9369_s26 + $0x1b8] sm:$0xff]  ;;  %v3665_v10 = vrot.slane %v8378_v13, 2  ;;  %v6256_v29 = vld [vmem:[%s9631_s12 + $0x148] sm:$0xff] }
 0x182   : > { %v7789_v52 = vpop.f32.mrf.mxu1  ;;  %v2152_v50 = vpop.f32.mrf.mxu0  ;;  %6471 = vperm.xlu0 %8323, %v6253_v33  }
 0x183   : > { %v1649_v23 = vadd.f32 %v7789_v52, %v1585_v51  ;;  %2393 = vst [vmem:[%s9369_s26 + $0x190] sm:$0xff] %v2329_v9  ;;  %v2327_v43 = vadd.f32 %v2152_v50, %v1646_v24  ;;  %v6257_v9 = vld [vmem:[%s9631_s12 + $0x150] sm:$0xff] }
 0x184   : > { %v1474_v1 = vpop.f32.mrf.mxu1  ;;  %v7855_v59 = vpop.f32.mrf.mxu0  ;;  %6476 = vperm.xlu1 %8324, %v6254_v53  }
 0x185   : > { %v1647_v25 = vadd.f32 %v1583_v34, %v1474_v1  ;;  %2391 = vst [vmem:[%s9369_s26 + $0x180] sm:$0xff] %v2327_v43  ;;  %v2330_v54 = vadd.f32 %v7855_v59, %v1649_v23  ;;  %v1592_v23 = vld [vmem:[%s9369_s26 + $0x1d0] sm:$0xff]  ;;  %v6258_v1 = vld [vmem:[%s9631_s12 + $0x158] sm:$0xff] }
 0x186   : > { %v7792_v11 = vpop.f32.mrf.mxu1  ;;  %8023 = vmatmul.mubr.msk.bf16.gmra.mxu1 %vm460_vm1, %v3658_v58  ;;  %v2155_v22 = vpop.f32.mrf.mxu0  ;;  %v3663_v58 = vrot.slane %v8377_v46, 2  ;;  %6481 = vperm.xlu0 %8323, %v6255_v36   ;;  %v8380_v36 = vld [vmem:[%s8622_s16 + $0x98] sm:$0xff]  }
 0x187   : > { %v1652_v35 = vadd.f32 %v7792_v11, %v1588_v15  ;;  %2394 = vst [vmem:[%s9369_s26 + $0x198] sm:$0xff] %v2330_v54  ;;  %v2328_v17 = vadd.f32 %v2155_v22, %v1647_v25  ;;  %8026 = vmatprep.mubr.msk.bf16.mxu1 %vm460_vm1, %v3660_v31  ;;  %v6259_v25 = vld [vmem:[%s9631_s12 + $0x160] sm:$0xff]  ;;  %v8379_v22 = vld [vmem:[%s8622_s16 + $0x90] sm:$0xff]  }
 0x188   : > { %v1487_v60 = vpop.f32.mrf.mxu1  ;;  %v7858_v26 = vpop.f32.mrf.mxu0  ;;  %8089 = vmatmul.mubr.msk.bf16.gmra.mxu0 %vm460_vm1, %v3660_v31  ;;  %6486 = vperm.xlu1 %8324, %v6256_v29   ;;  %v3664_v20 = vsel %vm3633_vm5, %v3661_v7, %v3663_v58  ;;  %v3666_v33 = vsel %vm3633_vm5, %v3663_v58, %v3665_v10  ;;  %v1590_v54 = vld [vmem:[%s9369_s26 + $0x1c0] sm:$0xff]  ;;  %v1591_v58 = vld [vmem:[%s9369_s26 + $0x1c8] sm:$0xff] }
 0x189   : > { %v1650_v56 = vadd.f32 %v1586_v48, %v1487_v60  ;;  %2392 = vst [vmem:[%s9369_s26 + $0x188] sm:$0xff] %v2328_v17  ;;  %v2333_v27 = vadd.f32 %v7858_v26, %v1652_v35  ;;  %8092 = vmatprep.mubr.msk.bf16.mxu0 %vm460_vm1, %v3662_v28  ;;  %v1593_v35 = vld [vmem:[%s9369_s26 + $0x1d8] sm:$0xff]  ;;  %v3669_v60 = vrot.slane %v8380_v36, 2  ;;  %v6260_v48 = vld [vmem:[%s9631_s12 + $0x168] sm:$0xff] }
 0x18a   : > { %v7793_v55 = vpop.f32.mrf.mxu1  ;;  %v2168_v21 = vpop.f32.mrf.mxu0  ;;  %6491 = vperm.xlu0 %8323, %v6257_v9  }
 0x18b   : > { %v1653_v0 = vadd.f32 %v7793_v55, %v1589_v38  ;;  %2397 = vst [vmem:[%s9369_s26 + $0x1b0] sm:$0xff] %v2333_v27  ;;  %v2331_v24 = vadd.f32 %v2168_v21, %v1650_v56  ;;  %v6261_v27 = vld [vmem:[%s9631_s12 + $0x170] sm:$0xff] }
 0x18c   : > { %v1490_v5 = vpop.f32.mrf.mxu1  ;;  %v7859_v52 = vpop.f32.mrf.mxu0  ;;  %6496 = vperm.xlu1 %8324, %v6258_v1  }
 0x18d   : > { %v1651_v51 = vadd.f32 %v1587_v16, %v1490_v5  ;;  %2395 = vst [vmem:[%s9369_s26 + $0x1a0] sm:$0xff] %v2331_v24  ;;  %v2334_v50 = vadd.f32 %v7859_v52, %v1653_v0  ;;  %v1596_v0 = vld [vmem:[%s9369_s26 + $0x1f0] sm:$0xff]  ;;  %v6262_v5 = vld [vmem:[%s9631_s12 + $0x178] sm:$0xff] }
 0x18e   : > { %v7796_v63 = vpop.f32.mrf.mxu1  ;;  %8027 = vmatmul.mubr.msk.bf16.gmra.mxu1 %vm460_vm1, %v3662_v28  ;;  %v2171_v43 = vpop.f32.mrf.mxu0  ;;  %v3667_v28 = vrot.slane %v8379_v22, 2  ;;  %6501 = vperm.xlu0 %8323, %v6259_v25   ;;  %v8382_v25 = vld [vmem:[%s8622_s16 + $0xa8] sm:$0xff]  }
 0x18f   : > { %v1656_v34 = vadd.f32 %v7796_v63, %v1592_v23  ;;  %2398 = vst [vmem:[%s9369_s26 + $0x1b8] sm:$0xff] %v2334_v50  ;;  %v2332_v59 = vadd.f32 %v2171_v43, %v1651_v51  ;;  %8030 = vmatprep.mubr.msk.bf16.mxu1 %vm460_vm1, %v3664_v20  ;;  %v6263_v51 = vld [vmem:[%s9631_s12 + $0x180] sm:$0xff] }
 0x190   : > { %v1503_v7 = vpop.f32.mrf.mxu1  ;;  %v7862_v31 = vpop.f32.mrf.mxu0  ;;  %8093 = vmatmul.mubr.msk.bf16.gmra.mxu0 %vm460_vm1, %v3664_v20  ;;  %6506 = vperm.xlu1 %8324, %v6260_v48   ;;  %v3668_v13 = vsel %vm3633_vm5, %v3665_v10, %v3667_v28  ;;  %v3670_v9 = vsel %vm3633_vm5, %v3667_v28, %v3669_v60  ;;  %v1594_v50 = vld [vmem:[%s9369_s26 + $0x1e0] sm:$0xff]  ;;  %v1595_v28 = vld [vmem:[%s9369_s26 + $0x1e8] sm:$0xff] }
 0x191   : > { %v1654_v11 = vadd.f32 %v1590_v54, %v1503_v7  ;;  %2396 = vst [vmem:[%s9369_s26 + $0x1a8] sm:$0xff] %v2332_v59  ;;  %v2337_v15 = vadd.f32 %v7862_v31, %v1656_v34  ;;  %8096 = vmatprep.mubr.msk.bf16.mxu0 %vm460_vm1, %v3666_v33  ;;  %v8381_v43 = vld [vmem:[%s8622_s16 + $0xa0] sm:$0xff]   ;;  %v1597_v34 = vld [vmem:[%s9369_s26 + $0x1f8] sm:$0xff]  ;;  %v3673_v7 = vrot.slane %v8382_v25, 2  ;;  %v6264_v54 = vld [vmem:[%s9631_s12 + $0x188] sm:$0xff] }
 0x192   : > { %v7797_v53 = vpop.f32.mrf.mxu1  ;;  %v2184_v17 = vpop.f32.mrf.mxu0  ;;  %6511 = vperm.xlu0 %8323, %v6261_v27  }
 0x193   : > { %v1657_v26 = vadd.f32 %v7797_v53, %v1593_v35  ;;  %2401 = vst [vmem:[%s9369_s26 + $0x1d0] sm:$0xff] %v2337_v15  ;;  %v2335_v56 = vadd.f32 %v2184_v17, %v1654_v11  ;;  %v6265_v15 = vld [vmem:[%s9631_s12 + $0x190] sm:$0xff] }
 0x194   : > { %v1506_v46 = vpop.f32.mrf.mxu1  ;;  %v7863_v55 = vpop.f32.mrf.mxu0  ;;  %6516 = vperm.xlu1 %8324, %v6262_v5  }
 0x195   : > { %v1655_v38 = vadd.f32 %v1591_v58, %v1506_v46  ;;  %2399 = vst [vmem:[%s9369_s26 + $0x1c0] sm:$0xff] %v2335_v56  ;;  %v2338_v21 = vadd.f32 %v7863_v55, %v1657_v26  ;;  %v2717_v26 = vld [vmem:[%s9369_s26 + $0x10] sm:$0xff]  ;;  %v6266_v46 = vld [vmem:[%s9631_s12 + $0x198] sm:$0xff] }
 0x196   : > { %v7800_v29 = vpop.f32.mrf.mxu1  ;;  %8031 = vmatmul.mubr.msk.bf16.gmra.mxu1 %vm460_vm1, %v3666_v33  ;;  %v2187_v24 = vpop.f32.mrf.mxu0  ;;  %v3671_v33 = vrot.slane %v8381_v43, 2  ;;  %6521 = vperm.xlu0 %8323, %v6263_v51   ;;  %v8384_v51 = vld [vmem:[%s8622_s16 + $0xb8] sm:$0xff]  }
 0x197   : > { %v1660_v16 = vadd.f32 %v7800_v29, %v1596_v0  ;;  %2402 = vst [vmem:[%s9369_s26 + $0x1d8] sm:$0xff] %v2338_v21  ;;  %v2336_v52 = vadd.f32 %v2187_v24, %v1655_v38  ;;  %8034 = vmatprep.mubr.msk.bf16.mxu1 %vm460_vm1, %v3668_v13  ;;  %v6267_v38 = vld [vmem:[%s9631_s12 + $0x1a0] sm:$0xff]  ;;  %v8383_v24 = vld [vmem:[%s8622_s16 + $0xb0] sm:$0xff]  }
 0x198   : > { %v1519_v10 = vpop.f32.mrf.mxu1  ;;  %v7866_v20 = vpop.f32.mrf.mxu0  ;;  %8097 = vmatmul.mubr.msk.bf16.gmra.mxu0 %vm460_vm1, %v3668_v13  ;;  %6526 = vperm.xlu1 %8324, %v6264_v54   ;;  %v3672_v36 = vsel %vm3633_vm5, %v3669_v60, %v3671_v33  ;;  %v3674_v27 = vsel %vm3633_vm5, %v3671_v33, %v3673_v7  ;;  %v2715_v21 = vld [vmem:[%s9369_s26] sm:$0xff]  ;;  %v2716_v33 = vld [vmem:[%s9369_s26 + $0x8] sm:$0xff] }
 0x199   : > { %v1658_v63 = vadd.f32 %v1594_v50, %v1519_v10  ;;  %2400 = vst [vmem:[%s9369_s26 + $0x1c8] sm:$0xff] %v2336_v52  ;;  %v2341_v23 = vadd.f32 %v7866_v20, %v1660_v16  ;;  %8100 = vmatprep.mubr.msk.bf16.mxu0 %vm460_vm1, %v3670_v9  ;;  %v2718_v16 = vld [vmem:[%s9369_s26 + $0x18] sm:$0xff]  ;;  %v3677_v10 = vrot.slane %v8384_v51, 2  ;;  %v6268_v50 = vld [vmem:[%s9631_s12 + $0x1a8] sm:$0xff] }
 0x19a   : > { %v7801_v1 = vpop.f32.mrf.mxu1  ;;  %v2200_v59 = vpop.f32.mrf.mxu0  ;;  %6531 = vperm.xlu0 %8323, %v6265_v15  }
 0x19b   : > { %v1661_v31 = vadd.f32 %v7801_v1, %v1597_v34  ;;  %2405 = vst [vmem:[%s9369_s26 + $0x1f0] sm:$0xff] %v2341_v23  ;;  %v2339_v11 = vadd.f32 %v2200_v59, %v1658_v63  ;;  %v6269_v23 = vld [vmem:[%s9631_s12 + $0x1b0] sm:$0xff] }
 0x19c   : > { %v1522_v22 = vpop.f32.mrf.mxu1  ;;  %v7867_v53 = vpop.f32.mrf.mxu0  ;;  %6536 = vperm.xlu1 %8324, %v6266_v46  }
 0x19d   : > { %v1659_v35 = vadd.f32 %v1595_v28, %v1522_v22  ;;  %2403 = vst [vmem:[%s9369_s26 + $0x1e0] sm:$0xff] %v2339_v11  ;;  %v2342_v17 = vadd.f32 %v7867_v53, %v1661_v31  ;;  %v2721_v31 = vld [vmem:[%s9369_s26 + $0x30] sm:$0xff]  ;;  %v6270_v22 = vld [vmem:[%s9631_s12 + $0x1b8] sm:$0xff] }
 0x19e   : > { %v7872_v48 = vpop.f32.mrf.mxu1  ;;  %8035 = vmatmul.mubr.msk.bf16.gmra.mxu1 %vm460_vm1, %v3670_v9  ;;  %v2203_v56 = vpop.f32.mrf.mxu0  ;;  %v3675_v9 = vrot.slane %v8383_v24, 2  ;;  %6541 = vperm.xlu0 %8323, %v6267_v38   ;;  %v8386_v38 = vld [vmem:[%s8622_s16 + $0xc8] sm:$0xff]  }
 0x19f   : > { %2406 = vst [vmem:[%s9369_s26 + $0x1f8] sm:$0xff] %v2342_v17  ;;  %v2781_v58 = vadd.f32 %v7872_v48, %v2717_v26  ;;  %v2340_v55 = vadd.f32 %v2203_v56, %v1659_v35  ;;  %8038 = vmatprep.mubr.msk.bf16.mxu1 %vm460_vm1, %v3672_v36  ;;  %v6271_v35 = vld [vmem:[%s9631_s12 + $0x1c0] sm:$0xff] }
 0x1a0   : > { %v2460_v60 = vpop.f32.mrf.mxu1  ;;  %v7938_v13 = vpop.f32.mrf.mxu0  ;;  %8101 = vmatmul.mubr.msk.bf16.gmra.mxu0 %vm460_vm1, %v3672_v36  ;;  %6546 = vperm.xlu1 %8324, %v6268_v50   ;;  %v3676_v25 = vsel %vm3633_vm5, %v3673_v7, %v3675_v9  ;;  %v3678_v15 = vsel %vm3633_vm5, %v3675_v9, %v3677_v10  ;;  %v2719_v17 = vld [vmem:[%s9369_s26 + $0x20] sm:$0xff]  ;;  %v2720_v9 = vld [vmem:[%s9369_s26 + $0x28] sm:$0xff] }
 0x1a1   : > { %2404 = vst [vmem:[%s9369_s26 + $0x1e8] sm:$0xff] %v2340_v55  ;;  %v2779_v29 = vadd.f32 %v2715_v21, %v2460_v60  ;;  %v3505_v0 = vadd.f32 %v7938_v13, %v2781_v58  ;;  %8104 = vmatprep.mubr.msk.bf16.mxu0 %vm460_vm1, %v3674_v27  ;;  %v8385_v56 = vld [vmem:[%s8622_s16 + $0xc0] sm:$0xff]   ;;  %v2722_v58 = vld [vmem:[%s9369_s26 + $0x38] sm:$0xff]  ;;  %v3681_v60 = vrot.slane %v8386_v38, 2  ;;  %v6272_v21 = vld [vmem:[%s9631_s12 + $0x1c8] sm:$0xff] }
 0x1a2   : > { %v7873_v5 = vpop.f32.mrf.mxu1  ;;  %v3184_v52 = vpop.f32.mrf.mxu0  ;;  %6551 = vperm.xlu0 %8323, %v6269_v23  }
 0x1a3   : > { %v2782_v20 = vadd.f32 %v7873_v5, %v2718_v16  ;;  %3569 = vst [vmem:[%s9369_s26 + $0x10] sm:$0xff] %v3505_v0  ;;  %v3503_v63 = vadd.f32 %v3184_v52, %v2779_v29  ;;  %v6273_v0 = vld [vmem:[%s9631_s12 + $0x1d0] sm:$0xff] }
 0x1a4   : > { %v2463_v43 = vpop.f32.mrf.mxu1  ;;  %v7939_v1 = vpop.f32.mrf.mxu0  ;;  %6556 = vperm.xlu1 %8324, %v6270_v22  }
 0x1a5   : > { %v2780_v34 = vadd.f32 %v2716_v33, %v2463_v43  ;;  %3567 = vst [vmem:[%s9369_s26] sm:$0xff] %v3503_v63  ;;  %v3506_v59 = vadd.f32 %v7939_v1, %v2782_v20  ;;  %v2725_v20 = vld [vmem:[%s9369_s26 + $0x50] sm:$0xff]  ;;  %v6274_v43 = vld [vmem:[%s9631_s12 + $0x1d8] sm:$0xff] }
 0x1a6   : > { %v7876_v54 = vpop.f32.mrf.mxu1  ;;  %8039 = vmatmul.mubr.msk.bf16.gmra.mxu1 %vm460_vm1, %v3674_v27  ;;  %v3187_v11 = vpop.f32.mrf.mxu0  ;;  %v3679_v27 = vrot.slane %v8385_v56, 2  ;;  %6561 = vperm.xlu0 %8323, %v6271_v35   ;;  %v8388_v35 = vld [vmem:[%s8622_s16 + $0xd8] sm:$0xff]  }
 0x1a7   : > { %v2785_v28 = vadd.f32 %v7876_v54, %v2721_v31  ;;  %3570 = vst [vmem:[%s9369_s26 + $0x18] sm:$0xff] %v3506_v59  ;;  %v3504_v53 = vadd.f32 %v3187_v11, %v2780_v34  ;;  %8042 = vmatprep.mubr.msk.bf16.mxu1 %vm460_vm1, %v3676_v25  ;;  %v6275_v34 = vld [vmem:[%s9631_s12 + $0x1e0] sm:$0xff]  ;;  %v8387_v11 = vld [vmem:[%s8622_s16 + $0xd0] sm:$0xff]  }
 0x1a8   : > { %v2476_v7 = vpop.f32.mrf.mxu1  ;;  %v7942_v36 = vpop.f32.mrf.mxu0  ;;  %8105 = vmatmul.mubr.msk.bf16.gmra.mxu0 %vm460_vm1, %v3676_v25  ;;  %6566 = vperm.xlu1 %8324, %v6272_v21   ;;  %v3680_v51 = vsel %vm3633_vm5, %v3677_v10, %v3679_v27  ;;  %v3682_v23 = vsel %vm3633_vm5, %v3679_v27, %v3681_v60  ;;  %v2723_v59 = vld [vmem:[%s9369_s26 + $0x40] sm:$0xff]  ;;  %v2724_v27 = vld [vmem:[%s9369_s26 + $0x48] sm:$0xff] }
 0x1a9   : > { %v2783_v48 = vadd.f32 %v2719_v17, %v2476_v7  ;;  %3568 = vst [vmem:[%s9369_s26 + $0x8] sm:$0xff] %v3504_v53  ;;  %v3509_v26 = vadd.f32 %v7942_v36, %v2785_v28  ;;  %8108 = vmatprep.mubr.msk.bf16.mxu0 %vm460_vm1, %v3678_v15  ;;  %v2726_v28 = vld [vmem:[%s9369_s26 + $0x58] sm:$0xff]  ;;  %v3685_v7 = vrot.slane %v8388_v35, 2  ;;  %v6276_v17 = vld [vmem:[%s9631_s12 + $0x1e8] sm:$0xff] }
 0x1aa   : > { %v7877_v46 = vpop.f32.mrf.mxu1  ;;  %v3200_v55 = vpop.f32.mrf.mxu0  ;;  %6571 = vperm.xlu0 %8323, %v6273_v0  }
 0x1ab   : > { %v2786_v13 = vadd.f32 %v7877_v46, %v2722_v58  ;;  %3573 = vst [vmem:[%s9369_s26 + $0x30] sm:$0xff] %v3509_v26  ;;  %v3507_v29 = vadd.f32 %v3200_v55, %v2783_v48  ;;  %v6277_v26 = vld [vmem:[%s9631_s12 + $0x1f0] sm:$0xff] }
 0x1ac   : > { %v2479_v24 = vpop.f32.mrf.mxu1  ;;  %v7943_v5 = vpop.f32.mrf.mxu0  ;;  %6576 = vperm.xlu1 %8324, %v6274_v43   ;;  %v2730_v43 = vld [vmem:[%s9369_s26 + $0x78] sm:$0xff] }
 0x1ad   : > { %v2784_v16 = vadd.f32 %v2720_v9, %v2479_v24  ;;  %3571 = vst [vmem:[%s9369_s26 + $0x20] sm:$0xff] %v3507_v29  ;;  %v3510_v52 = vadd.f32 %v7943_v5, %v2786_v13  ;;  %v2729_v13 = vld [vmem:[%s9369_s26 + $0x70] sm:$0xff]  ;;  %v6278_v24 = vld [vmem:[%s9631_s12 + $0x1f8] sm:$0xff] }
 0x1ae   : > { %v7880_v50 = vpop.f32.mrf.mxu1  ;;  %8043 = vmatmul.mubr.msk.bf16.gmra.mxu1 %vm460_vm1, %v3678_v15  ;;  %v3203_v63 = vpop.f32.mrf.mxu0  ;;  %v3683_v15 = vrot.slane %v8387_v11, 2  ;;  %6581 = vperm.xlu0 %8323, %v6275_v34  }
 0x1af   : > { %v2789_v33 = vadd.f32 %v7880_v50, %v2725_v20  ;;  %3574 = vst [vmem:[%s9369_s26 + $0x38] sm:$0xff] %v3510_v52  ;;  %v3508_v1 = vadd.f32 %v3203_v63, %v2784_v16  ;;  %8046 = vmatprep.mubr.msk.bf16.mxu1 %vm460_vm1, %v3680_v51  ;;  %v8389_v20 = vld [vmem:[%s8622_s16 + $0xe0] sm:$0xff]  }
 0x1b0   : > { %v2492_v10 = vpop.f32.mrf.mxu1  ;;  %v7946_v25 = vpop.f32.mrf.mxu0  ;;  %8109 = vmatmul.mubr.msk.bf16.gmra.mxu0 %vm460_vm1, %v3680_v51  ;;  %6586 = vperm.xlu1 %8324, %v6276_v17   ;;  %v3684_v38 = vsel %vm3633_vm5, %v3681_v60, %v3683_v15  ;;  %v3686_v0 = vsel %vm3633_vm5, %v3683_v15, %v3685_v7  ;;  %v2727_v60 = vld [vmem:[%s9369_s26 + $0x60] sm:$0xff]  ;;  %v3687_v63 = vrot.slane %v8389_v20, 2 }
 0x1b1   : > { %v2787_v54 = vadd.f32 %v2723_v59, %v2492_v10  ;;  %3572 = vst [vmem:[%s9369_s26 + $0x28] sm:$0xff] %v3508_v1  ;;  %v3513_v31 = vadd.f32 %v7946_v25, %v2789_v33  ;;  %8112 = vmatprep.mubr.msk.bf16.mxu0 %vm460_vm1, %v3682_v23  ;;  %v8390_v1 = vld [vmem:[%s8622_s16 + $0xe8] sm:$0xff]  }
 0x1b2   : > { %v7881_v22 = vpop.f32.mrf.mxu1  ;;  %v3216_v53 = vpop.f32.mrf.mxu0  ;;  %6591 = vperm.xlu0 %8323, %v6277_v26   ;;  %v3689_v34 = vrot.slane %v8390_v1, 2  ;;  %v8393_v1 = vld [vmem:[%s8797_s10 + $0x8] sm:$0xf] }
 0x1b3   : > { %v2790_v36 = vadd.f32 %v7881_v22, %v2726_v28  ;;  %3577 = vst [vmem:[%s9369_s26 + $0x50] sm:$0xff] %v3513_v31  ;;  %v3511_v48 = vadd.f32 %v3216_v53, %v2787_v54  ;;  %v2728_v54 = vld [vmem:[%s9369_s26 + $0x68] sm:$0xff]  ;;  %v3688_v22 = vsel %vm3633_vm5, %v3685_v7, %v3687_v63  ;;  %v2733_v53 = vld [vmem:[%s9369_s26 + $0x90] sm:$0xff] }
 0x1b4   : > { %v2495_v56 = vpop.f32.mrf.mxu1  ;;  %v7947_v46 = vpop.f32.mrf.mxu0  ;;  %6596 = vperm.xlu1 %8324, %v6278_v24   ;;  %v3690_v17 = vsel %vm3633_vm5, %v3687_v63, %v3689_v34 }
 0x1b5   : > { %v2788_v58 = vadd.f32 %v2724_v27, %v2495_v56  ;;  %3575 = vst [vmem:[%s9369_s26 + $0x40] sm:$0xff] %v3511_v48  ;;  %v3514_v55 = vadd.f32 %v7947_v46, %v2790_v36  ;;  %v2731_v56 = vld [vmem:[%s9369_s26 + $0x80] sm:$0xff] }
 0x1b6   : > { %v7884_v21 = vpop.f32.mrf.mxu1  ;;  %8047 = vmatmul.mubr.msk.bf16.gmra.mxu1 %vm460_vm1, %v3682_v23  ;;  %v3219_v29 = vpop.f32.mrf.mxu0 }
 0x1b7   : > { %v2793_v9 = vadd.f32 %v7884_v21, %v2729_v13  ;;  %3578 = vst [vmem:[%s9369_s26 + $0x58] sm:$0xff] %v3514_v55  ;;  %v3512_v5 = vadd.f32 %v3219_v29, %v2788_v58  ;;  %8050 = vmatprep.mubr.msk.bf16.mxu1 %vm460_vm1, %v3684_v38  ;;  %v8391_v58 = vld [vmem:[%s8622_s16 + $0xf0] sm:$0xff]   ;;  %v2734_v21 = vld [vmem:[%s9369_s26 + $0x98] sm:$0xff] }
 0x1b8   : > { %v2508_v16 = vpop.f32.mrf.mxu1  ;;  %v7950_v52 = vpop.f32.mrf.mxu0  ;;  %8113 = vmatmul.mubr.msk.bf16.gmra.mxu0 %vm460_vm1, %v3684_v38  ;;  %v3691_v55 = vrot.slane %v8391_v58, 2  ;;  %v8392_v29 = vld [vmem:[%s8622_s16 + $0xf8] sm:$0xff]   ;;  %v11129_v58 = vld [vmem:[#allocation8_spill] sm:$0xff] }
 0x1b9   : > { %v2791_v51 = vadd.f32 %v2727_v60, %v2508_v16  ;;  %3576 = vst [vmem:[%s9369_s26 + $0x48] sm:$0xff] %v3512_v5  ;;  %v3517_v50 = vadd.f32 %v7950_v52, %v2793_v9  ;;  %8116 = vmatprep.mubr.msk.bf16.mxu0 %vm460_vm1, %v3686_v0  ;;  %v420_v5 = vld [vmem:[%s8797_s10 + $0xc] sm:$0xf] }
 0x1ba   : > { %v7885_v23 = vpop.f32.mrf.mxu1  ;;  %v3232_v33 = vpop.f32.mrf.mxu0  ;;  %v2732_v60 = vld [vmem:[%s9369_s26 + $0x88] sm:$0xff]  ;;  %v3692_v20 = vsel %vm3633_vm5, %v3689_v34, %v3691_v55  ;;  %v2735_v34 = vld [vmem:[%s9369_s26 + $0xa0] sm:$0xff] }
 0x1bb   : > { %v2794_v10 = vadd.f32 %v7885_v23, %v2730_v43  ;;  %3581 = vst [vmem:[%s9369_s26 + $0x70] sm:$0xff] %v3517_v50  ;;  %v3515_v59 = vadd.f32 %v3232_v33, %v2791_v51  ;;  %v2737_v23 = vld [vmem:[%s9369_s26 + $0xb0] sm:$0xff] }
 0x1bc   : > { %v2511_v25 = vpop.f32.mrf.mxu1  ;;  %v7951_v31 = vpop.f32.mrf.mxu0 }
 0x1bd   : > { %v2792_v11 = vadd.f32 %v2728_v54, %v2511_v25  ;;  %3579 = vst [vmem:[%s9369_s26 + $0x60] sm:$0xff] %v3515_v59  ;;  %v3518_v15 = vadd.f32 %v7951_v31, %v2794_v10  ;;  %v10033_v10 = vcombine.low %v8393_v1, %v420_v5 }
 0x1be   : > { %v7888_v28 = vpop.f32.mrf.mxu1  ;;  %8051 = vmatmul.mubr.msk.bf16.gmra.mxu1 %vm460_vm1, %v3686_v0  ;;  %v3235_v35 = vpop.f32.mrf.mxu0  ;;  %v3693_v0 = vrot.slane %v8392_v29, 2 }
 0x1bf   : > { %v2797_v36 = vadd.f32 %v7888_v28, %v2733_v53  ;;  %3582 = vst [vmem:[%s9369_s26 + $0x78] sm:$0xff] %v3518_v15  ;;  %v3516_v48 = vadd.f32 %v3235_v35, %v2792_v11  ;;  %8054 = vmatprep.mubr.msk.bf16.mxu1 %vm460_vm1, %v3688_v22  ;;  %v2738_v53 = vld [vmem:[%s9369_s26 + $0xb8] sm:$0xff] }
 0x1c0   : > { %v2524_v26 = vpop.f32.mrf.mxu1  ;;  %v7954_v27 = vpop.f32.mrf.mxu0  ;;  %8117 = vmatmul.mubr.msk.bf16.gmra.mxu0 %vm460_vm1, %v3688_v22  ;;  %v3694_v33 = vsel %vm3633_vm5, %v3691_v55, %v3693_v0  ;;  %v3695_v22 = vrot.slane %v9658_v40, 2  ;;  %v4783_v55 = vrot.slane %v11129_v58, 3  ;;  %v11132_v58 = vld [vmem:[#allocation16_spill] sm:$0xff] }
 0x1c1   : > { %v2795_v7 = vadd.f32 %v2731_v56, %v2524_v26  ;;  %3580 = vst [vmem:[%s9369_s26 + $0x68] sm:$0xff] %v3516_v48  ;;  %v3521_v46 = vadd.f32 %v7954_v27, %v2797_v36  ;;  %8120 = vmatprep.mubr.msk.bf16.mxu0 %vm460_vm1, %v3690_v17  ;;  %v2736_v56 = vld [vmem:[%s9369_s26 + $0xa8] sm:$0xff] }
 0x1c2   : > { %v7889_v38 = vpop.f32.mrf.mxu1  ;;  %v3248_v13 = vpop.f32.mrf.mxu0  ;;  %v3696_v5 = vsel %vm3633_vm5, %v3693_v0, %v3695_v22  ;;  %v2739_v0 = vld [vmem:[%s9369_s26 + $0xc0] sm:$0xff] }
 0x1c3   : > { %v2798_v24 = vadd.f32 %v7889_v38, %v2734_v21  ;;  %3585 = vst [vmem:[%s9369_s26 + $0x90] sm:$0xff] %v3521_v46  ;;  %v3519_v9 = vadd.f32 %v3248_v13, %v2795_v7  ;;  %v11128_v7 = vld [vmem:[#allocation9_spill] sm:$0xff]  ;;  %v11130_v38 = vld [vmem:[#allocation12_spill] sm:$0xff]  ;;  %v11131_v13 = vld [vmem:[#allocation10_spill] sm:$0xff] }
 0x1c4   : > { %v2527_v16 = vpop.f32.mrf.mxu1  ;;  %v7955_v52 = vpop.f32.mrf.mxu0  ;;  %v4782_v46 = vrot.slane %v11128_v7, 2  ;;  %v4785_v21 = vrot.slane %v11130_v38, 2  ;;  %v4786_v29 = vrot.slane %v11131_v13, 3  ;;  %v11133_v38 = vld [vmem:[#allocation14_spill] sm:$0xff] }
 0x1c5   : > { %v2796_v51 = vadd.f32 %v2732_v60, %v2527_v16  ;;  %3583 = vst [vmem:[%s9369_s26 + $0x80] sm:$0xff] %v3519_v9  ;;  %v3522_v50 = vadd.f32 %v7955_v52, %v2798_v24  ;;  %v8361_v16 = vld [vmem:[%s8797_s10 + $0x10] ss:$0 sps:$4 sm:$0xff]  }
 0x1c6   : > { %v7892_v63 = vpop.f32.mrf.mxu1  ;;  %8055 = vmatmul.mubr.msk.bf16.gmra.mxu1 %vm460_vm1, %v3690_v17  ;;  %v3251_v43 = vpop.f32.mrf.mxu0  ;;  %v4285_v17 = vrot.slane %v10033_v10, 2  ;;  %v2741_v52 = vld [vmem:[%s9369_s26 + $0xd0] sm:$0xff] }
 0x1c7   : > { %v2801_v59 = vadd.f32 %v7892_v63, %v2737_v23  ;;  %3586 = vst [vmem:[%s9369_s26 + $0x98] sm:$0xff] %v3522_v50  ;;  %v3520_v25 = vadd.f32 %v3251_v43, %v2796_v51  ;;  %8058 = vmatprep.mubr.msk.bf16.mxu1 %vm460_vm1, %v3692_v20  ;;  %v3697_v23 = vrot.slane %v9687_v57, 2  ;;  %v2742_v57 = vld [vmem:[%s9369_s26 + $0xd8] sm:$0xff] }
 0x1c8   : > { %v2540_v54 = vpop.f32.mrf.mxu1  ;;  %v7958_v31 = vpop.f32.mrf.mxu0  ;;  %8121 = vmatmul.mubr.msk.bf16.gmra.mxu0 %vm460_vm1, %v3692_v20  ;;  %v4286_v50 = vsel %vm3633_vm5, %v3695_v22, %v4285_v17 }
 0x1c9   : > { %v2799_v11 = vadd.f32 %v2735_v34, %v2540_v54  ;;  %3584 = vst [vmem:[%s9369_s26 + $0x88] sm:$0xff] %v3520_v25  ;;  %v3525_v15 = vadd.f32 %v7958_v31, %v2801_v59  ;;  %8124 = vmatprep.mubr.msk.bf16.mxu0 %vm460_vm1, %v3694_v33  ;;  %v4784_v59 = vor.u32 %v4783_v55, %v4782_v46  ;;  %v4287_v34 = vrot.slane %v8361_v16, 2 }
 0x1ca   : > { %v7893_v28 = vpop.f32.mrf.mxu1  ;;  %v3264_v35 = vpop.f32.mrf.mxu0  ;;  %v4793_v55 = vrot.slane %v11132_v58, 2 }
 0x1cb   : > { %v2802_v36 = vadd.f32 %v7893_v28, %v2738_v53  ;;  %3589 = vst [vmem:[%s9369_s26 + $0xb0] sm:$0xff] %v3525_v15  ;;  %v3523_v48 = vadd.f32 %v3264_v35, %v2799_v11  ;;  %v8394_v15 = vld [vmem:[%s8622_s16 + $0x10] sm:$0xff]   ;;  %v8395_v53 = vld [vmem:[%s8622_s16 + $0x18] sm:$0xff]  }
 0x1cc   : > { %v2543_v26 = vpop.f32.mrf.mxu1  ;;  %v7959_v27 = vpop.f32.mrf.mxu0  ;;  %v5506_v28 = vrot.slane %v8394_v15, 3  ;;  %v5507_v35 = vrot.slane %v8395_v53, 3  ;;  %v11134_v15 = vld [vmem:[#allocation17_spill] sm:$0xff]  ;;  %v11135_v53 = vld [vmem:[#allocation15_spill] sm:$0xff] }
 0x1cd   : > { %v2800_v24 = vadd.f32 %v2736_v56, %v2543_v26  ;;  %3587 = vst [vmem:[%s9369_s26 + $0xa0] sm:$0xff] %v3523_v48  ;;  %v3526_v9 = vadd.f32 %v7959_v27, %v2802_v36  ;;  %v3698_v26 = vsel %vm3633_vm5, %v3695_v22, %v3697_v23  ;;  %v2740_v27 = vld [vmem:[%s9369_s26 + $0xc8] sm:$0xff]  ;;  %v2745_v22 = vld [vmem:[%s9369_s26 + $0xf0] sm:$0xff] }
 0x1ce   : > { %v7896_v60 = vpop.f32.mrf.mxu1  ;;  %8059 = vmatmul.mubr.msk.bf16.gmra.mxu1 %vm460_vm1, %v3694_v33  ;;  %v3267_v51 = vpop.f32.mrf.mxu0  ;;  %v4787_v33 = vor.u32 %v4786_v29, %v4785_v21  ;;  %v4794_v21 = vrot.slane %v11133_v38, 3  ;;  %v5508_v16 = vsel %vm5505_vm7, %v5506_v28, %v5507_v35  ;;  %v4797_v28 = vrot.slane %v11134_v15, 2 }
 0x1cf   : > { %v2805_v20 = vadd.f32 %v7896_v60, %v2741_v52  ;;  %3590 = vst [vmem:[%s9369_s26 + $0xb8] sm:$0xff] %v3526_v9  ;;  %v3524_v63 = vadd.f32 %v3267_v51, %v2800_v24  ;;  %8062 = vmatprep.mubr.msk.bf16.mxu1 %vm460_vm1, %v3696_v5  ;;  %v4288_v24 = vsel %vm3633_vm5, %v4285_v17, %v4287_v34  ;;  %v8397_v34 = vld [vmem:[%s8622_s16 + $0x28] sm:$0xff]  }
 0x1d0   : > { %v2556_v43 = vpop.f32.mrf.mxu1  ;;  %v7962_v1 = vpop.f32.mrf.mxu0  ;;  %8125 = vmatmul.mubr.msk.bf16.gmra.mxu0 %vm460_vm1, %v3696_v5  ;;  %v4788_v46 = vsel %vm4781_vm6, %v4784_v59, %v4787_v33  ;;  %v4795_v17 = vor.u32 %v4794_v21, %v4793_v55  ;;  %v2746_v59 = vld [vmem:[%s9369_s26 + $0xf8] sm:$0xff] }
 0x1d1   : > { %v2803_v25 = vadd.f32 %v2739_v0, %v2556_v43  ;;  %3588 = vst [vmem:[%s9369_s26 + $0xa8] sm:$0xff] %v3524_v63  ;;  %v3529_v54 = vadd.f32 %v7962_v1, %v2805_v20  ;;  %8128 = vmatprep.mubr.msk.bf16.mxu0 %vm460_vm1, %v4286_v50  ;;  %v2743_v50 = vld [vmem:[%s9369_s26 + $0xe0] sm:$0xff] }
 0x1d2   : > { %v7897_v31 = vpop.f32.mrf.mxu1  ;;  %v3280_v11 = vpop.f32.mrf.mxu0  ;;  %v8396_v43 = vld [vmem:[%s8622_s16 + $0x20] sm:$0xff]  }
 0x1d3   : > { %v2806_v36 = vadd.f32 %v7897_v31, %v2742_v57  ;;  %3593 = vst [vmem:[%s9369_s26 + $0xd0] sm:$0xff] %v3529_v54  ;;  %v3527_v48 = vadd.f32 %v3280_v11, %v2803_v25  ;;  %v5509_v0 = vrot.slane %v8396_v43, 3  ;;  %v4792_v54 = vsel %vm4781_vm6, %v4787_v33, %v9771_v39  ;;  %v11137_v33 = vld [vmem:[#allocation18_spill] sm:$0xff] }
 0x1d4   : > { %v2559_v56 = vpop.f32.mrf.mxu1  ;;  %v7963_v7 = vpop.f32.mrf.mxu0  ;;  %v5511_v31 = vrot.slane %v8397_v34, 3  ;;  %v4802_v58 = vrot.slane %v11137_v33, 3  ;;  %v2750_v43 = vld [vmem:[%s9369_s26 + $0x118] sm:$0xff] }
 0x1d5   : > { %v2804_v13 = vadd.f32 %v2740_v27, %v2559_v56  ;;  %3591 = vst [vmem:[%s9369_s26 + $0xc0] sm:$0xff] %v3527_v48  ;;  %v3530_v29 = vadd.f32 %v7963_v7, %v2806_v36  ;;  %v4798_v36 = vrot.slane %v11135_v53, 3  ;;  %v4796_v27 = vsel %vm4781_vm6, %v9771_v39, %v4795_v17  ;;  %v11136_v7 = vld [vmem:[#allocation20_spill] sm:$0xff]  ;;  %v8399_v34 = vld [vmem:[%s8622_s16 + $0x38] sm:$0xff]  }
 0x1d6   : > { %v7900_v9 = vpop.f32.mrf.mxu1  ;;  %8063 = vmatmul.mubr.msk.bf16.gmra.mxu1 %vm460_vm1, %v3698_v26  ;;  %v3283_v5 = vpop.f32.mrf.mxu0  ;;  %v2744_v26 = vld [vmem:[%s9369_s26 + $0xe8] sm:$0xff]  ;;  %v5510_v21 = vsel %vm5505_vm7, %v5507_v35, %v5509_v0 }
 0x1d7   : > { %v2809_v60 = vadd.f32 %v7900_v9, %v2745_v22  ;;  %3594 = vst [vmem:[%s9369_s26 + $0xd8] sm:$0xff] %v3530_v29  ;;  %v3528_v52 = vadd.f32 %v3283_v5, %v2804_v13  ;;  %8134 = vmatprep.mubr.msk.bf16.mxu1 %vm460_vm1, %v4788_v46  ;;  %v4801_v46 = vrot.slane %v11136_v7, 2  ;;  %v2749_v29 = vld [vmem:[%s9369_s26 + $0x110] sm:$0xff]  ;;  %v5512_v9 = vsel %vm5505_vm7, %v5509_v0, %v5511_v31 }
 0x1d8   : > { %v2572_v51 = vpop.f32.mrf.mxu1  ;;  %v7966_v20 = vpop.f32.mrf.mxu0  ;;  %8129 = vmatmul.mubr.msk.bf16.gmra.mxu0 %vm460_vm1, %v4288_v24  ;;  %v4799_v5 = vor.u32 %v4798_v36, %v4797_v28  ;;  %v2748_v36 = vld [vmem:[%s9369_s26 + $0x108] sm:$0xff]  ;;  %v11141_v7 = vld [vmem:[#allocation22_spill] sm:$0xff] }
 0x1d9   : > { %v2807_v63 = vadd.f32 %v2743_v50, %v2572_v51  ;;  %3592 = vst [vmem:[%s9369_s26 + $0xc8] sm:$0xff] %v3528_v52  ;;  %v3533_v23 = vadd.f32 %v7966_v20, %v2809_v60  ;;  %8200 = vmatprep.mubr.msk.bf16.mxu0 %vm460_vm1, %v5508_v16  ;;  %v2747_v60 = vld [vmem:[%s9369_s26 + $0x100] sm:$0xff]  ;;  %v4803_v52 = vor.u32 %v4802_v58, %v4801_v46  ;;  %v8398_v20 = vld [vmem:[%s8622_s16 + $0x30] sm:$0xff]   ;;  %v4810_v46 = vrot.slane %v11141_v7, 3 }
 0x1da   : > { %v7901_v1 = vpop.f32.mrf.mxu1  ;;  %v3296_v25 = vpop.f32.mrf.mxu0  ;;  %v4800_v28 = vsel %vm4781_vm6, %v4795_v17, %v4799_v5 }
 0x1db   : > { %v2810_v57 = vadd.f32 %v7901_v1, %v2746_v59  ;;  %3597 = vst [vmem:[%s9369_s26 + $0xf0] sm:$0xff] %v3533_v23  ;;  %v3531_v11 = vadd.f32 %v3296_v25, %v2807_v63  ;;  %v5513_v63 = vrot.slane %v8398_v20, 3  ;;  %v11138_v1 = vld [vmem:[#allocation21_spill] sm:$0xff]  ;;  %v11139_v25 = vld [vmem:[#allocation19_spill] sm:$0xff] }
 0x1dc   : > { %v2575_v48 = vpop.f32.mrf.mxu1  ;;  %v7967_v56 = vpop.f32.mrf.mxu0  ;;  %v4805_v59 = vrot.slane %v11138_v1, 2  ;;  %v2754_v20 = vld [vmem:[%s9369_s26 + $0x138] sm:$0xff] }
 0x1dd   : > { %v2808_v55 = vadd.f32 %v2744_v26, %v2575_v48  ;;  %3595 = vst [vmem:[%s9369_s26 + $0xe0] sm:$0xff] %v3531_v11  ;;  %v3534_v38 = vadd.f32 %v7967_v56, %v2810_v57  ;;  %v5515_v57 = vrot.slane %v8399_v34, 3  ;;  %v4804_v26 = vsel %vm4781_vm6, %v4799_v5, %v4803_v52  ;;  %v11140_v56 = vld [vmem:[#allocation24_spill] sm:$0xff]  ;;  %v11143_v34 = vld [vmem:[#allocation23_spill] sm:$0xff] }
 0x1de   : > { %v7904_v13 = vpop.f32.mrf.mxu1  ;;  %8135 = vmatmul.mubr.msk.bf16.vlgmr.msra.gmra.mxu1 %vm460_vm1, %v4792_v54  ;;  %v3299_v24 = vpop.f32.mrf.mxu0  ;;  %v4806_v54 = vrot.slane %v11139_v25, 3  ;;  %v11142_v25 = vld [vmem:[#allocation25_spill] sm:$0xff] }
 0x1df   : > { %v2813_v39 = vadd.f32 %v7904_v13, %v2749_v29  ;;  %3598 = vst [vmem:[%s9369_s26 + $0xf8] sm:$0xff] %v3534_v38  ;;  %v3532_v22 = vadd.f32 %v3299_v24, %v2808_v55  ;;  %8138 = vmatprep.mubr.msk.bf16.mxu1 %vm460_vm1, %v4796_v27  ;;  %v4809_v27 = vrot.slane %v11140_v56, 2  ;;  %v5514_v55 = vsel %vm5505_vm7, %v5511_v31, %v5513_v63  ;;  %v11145_v56 = vld [vmem:[#allocation26_spill] sm:$0xff] }
 0x1e0   : > { %v2588_v16 = vpop.f32.mrf.mxu1  ;;  %v7970_v35 = vpop.f32.mrf.mxu0  ;;  %8201 = vmatmul.mubr.msk.bf16.vlgmr.msra.gmra.mxu0 %vm460_vm1, %v5510_v21  ;;  %v2753_v21 = vld [vmem:[%s9369_s26 + $0x130] sm:$0xff]  ;;  %v4807_v13 = vor.u32 %v4806_v54, %v4805_v59  ;;  %v5516_v29 = vsel %vm5505_vm7, %v5513_v63, %v5515_v57  ;;  %v4813_v54 = vrot.slane %v11142_v25, 2 }
 0x1e1   : > { %v2811_v51 = vadd.f32 %v2747_v60, %v2588_v16  ;;  %3596 = vst [vmem:[%s9369_s26 + $0xe8] sm:$0xff] %v3532_v22  ;;  %v3537_v50 = vadd.f32 %v7970_v35, %v2813_v39  ;;  %8204 = vmatprep.mubr.msk.bf16.mxu0 %vm460_vm1, %v5512_v9  ;;  %v2751_v22 = vld [vmem:[%s9369_s26 + $0x120] sm:$0xff]  ;;  %v4811_v5 = vor.u32 %v4810_v46, %v4809_v27 }
 0x1e2   : > { %v7905_v23 = vpop.f32.mrf.mxu1  ;;  %v3312_v0 = vpop.f32.mrf.mxu0  ;;  %v8400_v35 = vld [vmem:[%s8622_s16 + $0x40] sm:$0xff]  }
 0x1e3   : > { %v2814_v11 = vadd.f32 %v7905_v23, %v2750_v43  ;;  %3601 = vst [vmem:[%s9369_s26 + $0x110] sm:$0xff] %v3537_v50  ;;  %v3535_v15 = vadd.f32 %v3312_v0, %v2811_v51  ;;  %v5517_v51 = vrot.slane %v8400_v35, 3  ;;  %v4808_v23 = vsel %vm4781_vm6, %v4803_v52, %v4807_v13  ;;  %v8401_v43 = vld [vmem:[%s8622_s16 + $0x48] sm:$0xff]   ;;  %v2758_v35 = vld [vmem:[%s9369_s26 + $0x158] sm:$0xff] }
 0x1e4   : > { %v2591_v53 = vpop.f32.mrf.mxu1  ;;  %v7971_v48 = vpop.f32.mrf.mxu0  ;;  %v5519_v0 = vrot.slane %v8401_v43, 3  ;;  %v4818_v52 = vrot.slane %v11145_v56, 3  ;;  %v8403_v43 = vld [vmem:[%s8622_s16 + $0x58] sm:$0xff]  }
 0x1e5   : > { %v2812_v33 = vadd.f32 %v2748_v36, %v2591_v53  ;;  %3599 = vst [vmem:[%s9369_s26 + $0x100] sm:$0xff] %v3535_v15  ;;  %v3538_v58 = vadd.f32 %v7971_v48, %v2814_v11  ;;  %v4814_v11 = vrot.slane %v11143_v34, 3  ;;  %v4812_v36 = vsel %vm4781_vm6, %v4807_v13, %v4811_v5  ;;  %v11144_v48 = vld [vmem:[#allocation29_spill] sm:$0xff] }
 0x1e6   : > { %v7908_v38 = vpop.f32.mrf.mxu1  ;;  %8139 = vmatmul.mubr.msk.bf16.gmra.mxu1 %vm460_vm1, %v4800_v28  ;;  %v3315_v17 = vpop.f32.mrf.mxu0  ;;  %v2752_v28 = vld [vmem:[%s9369_s26 + $0x128] sm:$0xff]  ;;  %v5518_v46 = vsel %vm5505_vm7, %v5515_v57, %v5517_v51 }
 0x1e7   : > { %v2817_v24 = vadd.f32 %v7908_v38, %v2753_v21  ;;  %3602 = vst [vmem:[%s9369_s26 + $0x118] sm:$0xff] %v3538_v58  ;;  %v3536_v9 = vadd.f32 %v3315_v17, %v2812_v33  ;;  %8142 = vmatprep.mubr.msk.bf16.mxu1 %vm460_vm1, %v4804_v26  ;;  %v4817_v26 = vrot.slane %v11144_v48, 2  ;;  %v2757_v58 = vld [vmem:[%s9369_s26 + $0x150] sm:$0xff]  ;;  %v5520_v38 = vsel %vm5505_vm7, %v5517_v51, %v5519_v0  ;;  %v11149_v48 = vld [vmem:[#allocation31_spill] sm:$0xff] }
 0x1e8   : > { %v2604_v39 = vpop.f32.mrf.mxu1  ;;  %v7974_v31 = vpop.f32.mrf.mxu0  ;;  %8205 = vmatmul.mubr.msk.bf16.gmra.mxu0 %vm460_vm1, %v5514_v55  ;;  %v4815_v13 = vor.u32 %v4814_v11, %v4813_v54  ;;  %v2756_v11 = vld [vmem:[%s9369_s26 + $0x148] sm:$0xff] }
 0x1e9   : > { %v2815_v16 = vadd.f32 %v2751_v22, %v2604_v39  ;;  %3600 = vst [vmem:[%s9369_s26 + $0x108] sm:$0xff] %v3536_v9  ;;  %v3541_v60 = vadd.f32 %v7974_v31, %v2817_v24  ;;  %8208 = vmatprep.mubr.msk.bf16.mxu0 %vm460_vm1, %v5516_v29  ;;  %v2755_v24 = vld [vmem:[%s9369_s26 + $0x140] sm:$0xff]  ;;  %v4819_v9 = vor.u32 %v4818_v52, %v4817_v26  ;;  %v8402_v31 = vld [vmem:[%s8622_s16 + $0x50] sm:$0xff]   ;;  %v4826_v26 = vrot.slane %v11149_v48, 3 }
 0x1ea   : > { %v7909_v50 = vpop.f32.mrf.mxu1  ;;  %v3328_v63 = vpop.f32.mrf.mxu0  ;;  %v4816_v54 = vsel %vm4781_vm6, %v4811_v5, %v4815_v13 }
 0x1eb   : > { %v2818_v1 = vadd.f32 %v7909_v50, %v2754_v20  ;;  %3605 = vst [vmem:[%s9369_s26 + $0x130] sm:$0xff] %v3541_v60  ;;  %v3539_v59 = vadd.f32 %v3328_v63, %v2815_v16  ;;  %v5521_v16 = vrot.slane %v8402_v31, 3  ;;  %v11146_v50 = vld [vmem:[#allocation30_spill] sm:$0xff]  ;;  %v11147_v63 = vld [vmem:[#allocation28_spill] sm:$0xff] }
 0x1ec   : > { %v2607_v15 = vpop.f32.mrf.mxu1  ;;  %v7975_v53 = vpop.f32.mrf.mxu0  ;;  %v4821_v20 = vrot.slane %v11146_v50, 2  ;;  %v2762_v31 = vld [vmem:[%s9369_s26 + $0x178] sm:$0xff] }
 0x1ed   : > { %v2816_v27 = vadd.f32 %v2752_v28, %v2607_v15  ;;  %3603 = vst [vmem:[%s9369_s26 + $0x120] sm:$0xff] %v3539_v59  ;;  %v3542_v7 = vadd.f32 %v7975_v53, %v2818_v1  ;;  %v5523_v1 = vrot.slane %v8403_v43, 3  ;;  %v4820_v28 = vsel %vm4781_vm6, %v4815_v13, %v4819_v9  ;;  %v11148_v53 = vld [vmem:[#allocation35_spill] sm:$0xff]  ;;  %v11151_v43 = vld [vmem:[#allocation34_spill] sm:$0xff] }
 0x1ee   : > { %v7912_v33 = vpop.f32.mrf.mxu1  ;;  %8143 = vmatmul.mubr.msk.bf16.gmra.mxu1 %vm460_vm1, %v4808_v23  ;;  %v3331_v55 = vpop.f32.mrf.mxu0  ;;  %v4822_v23 = vrot.slane %v11147_v63, 3  ;;  %v11150_v63 = vld [vmem:[#allocation36_spill] sm:$0xff] }
 0x1ef   : > { %v2821_v21 = vadd.f32 %v7912_v33, %v2757_v58  ;;  %3606 = vst [vmem:[%s9369_s26 + $0x138] sm:$0xff] %v3542_v7  ;;  %v3540_v17 = vadd.f32 %v3331_v55, %v2816_v27  ;;  %8146 = vmatprep.mubr.msk.bf16.mxu1 %vm460_vm1, %v4812_v36  ;;  %v4825_v36 = vrot.slane %v11148_v53, 2  ;;  %v5522_v27 = vsel %vm5505_vm7, %v5519_v0, %v5521_v16  ;;  %v11153_v53 = vld [vmem:[#allocation37_spill] sm:$0xff] }
 0x1f0   : > { %v2620_v29 = vpop.f32.mrf.mxu1  ;;  %v7978_v57 = vpop.f32.mrf.mxu0  ;;  %8209 = vmatmul.mubr.msk.bf16.gmra.mxu0 %vm460_vm1, %v5518_v46  ;;  %v2761_v46 = vld [vmem:[%s9369_s26 + $0x170] sm:$0xff]  ;;  %v4823_v33 = vor.u32 %v4822_v23, %v4821_v20  ;;  %v5524_v58 = vsel %vm5505_vm7, %v5521_v16, %v5523_v1  ;;  %v4829_v23 = vrot.slane %v11150_v63, 2 }
 0x1f1   : > { %v2819_v39 = vadd.f32 %v2755_v24, %v2620_v29  ;;  %3604 = vst [vmem:[%s9369_s26 + $0x128] sm:$0xff] %v3540_v17  ;;  %v3545_v22 = vadd.f32 %v7978_v57, %v2821_v21  ;;  %8212 = vmatprep.mubr.msk.bf16.mxu0 %vm460_vm1, %v5520_v38  ;;  %v2759_v17 = vld [vmem:[%s9369_s26 + $0x160] sm:$0xff]  ;;  %v4827_v13 = vor.u32 %v4826_v26, %v4825_v36 }
 0x1f2   : > { %v7913_v60 = vpop.f32.mrf.mxu1  ;;  %v3344_v51 = vpop.f32.mrf.mxu0  ;;  %v8404_v57 = vld [vmem:[%s8622_s16 + $0x60] sm:$0xff]  }
 0x1f3   : > { %v2822_v59 = vadd.f32 %v7913_v60, %v2758_v35  ;;  %3609 = vst [vmem:[%s9369_s26 + $0x150] sm:$0xff] %v3545_v22  ;;  %v3543_v25 = vadd.f32 %v3344_v51, %v2819_v39  ;;  %v5525_v39 = vrot.slane %v8404_v57, 3  ;;  %v4824_v60 = vsel %vm4781_vm6, %v4819_v9, %v4823_v33  ;;  %v8405_v35 = vld [vmem:[%s8622_s16 + $0x68] sm:$0xff]   ;;  %v2766_v57 = vld [vmem:[%s9369_s26 + $0x198] sm:$0xff] }
 0x1f4   : > { %v2623_v34 = vpop.f32.mrf.mxu1  ;;  %v7979_v15 = vpop.f32.mrf.mxu0  ;;  %v5527_v51 = vrot.slane %v8405_v35, 3  ;;  %v4834_v9 = vrot.slane %v11153_v53, 3  ;;  %v8407_v35 = vld [vmem:[%s8622_s16 + $0x78] sm:$0xff]  }
 0x1f5   : > { %v2820_v56 = vadd.f32 %v2756_v11, %v2623_v34  ;;  %3607 = vst [vmem:[%s9369_s26 + $0x140] sm:$0xff] %v3543_v25  ;;  %v3546_v52 = vadd.f32 %v7979_v15, %v2822_v59  ;;  %v4830_v59 = vrot.slane %v11151_v43, 3  ;;  %v4828_v11 = vsel %vm4781_vm6, %v4823_v33, %v4827_v13  ;;  %v11152_v15 = vld [vmem:[#allocation41_spill] sm:$0xff] }
 0x1f6   : > { %v7916_v7 = vpop.f32.mrf.mxu1  ;;  %8147 = vmatmul.mubr.msk.bf16.gmra.mxu1 %vm460_vm1, %v4816_v54  ;;  %v3347_v5 = vpop.f32.mrf.mxu0  ;;  %v2760_v54 = vld [vmem:[%s9369_s26 + $0x168] sm:$0xff]  ;;  %v5526_v26 = vsel %vm5505_vm7, %v5523_v1, %v5525_v39 }
 0x1f7   : > { %v2825_v55 = vadd.f32 %v7916_v7, %v2761_v46  ;;  %3610 = vst [vmem:[%s9369_s26 + $0x158] sm:$0xff] %v3546_v52  ;;  %v3544_v38 = vadd.f32 %v3347_v5, %v2820_v56  ;;  %8150 = vmatprep.mubr.msk.bf16.mxu1 %vm460_vm1, %v4820_v28  ;;  %v4833_v28 = vrot.slane %v11152_v15, 2  ;;  %v2765_v52 = vld [vmem:[%s9369_s26 + $0x190] sm:$0xff]  ;;  %v5528_v7 = vsel %vm5505_vm7, %v5525_v39, %v5527_v51  ;;  %v11157_v15 = vld [vmem:[#allocation43_spill] sm:$0xff] }
 0x1f8   : > { %v2636_v21 = vpop.f32.mrf.mxu1  ;;  %v7982_v0 = vpop.f32.mrf.mxu0  ;;  %8213 = vmatmul.mubr.msk.bf16.gmra.mxu0 %vm460_vm1, %v5522_v27  ;;  %v4831_v33 = vor.u32 %v4830_v59, %v4829_v23  ;;  %v2764_v59 = vld [vmem:[%s9369_s26 + $0x188] sm:$0xff] }
 0x1f9   : > { %v2823_v29 = vadd.f32 %v2759_v17, %v2636_v21  ;;  %3608 = vst [vmem:[%s9369_s26 + $0x148] sm:$0xff] %v3544_v38  ;;  %v3549_v24 = vadd.f32 %v7982_v0, %v2825_v55  ;;  %8216 = vmatprep.mubr.msk.bf16.mxu0 %vm460_vm1, %v5524_v58  ;;  %v2763_v55 = vld [vmem:[%s9369_s26 + $0x180] sm:$0xff]  ;;  %v4835_v38 = vor.u32 %v4834_v9, %v4833_v28  ;;  %v8406_v0 = vld [vmem:[%s8622_s16 + $0x70] sm:$0xff]   ;;  %v4842_v28 = vrot.slane %v11157_v15, 3 }
 0x1fa   : > { %v7917_v22 = vpop.f32.mrf.mxu1  ;;  %v3360_v16 = vpop.f32.mrf.mxu0  ;;  %v4832_v23 = vsel %vm4781_vm6, %v4827_v13, %v4831_v33 }
 0x1fb   : > { %v2826_v50 = vadd.f32 %v7917_v22, %v2762_v31  ;;  %3613 = vst [vmem:[%s9369_s26 + $0x170] sm:$0xff] %v3549_v24  ;;  %v3547_v20 = vadd.f32 %v3360_v16, %v2823_v29  ;;  %v5529_v29 = vrot.slane %v8406_v0, 3  ;;  %v11154_v22 = vld [vmem:[#allocation42_spill] sm:$0xff]  ;;  %v11155_v16 = vld [vmem:[#allocation40_spill] sm:$0xff] }
 0x1fc   : > { %v2639_v25 = vpop.f32.mrf.mxu1  ;;  %v7983_v34 = vpop.f32.mrf.mxu0  ;;  %v4837_v31 = vrot.slane %v11154_v22, 2  ;;  %v2770_v0 = vld [vmem:[%s9369_s26 + $0x1b8] sm:$0xff] }
 0x1fd   : > { %v2824_v36 = vadd.f32 %v2760_v54, %v2639_v25  ;;  %3611 = vst [vmem:[%s9369_s26 + $0x160] sm:$0xff] %v3547_v20  ;;  %v3550_v48 = vadd.f32 %v7983_v34, %v2826_v50  ;;  %v5531_v50 = vrot.slane %v8407_v35, 3  ;;  %v4836_v54 = vsel %vm4781_vm6, %v4831_v33, %v4835_v38  ;;  %v11156_v34 = vld [vmem:[#allocation47_spill] sm:$0xff]  ;;  %v11159_v35 = vld [vmem:[#allocation46_spill] sm:$0xff] }
 0x1fe   : > { %v7920_v56 = vpop.f32.mrf.mxu1  ;;  %8151 = vmatmul.mubr.msk.bf16.gmra.mxu1 %vm460_vm1, %v4824_v60  ;;  %v3363_v27 = vpop.f32.mrf.mxu0  ;;  %v4838_v60 = vrot.slane %v11155_v16, 3  ;;  %v11158_v16 = vld [vmem:[#allocation48_spill] sm:$0xff] }
 0x1ff   : > { %v2829_v46 = vadd.f32 %v7920_v56, %v2765_v52  ;;  %3614 = vst [vmem:[%s9369_s26 + $0x178] sm:$0xff] %v3550_v48  ;;  %v3548_v5 = vadd.f32 %v3363_v27, %v2824_v36  ;;  %8154 = vmatprep.mubr.msk.bf16.mxu1 %vm460_vm1, %v4828_v11  ;;  %v4841_v11 = vrot.slane %v11156_v34, 2  ;;  %v5530_v36 = vsel %vm5505_vm7, %v5527_v51, %v5529_v29  ;;  %v11161_v34 = vld [vmem:[#allocation49_spill] sm:$0xff] }
 0x200   : > { %v2652_v58 = vpop.f32.mrf.mxu1  ;;  %v7986_v1 = vpop.f32.mrf.mxu0  ;;  %8217 = vmatmul.mubr.msk.bf16.gmra.mxu0 %vm460_vm1, %v5526_v26  ;;  %v2769_v26 = vld [vmem:[%s9369_s26 + $0x1b0] sm:$0xff]  ;;  %v4839_v56 = vor.u32 %v4838_v60, %v4837_v31  ;;  %v5532_v52 = vsel %vm5505_vm7, %v5529_v29, %v5531_v50  ;;  %v4845_v60 = vrot.slane %v11158_v16, 2 }
 0x201   : > { %v2827_v21 = vadd.f32 %v2763_v55, %v2652_v58  ;;  %3612 = vst [vmem:[%s9369_s26 + $0x168] sm:$0xff] %v3548_v5  ;;  %v3553_v17 = vadd.f32 %v7986_v1, %v2829_v46  ;;  %8220 = vmatprep.mubr.msk.bf16.mxu0 %vm460_vm1, %v5528_v7  ;;  %v2767_v5 = vld [vmem:[%s9369_s26 + $0x1a0] sm:$0xff]  ;;  %v4843_v33 = vor.u32 %v4842_v28, %v4841_v11 }
 0x202   : > { %v7921_v24 = vpop.f32.mrf.mxu1  ;;  %v3376_v39 = vpop.f32.mrf.mxu0  ;;  %v8408_v1 = vld [vmem:[%s8622_s16 + $0x80] sm:$0xff]  }
 0x203   : > { %v2830_v20 = vadd.f32 %v7921_v24, %v2766_v57  ;;  %3617 = vst [vmem:[%s9369_s26 + $0x190] sm:$0xff] %v3553_v17  ;;  %v3551_v63 = vadd.f32 %v3376_v39, %v2827_v21  ;;  %v5533_v21 = vrot.slane %v8408_v1, 3  ;;  %v4840_v24 = vsel %vm4781_vm6, %v4835_v38, %v4839_v56  ;;  %v8409_v57 = vld [vmem:[%s8622_s16 + $0x88] sm:$0xff]   ;;  %v2774_v1 = vld [vmem:[%s9369_s26 + $0x1d8] sm:$0xff] }
 0x204   : > { %v2655_v43 = vpop.f32.mrf.mxu1  ;;  %v7987_v25 = vpop.f32.mrf.mxu0  ;;  %v5535_v39 = vrot.slane %v8409_v57, 3  ;;  %v4850_v38 = vrot.slane %v11161_v34, 3  ;;  %v8411_v57 = vld [vmem:[%s8622_s16 + $0x98] sm:$0xff]  }
 0x205   : > { %v2828_v53 = vadd.f32 %v2764_v59, %v2655_v43  ;;  %3615 = vst [vmem:[%s9369_s26 + $0x180] sm:$0xff] %v3551_v63  ;;  %v3554_v9 = vadd.f32 %v7987_v25, %v2830_v20  ;;  %v4846_v20 = vrot.slane %v11159_v35, 3  ;;  %v4844_v59 = vsel %vm4781_vm6, %v4839_v56, %v4843_v33  ;;  %v11160_v25 = vld [vmem:[#allocation53_spill] sm:$0xff] }
 0x206   : > { %v7924_v48 = vpop.f32.mrf.mxu1  ;;  %8155 = vmatmul.mubr.msk.bf16.gmra.mxu1 %vm460_vm1, %v4832_v23  ;;  %v3379_v13 = vpop.f32.mrf.mxu0  ;;  %v2768_v23 = vld [vmem:[%s9369_s26 + $0x1a8] sm:$0xff]  ;;  %v5534_v28 = vsel %vm5505_vm7, %v5531_v50, %v5533_v21 }
 0x207   : > { %v2833_v27 = vadd.f32 %v7924_v48, %v2769_v26  ;;  %3618 = vst [vmem:[%s9369_s26 + $0x198] sm:$0xff] %v3554_v9  ;;  %v3552_v7 = vadd.f32 %v3379_v13, %v2828_v53  ;;  %8158 = vmatprep.mubr.msk.bf16.mxu1 %vm460_vm1, %v4836_v54  ;;  %v4849_v54 = vrot.slane %v11160_v25, 2  ;;  %v2773_v9 = vld [vmem:[%s9369_s26 + $0x1d0] sm:$0xff]  ;;  %v5536_v48 = vsel %vm5505_vm7, %v5533_v21, %v5535_v39  ;;  %v11165_v25 = vld [vmem:[#allocation55_spill] sm:$0xff] }
 0x208   : > { %v2668_v46 = vpop.f32.mrf.mxu1  ;;  %v7990_v51 = vpop.f32.mrf.mxu0  ;;  %8221 = vmatmul.mubr.msk.bf16.gmra.mxu0 %vm460_vm1, %v5530_v36  ;;  %v4847_v56 = vor.u32 %v4846_v20, %v4845_v60  ;;  %v2772_v20 = vld [vmem:[%s9369_s26 + $0x1c8] sm:$0xff] }
 0x209   : > { %v2831_v58 = vadd.f32 %v2767_v5, %v2668_v46  ;;  %3616 = vst [vmem:[%s9369_s26 + $0x188] sm:$0xff] %v3552_v7  ;;  %v3557_v55 = vadd.f32 %v7990_v51, %v2833_v27  ;;  %8224 = vmatprep.mubr.msk.bf16.mxu0 %vm460_vm1, %v5532_v52  ;;  %v2771_v27 = vld [vmem:[%s9369_s26 + $0x1c0] sm:$0xff]  ;;  %v4851_v7 = vor.u32 %v4850_v38, %v4849_v54  ;;  %v8410_v51 = vld [vmem:[%s8622_s16 + $0x90] sm:$0xff]   ;;  %v4858_v54 = vrot.slane %v11165_v25, 3 }
 0x20a   : > { %v7925_v17 = vpop.f32.mrf.mxu1  ;;  %v3392_v29 = vpop.f32.mrf.mxu0  ;;  %v4848_v60 = vsel %vm4781_vm6, %v4843_v33, %v4847_v56 }
 0x20b   : > { %v2834_v22 = vadd.f32 %v7925_v17, %v2770_v0  ;;  %3621 = vst [vmem:[%s9369_s26 + $0x1b0] sm:$0xff] %v3557_v55  ;;  %v3555_v31 = vadd.f32 %v3392_v29, %v2831_v58  ;;  %v5537_v58 = vrot.slane %v8410_v51, 3  ;;  %v11162_v17 = vld [vmem:[#allocation54_spill] sm:$0xff]  ;;  %v11163_v29 = vld [vmem:[#allocation52_spill] sm:$0xff] }
 0x20c   : > { %v2671_v63 = vpop.f32.mrf.mxu1  ;;  %v7991_v43 = vpop.f32.mrf.mxu0  ;;  %v4853_v0 = vrot.slane %v11162_v17, 2  ;;  %v2778_v51 = vld [vmem:[%s9369_s26 + $0x1f8] sm:$0xff] }
 0x20d   : > { %v2832_v11 = vadd.f32 %v2768_v23, %v2671_v63  ;;  %3619 = vst [vmem:[%s9369_s26 + $0x1a0] sm:$0xff] %v3555_v31  ;;  %v3558_v15 = vadd.f32 %v7991_v43, %v2834_v22  ;;  %v5539_v22 = vrot.slane %v8411_v57, 3  ;;  %v4852_v23 = vsel %vm4781_vm6, %v4847_v56, %v4851_v7  ;;  %v11164_v43 = vld [vmem:[#allocation59_spill] sm:$0xff]  ;;  %v11167_v57 = vld [vmem:[#allocation58_spill] sm:$0xff] }
 0x20e   : > { %v7928_v53 = vpop.f32.mrf.mxu1  ;;  %8159 = vmatmul.mubr.msk.bf16.gmra.mxu1 %vm460_vm1, %v4840_v24  ;;  %v3395_v36 = vpop.f32.mrf.mxu0  ;;  %v4854_v24 = vrot.slane %v11163_v29, 3  ;;  %v11166_v29 = vld [vmem:[#allocation60_spill] sm:$0xff] }
 0x20f   : > { %v2837_v26 = vadd.f32 %v7928_v53, %v2773_v9  ;;  %3622 = vst [vmem:[%s9369_s26 + $0x1b8] sm:$0xff] %v3558_v15  ;;  %v3556_v13 = vadd.f32 %v3395_v36, %v2832_v11  ;;  %8162 = vmatprep.mubr.msk.bf16.mxu1 %vm460_vm1, %v4844_v59  ;;  %v4857_v59 = vrot.slane %v11164_v43, 2  ;;  %v5538_v11 = vsel %vm5505_vm7, %v5535_v39, %v5537_v58 }
 0x210   : > { %v2684_v52 = vpop.f32.mrf.mxu1  ;;  %v7994_v50 = vpop.f32.mrf.mxu0  ;;  %8225 = vmatmul.mubr.msk.bf16.gmra.mxu0 %vm460_vm1, %v5534_v28  ;;  %v2777_v28 = vld [vmem:[%s9369_s26 + $0x1f0] sm:$0xff]  ;;  %v4855_v53 = vor.u32 %v4854_v24, %v4853_v0  ;;  %v5540_v9 = vsel %vm5505_vm7, %v5537_v58, %v5539_v22  ;;  %v4861_v24 = vrot.slane %v11166_v29, 2  ;;  %v4873_v29 = vrot.slane %v9213_v6, 2 }
 0x211   : > { %v2835_v46 = vadd.f32 %v2771_v27, %v2684_v52  ;;  %3620 = vst [vmem:[%s9369_s26 + $0x1a8] sm:$0xff] %v3556_v13  ;;  %v3561_v5 = vadd.f32 %v7994_v50, %v2837_v26  ;;  %8228 = vmatprep.mubr.msk.bf16.mxu0 %vm460_vm1, %v5536_v48  ;;  %v2775_v13 = vld [vmem:[%s9369_s26 + $0x1e0] sm:$0xff]  ;;  %v4859_v56 = vor.u32 %v4858_v54, %v4857_v59  ;;  %v4089_v54 = vld [vmem:[%s9369_s26 + $0x10] sm:$0xff] }
 0x212   : > { %v7929_v55 = vpop.f32.mrf.mxu1  ;;  %v3408_v21 = vpop.f32.mrf.mxu0  ;;  %v8412_v50 = vld [vmem:[%s8622_s16 + $0xa0] sm:$0xff]  }
 0x213   : > { %v2838_v31 = vadd.f32 %v7929_v55, %v2774_v1  ;;  %3625 = vst [vmem:[%s9369_s26 + $0x1d0] sm:$0xff] %v3561_v5  ;;  %v3559_v16 = vadd.f32 %v3408_v21, %v2835_v46  ;;  %v5541_v46 = vrot.slane %v8412_v50, 3  ;;  %v4856_v55 = vsel %vm4781_vm6, %v4851_v7, %v4855_v53  ;;  %v8413_v1 = vld [vmem:[%s8622_s16 + $0xa8] sm:$0xff]   ;;  %v8415_v50 = vld [vmem:[%s8622_s16 + $0xb8] sm:$0xff]  }
 0x214   : > { %v2687_v35 = vpop.f32.mrf.mxu1  ;;  %v7995_v63 = vpop.f32.mrf.mxu0  ;;  %v5543_v21 = vrot.slane %v8413_v1, 3  ;;  %v4866_v7 = vrot.slane %v11104_v47, 3  ;;  %v4088_v1 = vld [vmem:[%s9369_s26 + $0x8] sm:$0xff] }
 0x215   : > { %v2836_v34 = vadd.f32 %v2772_v20, %v2687_v35  ;;  %3623 = vst [vmem:[%s9369_s26 + $0x1c0] sm:$0xff] %v3559_v16  ;;  %v3562_v38 = vadd.f32 %v7995_v63, %v2838_v31  ;;  %v4862_v31 = vrot.slane %v11167_v57, 3  ;;  %v4860_v20 = vsel %vm4781_vm6, %v4855_v53, %v4859_v56 }
 0x216   : > { %v7932_v15 = vpop.f32.mrf.mxu1  ;;  %8163 = vmatmul.mubr.msk.bf16.gmra.mxu1 %vm460_vm1, %v4848_v60  ;;  %v3411_v33 = vpop.f32.mrf.mxu0  ;;  %v2776_v60 = vld [vmem:[%s9369_s26 + $0x1e8] sm:$0xff]  ;;  %v4865_v63 = vrot.slane %v9181_v49, 2  ;;  %v5542_v59 = vsel %vm5505_vm7, %v5539_v22, %v5541_v46 }
 0x217   : > { %v2841_v36 = vadd.f32 %v7932_v15, %v2777_v28  ;;  %3626 = vst [vmem:[%s9369_s26 + $0x1d8] sm:$0xff] %v3562_v38  ;;  %v3560_v48 = vadd.f32 %v3411_v33, %v2836_v34  ;;  %8166 = vmatprep.mubr.msk.bf16.mxu1 %vm460_vm1, %v4852_v23  ;;  %v5544_v38 = vsel %vm5505_vm7, %v5541_v46, %v5543_v21  ;;  %v4087_v28 = vld [vmem:[%s9369_s26] sm:$0xff]  ;;  %v5547_v46 = vrot.slane %v8415_v50, 3 }
 0x218   : > { %v2700_v26 = vpop.f32.mrf.mxu1  ;;  %v7998_v39 = vpop.f32.mrf.mxu0  ;;  %8229 = vmatmul.mubr.msk.bf16.gmra.mxu0 %vm460_vm1, %v5538_v11  ;;  %v4863_v47 = vor.u32 %v4862_v31, %v4861_v24  ;;  %v4867_v33 = vor.u32 %v4866_v7, %v4865_v63  ;;  %v4091_v63 = vld [vmem:[%s9369_s26 + $0x20] sm:$0xff] }
 0x219   : > { %v2839_v52 = vadd.f32 %v2775_v13, %v2700_v26  ;;  %3624 = vst [vmem:[%s9369_s26 + $0x1c8] sm:$0xff] %v3560_v48  ;;  %v3565_v27 = vadd.f32 %v7998_v39, %v2841_v36  ;;  %8232 = vmatprep.mubr.msk.bf16.mxu0 %vm460_vm1, %v5540_v9  ;;  %v8414_v36 = vld [vmem:[%s8622_s16 + $0xb0] sm:$0xff]   ;;  %v4090_v13 = vld [vmem:[%s9369_s26 + $0x18] sm:$0xff] }
 0x21a   : > { %v7933_v5 = vpop.f32.mrf.mxu1  ;;  %v3424_v58 = vpop.f32.mrf.mxu0  ;;  %v5545_v48 = vrot.slane %v8414_v36, 3  ;;  %v4092_v36 = vld [vmem:[%s9369_s26 + $0x28] sm:$0xff] }
 0x21b   : > { %v2842_v17 = vadd.f32 %v7933_v5, %v2778_v51  ;;  %3629 = vst [vmem:[%s9369_s26 + $0x1f0] sm:$0xff] %v3565_v27  ;;  %v3563_v0 = vadd.f32 %v3424_v58, %v2839_v52  ;;  %v4869_v52 = vrot.slane %v9185_v41, 2  ;;  %v4870_v27 = vrot.slane %v11106_v12, 3 }
 0x21c   : > { %v2703_v16 = vpop.f32.mrf.mxu1  ;;  %v7999_v35 = vpop.f32.mrf.mxu0  ;;  %v4864_v58 = vsel %vm4781_vm6, %v4859_v56, %v4863_v47  ;;  %v4874_v41 = vrot.slane %v11108_v44, 3  ;;  %v5546_v57 = vsel %vm5505_vm7, %v5543_v21, %v5545_v48 }
 0x21d   : > { %v2840_v23 = vadd.f32 %v2776_v60, %v2703_v16  ;;  %3627 = vst [vmem:[%s9369_s26 + $0x1e0] sm:$0xff] %v3563_v0  ;;  %v3566_v43 = vadd.f32 %v7999_v35, %v2842_v17  ;;  %v4868_v0 = vsel %vm4781_vm6, %v4863_v47, %v4867_v33  ;;  %v4093_v16 = vld [vmem:[%s9369_s26 + $0x30] sm:$0xff]  ;;  %v4871_v60 = vor.u32 %v4870_v27, %v4869_v52 }
 0x21e   : > { %v8004_v25 = vpop.f32.mrf.mxu1  ;;  %8167 = vmatmul.mubr.msk.bf16.gmra.mxu1 %vm460_vm1, %v4856_v55  ;;  %v3427_v34 = vpop.f32.mrf.mxu0  ;;  %v5548_v35 = vsel %vm5505_vm7, %v5545_v48, %v5547_v46  ;;  %v4875_v7 = vor.u32 %v4874_v41, %v4873_v29  ;;  %v8418_v29 = vld [vmem:[%s8622_s16 + $0xd0] sm:$0xff]  }
 0x21f   : > { %3630 = vst [vmem:[%s9369_s26 + $0x1f8] sm:$0xff] %v3566_v43  ;;  %v4153_v11 = vadd.f32 %v8004_v25, %v4089_v54  ;;  %v3564_v49 = vadd.f32 %v3427_v34, %v2840_v23  ;;  %8170 = vmatprep.mubr.msk.bf16.mxu1 %vm460_vm1, %v4860_v20  ;;  %v4094_v34 = vld [vmem:[%s9369_s26 + $0x38] sm:$0xff]  ;;  %v5553_v41 = vrot.slane %v8418_v29, 3 }
 0x220   : > { %v3832_v15 = vpop.f32.mrf.mxu1  ;;  %v8070_v22 = vpop.f32.mrf.mxu0  ;;  %8233 = vmatmul.mubr.msk.bf16.gmra.mxu0 %vm460_vm1, %v5542_v59  ;;  %v8416_v59 = vld [vmem:[%s8622_s16 + $0xc0] sm:$0xff]  }
 0x221   : > { %3628 = vst [vmem:[%s9369_s26 + $0x1e8] sm:$0xff] %v3564_v49  ;;  %v4151_v53 = vadd.f32 %v4087_v28, %v3832_v15  ;;  %v4653_v9 = vadd.f32 %v8070_v22, %v4153_v11  ;;  %8236 = vmatprep.mubr.msk.bf16.mxu0 %vm460_vm1, %v5544_v38  ;;  %v5549_v25 = vrot.slane %v8416_v59, 3  ;;  %v4872_v11 = vsel %vm4781_vm6, %v4867_v33, %v4871_v60  ;;  %v8417_v49 = vld [vmem:[%s8622_s16 + $0xc8] sm:$0xff]  }
 0x222   : > { %v8005_v26 = vpop.f32.mrf.mxu1  ;;  %v4332_v39 = vpop.f32.mrf.mxu0  ;;  %v5551_v47 = vrot.slane %v8417_v49, 3  ;;  %v4877_v22 = vrot.slane %v9217_v4, 2  ;;  %v4882_v33 = vrot.slane %v11112_v42, 3  ;;  %v4097_v4 = vld [vmem:[%s9369_s26 + $0x50] sm:$0xff] }
 0x223   : > { %v4154_v5 = vadd.f32 %v8005_v26, %v4090_v13  ;;  %4717 = vst [vmem:[%s9369_s26 + $0x10] sm:$0xff] %v4653_v9  ;;  %v4651_v51 = vadd.f32 %v4332_v39, %v4151_v53  ;;  %v4878_v53 = vrot.slane %v11110_v45, 3  ;;  %v4876_v26 = vsel %vm4781_vm6, %v4871_v60, %v4875_v7 }
 0x224   : > { %v3835_v55 = vpop.f32.mrf.mxu1  ;;  %v8071_v17 = vpop.f32.mrf.mxu0  ;;  %v4881_v13 = vrot.slane %v9245_v14, 2  ;;  %v5550_v27 = vsel %vm5505_vm7, %v5547_v46, %v5549_v25 }
 0x225   : > { %v4152_v12 = vadd.f32 %v4088_v1, %v3835_v55  ;;  %4715 = vst [vmem:[%s9369_s26] sm:$0xff] %v4651_v51  ;;  %v4654_v24 = vadd.f32 %v8071_v17, %v4154_v5  ;;  %v5552_v5 = vsel %vm5505_vm7, %v5549_v25, %v5551_v47  ;;  %v4879_v42 = vor.u32 %v4878_v53, %v4877_v22  ;;  %v4095_v55 = vld [vmem:[%s9369_s26 + $0x40] sm:$0xff] }
 0x226   : > { %v8008_v31 = vpop.f32.mrf.mxu1  ;;  %8171 = vmatmul.mubr.msk.bf16.gmra.mxu1 %vm460_vm1, %v4864_v58  ;;  %v4335_v56 = vpop.f32.mrf.mxu0  ;;  %v4883_v1 = vor.u32 %v4882_v33, %v4881_v13  ;;  %v5554_v25 = vsel %vm5505_vm7, %v5551_v47, %v5553_v41 }
 0x227   : > { %v4157_v20 = vadd.f32 %v8008_v31, %v4093_v16  ;;  %4718 = vst [vmem:[%s9369_s26 + $0x18] sm:$0xff] %v4654_v24  ;;  %v4652_v6 = vadd.f32 %v4335_v56, %v4152_v12  ;;  %8174 = vmatprep.mubr.msk.bf16.mxu1 %vm460_vm1, %v4868_v0  ;;  %v4098_v24 = vld [vmem:[%s9369_s26 + $0x58] sm:$0xff]  ;;  %v4885_v31 = vrot.slane %v11114_v3, 2  ;;  %v4886_v16 = vrot.slane %v11115_v19, 3 }
 0x228   : > { %v3848_v44 = vpop.f32.mrf.mxu1  ;;  %v8074_v21 = vpop.f32.mrf.mxu0  ;;  %8237 = vmatmul.mubr.msk.bf16.gmra.mxu0 %vm460_vm1, %v5546_v57  ;;  %v8419_v56 = vld [vmem:[%s8622_s16 + $0xd8] sm:$0xff]   ;;  %v4890_v3 = vrot.slane %v11117_v32, 3 }
 0x229   : > { %v4155_v23 = vadd.f32 %v4091_v63, %v3848_v44  ;;  %4716 = vst [vmem:[%s9369_s26 + $0x8] sm:$0xff] %v4652_v6  ;;  %v4657_v43 = vadd.f32 %v8074_v21, %v4157_v20  ;;  %8240 = vmatprep.mubr.msk.bf16.mxu0 %vm460_vm1, %v5548_v35  ;;  %v5555_v60 = vrot.slane %v8419_v56, 3  ;;  %v4880_v6 = vsel %vm4781_vm6, %v4875_v7, %v4879_v42  ;;  %v4096_v63 = vld [vmem:[%s9369_s26 + $0x48] sm:$0xff] }
 0x22a   : > { %v8009_v54 = vpop.f32.mrf.mxu1  ;;  %v4348_v38 = vpop.f32.mrf.mxu0  ;;  %v4909_v56 = vshll.u32 %v10033_v10, 16 }
 0x22b   : > { %v4158_v15 = vadd.f32 %v8009_v54, %v4094_v34  ;;  %4721 = vst [vmem:[%s9369_s26 + $0x30] sm:$0xff] %v4657_v43  ;;  %v4655_v28 = vadd.f32 %v4348_v38, %v4155_v23  ;;  %v4884_v23 = vsel %vm4781_vm6, %v4879_v42, %v4883_v1  ;;  %v4889_v43 = vrot.slane %v9277_v18, 2  ;;  %v4101_v34 = vld [vmem:[%s9369_s26 + $0x70] sm:$0xff] }
 0x22c   : > { %v3851_v9 = vpop.f32.mrf.mxu1  ;;  %v8075_v48 = vpop.f32.mrf.mxu0  ;;  %v4887_v38 = vor.u32 %v4886_v16, %v4885_v31  ;;  %v4906_v16 = vshrl.u32 %v10033_v10, 16 }
 0x22d   : > { %v4156_v39 = vadd.f32 %v4092_v36, %v3851_v9  ;;  %4719 = vst [vmem:[%s9369_s26 + $0x20] sm:$0xff] %v4655_v28  ;;  %v4658_v52 = vadd.f32 %v8075_v48, %v4158_v15  ;;  %v4099_v15 = vld [vmem:[%s9369_s26 + $0x60] sm:$0xff]  ;;  %v4891_v28 = vor.u32 %v4890_v3, %v4889_v43  ;;  %v4902_v43 = vrot.slane %v3037_v37, 3  ;;  %v8423_v3 = vld [vmem:[%s8622_s16 + $0xf8] sm:$0xff]  }
 0x22e   : > { %v8012_v50 = vpop.f32.mrf.mxu1  ;;  %8175 = vmatmul.mubr.msk.bf16.gmra.mxu1 %vm460_vm1, %v4872_v11  ;;  %v4351_v45 = vpop.f32.mrf.mxu0  ;;  %v5556_v11 = vsel %vm5505_vm7, %v5553_v41, %v5555_v60  ;;  %v8420_v9 = vld [vmem:[%s8622_s16 + $0xe0] sm:$0xff]   ;;  %v4888_v33 = vsel %vm4781_vm6, %v4883_v1, %v4887_v38 }
 0x22f   : > { %v4161_v51 = vadd.f32 %v8012_v50, %v4097_v4  ;;  %4722 = vst [vmem:[%s9369_s26 + $0x38] sm:$0xff] %v4658_v52  ;;  %v4656_v14 = vadd.f32 %v4351_v45, %v4156_v39  ;;  %8178 = vmatprep.mubr.msk.bf16.mxu1 %vm460_vm1, %v4876_v26  ;;  %v5557_v36 = vrot.slane %v8420_v9, 3  ;;  %v4102_v26 = vld [vmem:[%s9369_s26 + $0x78] sm:$0xff]  ;;  %v8421_v39 = vld [vmem:[%s8622_s16 + $0xe8] sm:$0xff]   ;;  %v4893_v4 = vrot.slane %v11120_v2, 2  ;;  %v4105_v2 = vld [vmem:[%s9369_s26 + $0x90] sm:$0xff] }
 0x230   : > { %v3864_v58 = vpop.f32.mrf.mxu1  ;;  %v8078_v46 = vpop.f32.mrf.mxu0  ;;  %8241 = vmatmul.mubr.msk.bf16.gmra.mxu0 %vm460_vm1, %v5550_v27  ;;  %v5559_v52 = vrot.slane %v8421_v39, 3  ;;  %v4894_v45 = vrot.slane %v11121_v8, 3  ;;  %v4892_v42 = vsel %vm4781_vm6, %v4887_v38, %v4891_v28  ;;  %v4107_v39 = vld [vmem:[%s9369_s26 + $0xa0] sm:$0xff] }
 0x231   : > { %v4159_v17 = vadd.f32 %v4095_v55, %v3864_v58  ;;  %4720 = vst [vmem:[%s9369_s26 + $0x28] sm:$0xff] %v4656_v14  ;;  %v4661_v0 = vadd.f32 %v8078_v46, %v4161_v51  ;;  %8244 = vmatprep.mubr.msk.bf16.mxu0 %vm460_vm1, %v5552_v5  ;;  %v4100_v51 = vld [vmem:[%s9369_s26 + $0x68] sm:$0xff]  ;;  %v4897_v58 = vrot.slane %v9313_v61, 2  ;;  %v4898_v55 = vrot.slane %v11123_v30, 3 }
 0x232   : > { %v8013_v12 = vpop.f32.mrf.mxu1  ;;  %v4364_v57 = vpop.f32.mrf.mxu0  ;;  %v5560_v29 = vsel %vm5505_vm7, %v5557_v36, %v5559_v52  ;;  %v4895_v30 = vor.u32 %v4894_v45, %v4893_v4  ;;  %v5565_v45 = vrot.slane %v9658_v40, 3 }
 0x233   : > { %v4162_v35 = vadd.f32 %v8013_v12, %v4098_v24  ;;  %4725 = vst [vmem:[%s9369_s26 + $0x50] sm:$0xff] %v4661_v0  ;;  %v4659_v20 = vadd.f32 %v4364_v57, %v4159_v17  ;;  %v5558_v17 = vsel %vm5505_vm7, %v5555_v60, %v5557_v36  ;;  %v4103_v24 = vld [vmem:[%s9369_s26 + $0x80] sm:$0xff]  ;;  %v4899_v31 = vor.u32 %v4898_v55, %v4897_v58 }
 0x234   : > { %v3867_v44 = vpop.f32.mrf.mxu1  ;;  %v8079_v21 = vpop.f32.mrf.mxu0  ;;  %v5567_v58 = vrot.slane %v10033_v10, 3  ;;  %v4113_v10 = vld [vmem:[%s9369_s26 + $0xd0] sm:$0xff] }
 0x235   : > { %v4160_v19 = vadd.f32 %v4096_v63, %v3867_v44  ;;  %4723 = vst [vmem:[%s9369_s26 + $0x40] sm:$0xff] %v4659_v20  ;;  %v4662_v59 = vadd.f32 %v8079_v21, %v4162_v35  ;;  %v8422_v20 = vld [vmem:[%s8622_s16 + $0xf0] sm:$0xff]   ;;  %v4106_v63 = vld [vmem:[%s9369_s26 + $0x98] sm:$0xff]  ;;  %s6887_s16 = sshll.u32 %s9369_s26, 4  ;;  %s10820_s16 = int_to_ptr.vmem [resolvable:$true] %s6887_s16 }
 0x236   : > { %v8016_v54 = vpop.f32.mrf.mxu1  ;;  %8179 = vmatmul.mubr.msk.bf16.gmra.mxu1 %vm460_vm1, %v4880_v6  ;;  %v4367_v7 = vpop.f32.mrf.mxu0  ;;  %v5561_v6 = vrot.slane %v8422_v20, 3  ;;  %s8425_s23 = scalar_lea.vmem %s10820_s16, 8192  ;;  %p8432_p2 = scmp.lt.s32.totalorder %s10820_s16, %s8430_s30 }
 0x237   : > { %v4165_v49 = vadd.f32 %v8016_v54, %v4101_v34  ;;  %4726 = vst [vmem:[%s9369_s26 + $0x58] sm:$0xff] %v4662_v59  ;;  %v4660_v18 = vadd.f32 %v4367_v7, %v4160_v19  ;;  %8182 = vmatprep.mubr.msk.bf16.mxu1 %vm460_vm1, %v4884_v23  ;;  %v4901_v23 = vrot.slane %v3034_v62, 2  ;;  %v5563_v19 = vrot.slane %v8423_v3, 3  ;;  %v4104_v7 = vld [vmem:[%s9369_s26 + $0x88] sm:$0xff]  ;;  %p8426_p13 = scmp.ne.s32.totalorder %s10820_s16, %s8425_s23  ;;  %p8433_p3 = scmp.lt.s32.totalorder %s8431_s6, %s8425_s23 }
 0x238   : > { %v3880_v32 = vpop.f32.mrf.mxu1  ;;  %v8082_v47 = vpop.f32.mrf.mxu0  ;;  %8245 = vmatmul.mubr.msk.bf16.gmra.mxu0 %vm460_vm1, %v5554_v25  ;;  %v4896_v54 = vsel %vm4781_vm6, %v4891_v28, %v4895_v30  ;;  %v4911_v62 = vrot.slane %v4909_v56, 3 }
 0x239   : > { %v4163_v22 = vadd.f32 %v4099_v15, %v3880_v32  ;;  %4724 = vst [vmem:[%s9369_s26 + $0x48] sm:$0xff] %v4660_v18  ;;  %v4665_v53 = vadd.f32 %v8082_v47, %v4165_v49  ;;  %8248 = vmatprep.mubr.msk.bf16.mxu0 %vm460_vm1, %v5556_v11  ;;  %v4900_v11 = vsel %vm4781_vm6, %v4895_v30, %v4899_v31  ;;  %v4908_v49 = vrot.slane %v4906_v16, 2  ;;  %v4109_v47 = vld [vmem:[%s9369_s26 + $0xb0] sm:$0xff]  ;;  %p8427_p0 = pnand %p8426_p13, %p8590_p5  ;;  %p8434_p4 = por %p8433_p3, %p8432_p2 }
 0x23a   : > { %v8017_v48 = vpop.f32.mrf.mxu1  ;;  %v4380_v13 = vpop.f32.mrf.mxu0  ;;  %v5562_v32 = vsel %vm5505_vm7, %v5559_v52, %v5561_v6 }
 0x23b   : > { %v4166_v27 = vadd.f32 %v8017_v48, %v4102_v26  ;;  %4729 = vst [vmem:[%s9369_s26 + $0x70] sm:$0xff] %v4665_v53  ;;  %v4663_v50 = vadd.f32 %v4380_v13, %v4163_v22  ;;  %v4903_v22 = vor.u32 %v4902_v43, %v4901_v23  ;;  %v5564_v53 = vsel %vm5505_vm7, %v5561_v6, %v5563_v19  ;;  %v10392_v48 = vld [vmem:[%s8797_s10 + $0x10] ss:$0 sps:$4 sm:$0xff]   ;;  %p8428_p1 = pneg %p8427_p0 }
 0x23c   : > { %v3883_v5 = vpop.f32.mrf.mxu1  ;;  %v8083_v14 = vpop.f32.mrf.mxu0  ;;  %v4915_v26 = vshrl.u32 %v10392_v48, 16  ;;  %v4918_v13 = vshll.u32 %v10392_v48, 16 }
 0x23d   : > { %v4164_v46 = vadd.f32 %v4100_v51, %v3883_v5  ;;  %4727 = vst [vmem:[%s9369_s26 + $0x60] sm:$0xff] %v4663_v50  ;;  %v4666_v1 = vadd.f32 %v8083_v14, %v4166_v27  ;;  %v4912_v27 = vor.u32 %v4911_v62, %v4908_v49  ;;  %v4110_v51 = vld [vmem:[%s9369_s26 + $0xb8] sm:$0xff]  ;;  %v4117_v49 = vld [vmem:[%s9369_s26 + $0xf0] sm:$0xff]  ;;  %p8435_p7 = pnand %p8434_p4, %p8428_p1 }
 0x23e   : > { %v8020_v0 = vpop.f32.mrf.mxu1  ;;  %8183 = vmatmul.mubr.msk.bf16.gmra.mxu1 %vm460_vm1, %v4888_v33  ;;  %v4383_v8 = vpop.f32.mrf.mxu0 }
 0x23f   : > { %v4169_v41 = vadd.f32 %v8020_v0, %v4105_v2  ;;  %4730 = vst [vmem:[%s9369_s26 + $0x78] sm:$0xff] %v4666_v1  ;;  %v4664_v61 = vadd.f32 %v4383_v8, %v4164_v46  ;;  %8186 = vmatprep.mubr.msk.bf16.mxu1 %vm460_vm1, %v4892_v42  ;;  %v4904_v42 = vsel %vm4781_vm6, %v4899_v31, %v4903_v22  ;;  %v4917_v1 = vrot.slane %v4915_v26, 2  ;;  %v4108_v2 = vld [vmem:[%s9369_s26 + $0xa8] sm:$0xff] }
 0x240   : > { %v3896_v12 = vpop.f32.mrf.mxu1  ;;  %v8086_v57 = vpop.f32.mrf.mxu0  ;;  %8249 = vmatmul.mubr.msk.bf16.gmra.mxu0 %vm460_vm1, %v5558_v17  ;;  %v4920_v17 = vrot.slane %v4918_v13, 3  ;;  %v4913_v40 = vsel %vm4781_vm6, %v4903_v22, %v4912_v27 }
 0x241   : > { %v4167_v60 = vadd.f32 %v4103_v24, %v3896_v12  ;;  %4728 = vst [vmem:[%s9369_s26 + $0x68] sm:$0xff] %v4664_v61  ;;  %v4669_v35 = vadd.f32 %v8086_v57, %v4169_v41  ;;  %8252 = vmatprep.mubr.msk.bf16.mxu0 %vm460_vm1, %v5560_v29  ;;  %v5566_v61 = vsel %vm5505_vm7, %v5563_v19, %v5565_v45 }
 0x242   : > { %v8021_v44 = vpop.f32.mrf.mxu1  ;;  %v4396_v21 = vpop.f32.mrf.mxu0  ;;  %v5568_v24 = vsel %vm5505_vm7, %v5565_v45, %v5567_v58  ;;  %v4921_v16 = vor.u32 %v4920_v17, %v4917_v1  ;;  %v4122_v17 = vld [vmem:[%s9369_s26 + $0x118] sm:$0xff] }
 0x243   : > { %v4170_v59 = vadd.f32 %v8021_v44, %v4106_v63  ;;  %4733 = vst [vmem:[%s9369_s26 + $0x90] sm:$0xff] %v4669_v35  ;;  %v4667_v25 = vadd.f32 %v4396_v21, %v4167_v60  ;;  %v4111_v60 = vld [vmem:[%s9369_s26 + $0xc0] sm:$0xff]  ;;  %v5569_v44 = vrot.slane %v10392_v48, 3  ;;  %v4114_v21 = vld [vmem:[%s9369_s26 + $0xd8] sm:$0xff] }
 0x244   : > { %v3899_v34 = vpop.f32.mrf.mxu1  ;;  %v8087_v38 = vpop.f32.mrf.mxu0  ;;  %v4922_v19 = vsel %vm4781_vm6, %v4912_v27, %v4921_v16 }
 0x245   : > { %v4168_v18 = vadd.f32 %v4104_v7, %v3899_v34  ;;  %4731 = vst [vmem:[%s9369_s26 + $0x80] sm:$0xff] %v4667_v25  ;;  %v4670_v37 = vadd.f32 %v8087_v38, %v4170_v59  ;;  %v4112_v25 = vld [vmem:[%s9369_s26 + $0xc8] sm:$0xff]  ;;  %v5570_v38 = vsel %vm5505_vm7, %v5567_v58, %v5569_v44  ;;  %v4126_v44 = vld [vmem:[%s9369_s26 + $0x138] sm:$0xff] }
 0x246   : > { %v8024_v15 = vpop.f32.mrf.mxu1  ;;  %8187 = vmatmul.mubr.msk.bf16.gmra.mxu1 %vm460_vm1, %v4896_v54  ;;  %v4399_v28 = vpop.f32.mrf.mxu0 }
 0x247   : > { %v4173_v9 = vadd.f32 %v8024_v15, %v4109_v47  ;;  %4734 = vst [vmem:[%s9369_s26 + $0x98] sm:$0xff] %v4670_v37  ;;  %v4668_v36 = vadd.f32 %v4399_v28, %v4168_v18  ;;  %8190 = vmatprep.mubr.msk.bf16.mxu1 %vm460_vm1, %v4900_v11  ;;  %v4115_v15 = vld [vmem:[%s9369_s26 + $0xe0] sm:$0xff] }
 0x248   : > { %v3912_v33 = vpop.f32.mrf.mxu1  ;;  %v8090_v52 = vpop.f32.mrf.mxu0  ;;  %8253 = vmatmul.mubr.msk.bf16.gmra.mxu0 %vm460_vm1, %v5562_v32 }
 0x249   : > { %v4171_v50 = vadd.f32 %v4107_v39, %v3912_v33  ;;  %4732 = vst [vmem:[%s9369_s26 + $0x88] sm:$0xff] %v4668_v36  ;;  %v4673_v4 = vadd.f32 %v8090_v52, %v4173_v9  ;;  %8256 = vmatprep.mubr.msk.bf16.mxu0 %vm460_vm1, %v5564_v53  ;;  %v4118_v9 = vld [vmem:[%s9369_s26 + $0xf8] sm:$0xff]  ;;  %v4116_v33 = vld [vmem:[%s9369_s26 + $0xe8] sm:$0xff] }
 0x24a   : > { %v8025_v5 = vpop.f32.mrf.mxu1  ;;  %v4412_v14 = vpop.f32.mrf.mxu0 }
 0x24b   : > { %v4174_v55 = vadd.f32 %v8025_v5, %v4110_v51  ;;  %4737 = vst [vmem:[%s9369_s26 + $0xb0] sm:$0xff] %v4673_v4  ;;  %v4671_v46 = vadd.f32 %v4412_v14, %v4171_v50  ;;  %v4121_v4 = vld [vmem:[%s9369_s26 + $0x110] sm:$0xff] }
 0x24c   : > { %v3915_v0 = vpop.f32.mrf.mxu1  ;;  %v8091_v8 = vpop.f32.mrf.mxu0 }
 0x24d   : > { %v4172_v29 = vadd.f32 %v4108_v2, %v3915_v0  ;;  %4735 = vst [vmem:[%s9369_s26 + $0xa0] sm:$0xff] %v4671_v46  ;;  %v4674_v41 = vadd.f32 %v8091_v8, %v4174_v55 }
 0x24e   : > { %v8028_v30 = vpop.f32.mrf.mxu1  ;;  %8191 = vmatmul.mubr.msk.bf16.gmra.mxu1 %vm460_vm1, %v4904_v42  ;;  %v4415_v12 = vpop.f32.mrf.mxu0  ;;  %v4119_v42 = vld [vmem:[%s9369_s26 + $0x100] sm:$0xff] }
 0x24f   : > { %v4177_v57 = vadd.f32 %v8028_v30, %v4113_v10  ;;  %4738 = vst [vmem:[%s9369_s26 + $0xb8] sm:$0xff] %v4674_v41  ;;  %v4672_v31 = vadd.f32 %v4415_v12, %v4172_v29  ;;  %8194 = vmatprep.mubr.msk.bf16.mxu1 %vm460_vm1, %v4913_v40  ;;  %v4120_v29 = vld [vmem:[%s9369_s26 + $0x108] sm:$0xff]  ;;  %v4125_v12 = vld [vmem:[%s9369_s26 + $0x130] sm:$0xff] }
 0x250   : > { %v3928_v56 = vpop.f32.mrf.mxu1  ;;  %v8094_v35 = vpop.f32.mrf.mxu0  ;;  %8257 = vmatmul.mubr.msk.bf16.gmra.mxu0 %vm460_vm1, %v5566_v61 }
 0x251   : > { %v4175_v20 = vadd.f32 %v4111_v60, %v3928_v56  ;;  %4736 = vst [vmem:[%s9369_s26 + $0xa8] sm:$0xff] %v4672_v31  ;;  %v4677_v6 = vadd.f32 %v8094_v35, %v4177_v57  ;;  %8260 = vmatprep.mubr.msk.bf16.mxu0 %vm460_vm1, %v5568_v24  ;;  %v4123_v56 = vld [vmem:[%s9369_s26 + $0x120] sm:$0xff] }
 0x252   : > { %v8029_v63 = vpop.f32.mrf.mxu1  ;;  %v4428_v23 = vpop.f32.mrf.mxu0 }
 0x253   : > { %v4178_v43 = vadd.f32 %v8029_v63, %v4114_v21  ;;  %4741 = vst [vmem:[%s9369_s26 + $0xd0] sm:$0xff] %v4677_v6  ;;  %v4675_v3 = vadd.f32 %v4428_v23, %v4175_v20 }
 0x254   : > { %v3931_v59 = vpop.f32.mrf.mxu1  ;;  %v8095_v54 = vpop.f32.mrf.mxu0 }
 0x255   : > { %v4176_v34 = vadd.f32 %v4112_v25, %v3931_v59  ;;  %4739 = vst [vmem:[%s9369_s26 + $0xc0] sm:$0xff] %v4675_v3  ;;  %v4678_v7 = vadd.f32 %v8095_v54, %v4178_v43  ;;  %v4124_v3 = vld [vmem:[%s9369_s26 + $0x128] sm:$0xff]  ;;  %v10450_v59 = vpop.permute.xlu0 %6281 }
 0x256   : > { %v8032_v11 = vpop.f32.mrf.mxu1  ;;  %8195 = vmatmul.mubr.msk.bf16.gmra.mxu1 %vm460_vm1, %v4922_v19  ;;  %v4431_v62 = vpop.f32.mrf.mxu0 }
 0x257   : > { %v4181_v18 = vadd.f32 %v8032_v11, %v4117_v49  ;;  %4742 = vst [vmem:[%s9369_s26 + $0xd8] sm:$0xff] %v4678_v7  ;;  %v4676_v37 = vadd.f32 %v4431_v62, %v4176_v34  ;;  %v4129_v7 = vld [vmem:[%s9369_s26 + $0x150] sm:$0xff]  ;;  %v10454_v11 = vpop.permute.xlu1 %6291 }
 0x258   : > { %v3944_v32 = vpop.f32.mrf.mxu1  ;;  %v8098_v47 = vpop.f32.mrf.mxu0  ;;  %8261 = vmatmul.mubr.msk.bf16.gmra.mxu0 %vm460_vm1, %v5570_v38 }
 0x259   : > { %v4179_v28 = vadd.f32 %v4115_v15, %v3944_v32  ;;  %4740 = vst [vmem:[%s9369_s26 + $0xc8] sm:$0xff] %v4676_v37  ;;  %v4681_v22 = vadd.f32 %v8098_v47, %v4181_v18  ;;  %v4127_v37 = vld [vmem:[%s9369_s26 + $0x140] sm:$0xff] }
 0x25a   : > { %v8033_v53 = vpop.f32.mrf.mxu1  ;;  %v4444_v36 = vpop.f32.mrf.mxu0 }
 0x25b   : > { %v4182_v48 = vadd.f32 %v8033_v53, %v4118_v9  ;;  %4745 = vst [vmem:[%s9369_s26 + $0xf0] sm:$0xff] %v4681_v22  ;;  %v4679_v26 = vadd.f32 %v4444_v36, %v4179_v28  ;;  %v4130_v22 = vld [vmem:[%s9369_s26 + $0x158] sm:$0xff]  ;;  %v10460_v9 = vpop.permute.xlu0 %6286 }
 0x25c   : > { %v3947_v13 = vpop.f32.mrf.mxu1  ;;  %v8099_v39 = vpop.f32.mrf.mxu0 }
 0x25d   : > { %v4180_v52 = vadd.f32 %v4116_v33, %v3947_v13  ;;  %4743 = vst [vmem:[%s9369_s26 + $0xe0] sm:$0xff] %v4679_v26  ;;  %v4682_v27 = vadd.f32 %v8099_v39, %v4182_v48  ;;  %v4128_v13 = vld [vmem:[%s9369_s26 + $0x148] sm:$0xff]  ;;  %v10464_v39 = vpop.permute.xlu1 %6296 }
 0x25e   : > { %v8036_v50 = vpop.f32.mrf.mxu1  ;;  %v4447_v45 = vpop.f32.mrf.mxu0 }
 0x25f   : > { %v4185_v5 = vadd.f32 %v8036_v50, %v4121_v4  ;;  %4746 = vst [vmem:[%s9369_s26 + $0xf8] sm:$0xff] %v4682_v27  ;;  %v4680_v51 = vadd.f32 %v4447_v45, %v4180_v52  ;;  %v4133_v4 = vld [vmem:[%s9369_s26 + $0x170] sm:$0xff] }
 0x260   : > { %v3960_v14 = vpop.f32.mrf.mxu1  ;;  %v8102_v58 = vpop.f32.mrf.mxu0 }
 0x261   : > { %v4183_v55 = vadd.f32 %v4119_v42, %v3960_v14  ;;  %4744 = vst [vmem:[%s9369_s26 + $0xe8] sm:$0xff] %v4680_v51  ;;  %v4685_v46 = vadd.f32 %v8102_v58, %v4185_v5  ;;  %v4131_v42 = vld [vmem:[%s9369_s26 + $0x160] sm:$0xff] }
 0x262   : > { %v8037_v1 = vpop.f32.mrf.mxu1  ;;  %v4460_v0 = vpop.f32.mrf.mxu0 }
 0x263   : > { %v4186_v2 = vadd.f32 %v8037_v1, %v4122_v17  ;;  %4749 = vst [vmem:[%s9369_s26 + $0x110] sm:$0xff] %v4685_v46  ;;  %v4683_v8 = vadd.f32 %v4460_v0, %v4183_v55  ;;  %v10470_v55 = vpop.permute.xlu0 %6301  ;;  %v4134_v0 = vld [vmem:[%s9369_s26 + $0x178] sm:$0xff] }
 0x264   : > { %v3963_v40 = vpop.f32.mrf.mxu1  ;;  %v8103_v41 = vpop.f32.mrf.mxu0 }
 0x265   : > { %v4184_v61 = vadd.f32 %v4120_v29, %v3963_v40  ;;  %4747 = vst [vmem:[%s9369_s26 + $0x100] sm:$0xff] %v4683_v8  ;;  %v4686_v30 = vadd.f32 %v8103_v41, %v4186_v2  ;;  %v10474_v8 = vpop.permute.xlu1 %6306 }
 0x266   : > { %v8040_v10 = vpop.f32.mrf.mxu1  ;;  %v4463_v24 = vpop.f32.mrf.mxu0 }
 0x267   : > { %v4189_v57 = vadd.f32 %v8040_v10, %v4125_v12  ;;  %4750 = vst [vmem:[%s9369_s26 + $0x118] sm:$0xff] %v4686_v30  ;;  %v4684_v31 = vadd.f32 %v4463_v24, %v4184_v61  ;;  %v4132_v61 = vld [vmem:[%s9369_s26 + $0x168] sm:$0xff] }
 0x268   : > { %v3976_v16 = vpop.f32.mrf.mxu1  ;;  %v8106_v60 = vpop.f32.mrf.mxu0 }
 0x269   : > { %v4187_v35 = vadd.f32 %v4123_v56, %v3976_v16  ;;  %4748 = vst [vmem:[%s9369_s26 + $0x108] sm:$0xff] %v4684_v31  ;;  %v4689_v20 = vadd.f32 %v8106_v60, %v4189_v57  ;;  %v4137_v57 = vld [vmem:[%s9369_s26 + $0x190] sm:$0xff]  ;;  %v10480_v16 = vpop.permute.xlu0 %6311 }
 0x26a   : > { %v8041_v6 = vpop.f32.mrf.mxu1  ;;  %v4476_v63 = vpop.f32.mrf.mxu0 }
 0x26b   : > { %v4190_v21 = vadd.f32 %v8041_v6, %v4126_v44  ;;  %4753 = vst [vmem:[%s9369_s26 + $0x130] sm:$0xff] %v4689_v20  ;;  %v4687_v23 = vadd.f32 %v4476_v63, %v4187_v35  ;;  %v4135_v20 = vld [vmem:[%s9369_s26 + $0x180] sm:$0xff]  ;;  %v10484_v44 = vpop.permute.xlu1 %6316 }
 0x26c   : > { %v3979_v43 = vpop.f32.mrf.mxu1  ;;  %v8107_v19 = vpop.f32.mrf.mxu0 }
 0x26d   : > { %v4188_v25 = vadd.f32 %v4124_v3, %v3979_v43  ;;  %4751 = vst [vmem:[%s9369_s26 + $0x120] sm:$0xff] %v4687_v23  ;;  %v4690_v54 = vadd.f32 %v8107_v19, %v4190_v21  ;;  %v4138_v43 = vld [vmem:[%s9369_s26 + $0x198] sm:$0xff] }
 0x26e   : > { %v8044_v34 = vpop.f32.mrf.mxu1  ;;  %v4479_v38 = vpop.f32.mrf.mxu0 }
 0x26f   : > { %v4193_v49 = vadd.f32 %v8044_v34, %v4129_v7  ;;  %4754 = vst [vmem:[%s9369_s26 + $0x138] sm:$0xff] %v4690_v54  ;;  %v4688_v62 = vadd.f32 %v4479_v38, %v4188_v25  ;;  %v4136_v34 = vld [vmem:[%s9369_s26 + $0x188] sm:$0xff]  ;;  %v10490_v38 = vpop.permute.xlu0 %6321 }
 0x270   : > { %v3992_v18 = vpop.f32.mrf.mxu1  ;;  %v8110_v32 = vpop.f32.mrf.mxu0 }
 0x271   : > { %v4191_v15 = vadd.f32 %v4127_v37, %v3992_v18  ;;  %4752 = vst [vmem:[%s9369_s26 + $0x128] sm:$0xff] %v4688_v62  ;;  %v4693_v47 = vadd.f32 %v8110_v32, %v4193_v49  ;;  %v4141_v37 = vld [vmem:[%s9369_s26 + $0x1b0] sm:$0xff] }
 0x272   : > { %v8045_v28 = vpop.f32.mrf.mxu1  ;;  %v4492_v53 = vpop.f32.mrf.mxu0 }
 0x273   : > { %v4194_v36 = vadd.f32 %v8045_v28, %v4130_v22  ;;  %4757 = vst [vmem:[%s9369_s26 + $0x150] sm:$0xff] %v4693_v47  ;;  %v4691_v48 = vadd.f32 %v4492_v53, %v4191_v15  ;;  %v10494_v15 = vpop.permute.xlu1 %6326  ;;  %v4139_v53 = vld [vmem:[%s9369_s26 + $0x1a0] sm:$0xff] }
 0x274   : > { %v3995_v26 = vpop.f32.mrf.mxu1  ;;  %v8111_v33 = vpop.f32.mrf.mxu0 }
 0x275   : > { %v4192_v52 = vadd.f32 %v4128_v13, %v3995_v26  ;;  %4755 = vst [vmem:[%s9369_s26 + $0x140] sm:$0xff] %v4691_v48  ;;  %v4694_v27 = vadd.f32 %v8111_v33, %v4194_v36  ;;  %v4142_v33 = vld [vmem:[%s9369_s26 + $0x1b8] sm:$0xff] }
 0x276   : > { %v8048_v50 = vpop.f32.mrf.mxu1  ;;  %v4495_v45 = vpop.f32.mrf.mxu0 }
 0x277   : > { %v4197_v5 = vadd.f32 %v8048_v50, %v4133_v4  ;;  %4758 = vst [vmem:[%s9369_s26 + $0x158] sm:$0xff] %v4694_v27  ;;  %v4692_v51 = vadd.f32 %v4495_v45, %v4192_v52  ;;  %v10500_v27 = vpop.permute.xlu0 %6331 }
 0x278   : > { %v4008_v14 = vpop.f32.mrf.mxu1  ;;  %v8114_v58 = vpop.f32.mrf.mxu0 }
 0x279   : > { %v4195_v46 = vadd.f32 %v4131_v42, %v4008_v14  ;;  %4756 = vst [vmem:[%s9369_s26 + $0x148] sm:$0xff] %v4692_v51  ;;  %v4697_v1 = vadd.f32 %v8114_v58, %v4197_v5  ;;  %v4140_v5 = vld [vmem:[%s9369_s26 + $0x1a8] sm:$0xff]  ;;  %v10504_v14 = vpop.permute.xlu1 %6336 }
 0x27a   : > { %v8049_v17 = vpop.f32.mrf.mxu1  ;;  %v4508_v2 = vpop.f32.mrf.mxu0 }
 0x27b   : > { %v4198_v40 = vadd.f32 %v8049_v17, %v4134_v0  ;;  %4761 = vst [vmem:[%s9369_s26 + $0x170] sm:$0xff] %v4697_v1  ;;  %v4695_v29 = vadd.f32 %v4508_v2, %v4195_v46  ;;  %v4145_v1 = vld [vmem:[%s9369_s26 + $0x1d0] sm:$0xff] }
 0x27c   : > { %v4011_v41 = vpop.f32.mrf.mxu1  ;;  %v8115_v30 = vpop.f32.mrf.mxu0 }
 0x27d   : > { %v4196_v10 = vadd.f32 %v4132_v61, %v4011_v41  ;;  %4759 = vst [vmem:[%s9369_s26 + $0x160] sm:$0xff] %v4695_v29  ;;  %v4698_v12 = vadd.f32 %v8115_v30, %v4198_v40  ;;  %v4143_v29 = vld [vmem:[%s9369_s26 + $0x1c0] sm:$0xff]  ;;  %v10510_v61 = vpop.permute.xlu0 %6341 }
 0x27e   : > { %v8052_v24 = vpop.f32.mrf.mxu1  ;;  %v4511_v31 = vpop.f32.mrf.mxu0 }
 0x27f   : > { %v4201_v56 = vadd.f32 %v8052_v24, %v4137_v57  ;;  %4762 = vst [vmem:[%s9369_s26 + $0x178] sm:$0xff] %v4698_v12  ;;  %v4696_v60 = vadd.f32 %v4511_v31, %v4196_v10  ;;  %v4146_v24 = vld [vmem:[%s9369_s26 + $0x1d8] sm:$0xff]  ;;  %v10514_v31 = vpop.permute.xlu1 %6346 }
 0x280   : > { %v4024_v35 = vpop.f32.mrf.mxu1  ;;  %v8118_v6 = vpop.f32.mrf.mxu0 }
 0x281   : > { %v4199_v63 = vadd.f32 %v4135_v20, %v4024_v35  ;;  %4760 = vst [vmem:[%s9369_s26 + $0x168] sm:$0xff] %v4696_v60  ;;  %v4701_v21 = vadd.f32 %v8118_v6, %v4201_v56  ;;  %v4144_v20 = vld [vmem:[%s9369_s26 + $0x1c8] sm:$0xff] }
 0x282   : > { %v8053_v23 = vpop.f32.mrf.mxu1  ;;  %v4524_v3 = vpop.f32.mrf.mxu0 }
 0x283   : > { %v4202_v19 = vadd.f32 %v8053_v23, %v4138_v43  ;;  %4765 = vst [vmem:[%s9369_s26 + $0x190] sm:$0xff] %v4701_v21  ;;  %v4699_v25 = vadd.f32 %v4524_v3, %v4199_v63  ;;  %v4149_v43 = vld [vmem:[%s9369_s26 + $0x1f0] sm:$0xff] }
 0x284   : > { %v4027_v54 = vpop.f32.mrf.mxu1  ;;  %v8119_v7 = vpop.f32.mrf.mxu0 }
 0x285   : > { %v4200_v49 = vadd.f32 %v4136_v34, %v4027_v54  ;;  %4763 = vst [vmem:[%s9369_s26 + $0x180] sm:$0xff] %v4699_v25  ;;  %v4702_v62 = vadd.f32 %v8119_v7, %v4202_v19  ;;  %v10520_v19 = vpop.permute.xlu0 %6351  ;;  %v4147_v7 = vld [vmem:[%s9369_s26 + $0x1e0] sm:$0xff] }
 0x286   : > { %v8056_v18 = vpop.f32.mrf.mxu1  ;;  %v4527_v32 = vpop.f32.mrf.mxu0 }
 0x287   : > { %v4205_v47 = vadd.f32 %v8056_v18, %v4141_v37  ;;  %4766 = vst [vmem:[%s9369_s26 + $0x198] sm:$0xff] %v4702_v62  ;;  %v4700_v28 = vadd.f32 %v4527_v32, %v4200_v49  ;;  %v10524_v62 = vpop.permute.xlu1 %6356 }
 0x288   : > { %v4040_v22 = vpop.f32.mrf.mxu1  ;;  %v8122_v36 = vpop.f32.mrf.mxu0 }
 0x289   : > { %v4203_v48 = vadd.f32 %v4139_v53, %v4040_v22  ;;  %4764 = vst [vmem:[%s9369_s26 + $0x188] sm:$0xff] %v4700_v28  ;;  %v4705_v26 = vadd.f32 %v8122_v36, %v4205_v47  ;;  %v4150_v47 = vld [vmem:[%s9369_s26 + $0x1f8] sm:$0xff] }
 0x28a   : > { %v8057_v13 = vpop.f32.mrf.mxu1  ;;  %v4540_v52 = vpop.f32.mrf.mxu0 }
 0x28b   : > { %v4206_v50 = vadd.f32 %v8057_v13, %v4142_v33  ;;  %4769 = vst [vmem:[%s9369_s26 + $0x1b0] sm:$0xff] %v4705_v26  ;;  %v4703_v4 = vadd.f32 %v4540_v52, %v4203_v48  ;;  %v4148_v48 = vld [vmem:[%s9369_s26 + $0x1e8] sm:$0xff]  ;;  %v10530_v13 = vpop.permute.xlu0 %6361 }
 0x28c   : > { %v4043_v45 = vpop.f32.mrf.mxu1  ;;  %v8123_v51 = vpop.f32.mrf.mxu0 }
 0x28d   : > { %v4204_v42 = vadd.f32 %v4140_v5, %v4043_v45  ;;  %4767 = vst [vmem:[%s9369_s26 + $0x1a0] sm:$0xff] %v4703_v4  ;;  %v4706_v58 = vadd.f32 %v8123_v51, %v4206_v50  ;;  %v5313_v4 = vld [vmem:[%s9369_s26 + $0x10] sm:$0xff]  ;;  %v10534_v5 = vpop.permute.xlu1 %6366 }
 0x28e   : > { %v8060_v46 = vpop.f32.mrf.mxu1  ;;  %v4543_v17 = vpop.f32.mrf.mxu0 }
 0x28f   : > { %v4209_v0 = vadd.f32 %v8060_v46, %v4145_v1  ;;  %4770 = vst [vmem:[%s9369_s26 + $0x1b8] sm:$0xff] %v4706_v58  ;;  %v4704_v2 = vadd.f32 %v4543_v17, %v4204_v42  ;;  %v5311_v46 = vld [vmem:[%s9369_s26] sm:$0xff] }
 0x290   : > { %v4056_v40 = vpop.f32.mrf.mxu1  ;;  %v8126_v41 = vpop.f32.mrf.mxu0 }
 0x291   : > { %v4207_v30 = vadd.f32 %v4143_v29, %v4056_v40  ;;  %4768 = vst [vmem:[%s9369_s26 + $0x1a8] sm:$0xff] %v4704_v2  ;;  %v4709_v10 = vadd.f32 %v8126_v41, %v4209_v0  ;;  %v5314_v40 = vld [vmem:[%s9369_s26 + $0x18] sm:$0xff]  ;;  %v10540_v41 = vpop.permute.xlu0 %6371 }
 0x292   : > { %v8061_v12 = vpop.f32.mrf.mxu1  ;;  %v4556_v57 = vpop.f32.mrf.mxu0 }
 0x293   : > { %v4210_v56 = vadd.f32 %v8061_v12, %v4146_v24  ;;  %4773 = vst [vmem:[%s9369_s26 + $0x1d0] sm:$0xff] %v4709_v10  ;;  %v4707_v60 = vadd.f32 %v4556_v57, %v4207_v30  ;;  %v5312_v24 = vld [vmem:[%s9369_s26 + $0x8] sm:$0xff] }
 0x294   : > { %v4059_v35 = vpop.f32.mrf.mxu1  ;;  %v8127_v6 = vpop.f32.mrf.mxu0 }
 0x295   : > { %v4208_v63 = vadd.f32 %v4144_v20, %v4059_v35  ;;  %4771 = vst [vmem:[%s9369_s26 + $0x1c0] sm:$0xff] %v4707_v60  ;;  %v4710_v21 = vadd.f32 %v8127_v6, %v4210_v56  ;;  %v10544_v56 = vpop.permute.xlu1 %6376  ;;  %v5317_v6 = vld [vmem:[%s9369_s26 + $0x30] sm:$0xff] }
 0x296   : > { %v8064_v23 = vpop.f32.mrf.mxu1  ;;  %v4559_v3 = vpop.f32.mrf.mxu0 }
 0x297   : > { %v4213_v25 = vadd.f32 %v8064_v23, %v4149_v43  ;;  %4774 = vst [vmem:[%s9369_s26 + $0x1d8] sm:$0xff] %v4710_v21  ;;  %v4708_v54 = vadd.f32 %v4559_v3, %v4208_v63 }
 0x298   : > { %v4072_v34 = vpop.f32.mrf.mxu1  ;;  %v8130_v49 = vpop.f32.mrf.mxu0 }
 0x299   : > { %v4211_v18 = vadd.f32 %v4147_v7, %v4072_v34  ;;  %4772 = vst [vmem:[%s9369_s26 + $0x1c8] sm:$0xff] %v4708_v54  ;;  %v4713_v37 = vadd.f32 %v8130_v49, %v4213_v25  ;;  %v5315_v25 = vld [vmem:[%s9369_s26 + $0x20] sm:$0xff]  ;;  %v10551_v34 = vpop.permute.xlu0 %6381 }
 0x29a   : > { %v8065_v32 = vpop.f32.mrf.mxu1  ;;  %v4572_v28 = vpop.f32.mrf.mxu0 }
 0x29b   : > { %v4214_v22 = vadd.f32 %v8065_v32, %v4150_v47  ;;  %4777 = vst [vmem:[%s9369_s26 + $0x1f0] sm:$0xff] %v4713_v37  ;;  %v4711_v53 = vadd.f32 %v4572_v28, %v4211_v18  ;;  %v5318_v47 = vld [vmem:[%s9369_s26 + $0x38] sm:$0xff] }
 0x29c   : > { %v4075_v36 = vpop.f32.mrf.mxu1  ;;  %v8131_v26 = vpop.f32.mrf.mxu0 }
 0x29d   : > { %v4212_v33 = vadd.f32 %v4148_v48, %v4075_v36  ;;  %4775 = vst [vmem:[%s9369_s26 + $0x1e0] sm:$0xff] %v4711_v53  ;;  %v4714_v52 = vadd.f32 %v8131_v26, %v4214_v22  ;;  %v10558_v22 = vpop.permute.xlu1 %6386 }
 0x29e   : > { %v8136_v50 = vpop.f32.mrf.mxu1  ;;  %v4575_v45 = vpop.f32.mrf.mxu0 }
 0x29f   : > { %4778 = vst [vmem:[%s9369_s26 + $0x1f8] sm:$0xff] %v4714_v52  ;;  %v5377_v51 = vadd.f32 %v8136_v50, %v5313_v4  ;;  %v4712_v42 = vadd.f32 %v4575_v45, %v4212_v33  ;;  %v5316_v33 = vld [vmem:[%s9369_s26 + $0x28] sm:$0xff] }
 0x2a0   : > { %v5056_v58 = vpop.f32.mrf.mxu1  ;;  %v8202_v1 = vpop.f32.mrf.mxu0 }
 0x2a1   : > { %4776 = vst [vmem:[%s9369_s26 + $0x1e8] sm:$0xff] %v4712_v42  ;;  %v5375_v17 = vadd.f32 %v5311_v46, %v5056_v58  ;;  %v6025_v0 = vadd.f32 %v8202_v1, %v5377_v51  ;;  %v5321_v46 = vld [vmem:[%s9369_s26 + $0x50] sm:$0xff] }
 0x2a2   : > { %v8137_v2 = vpop.f32.mrf.mxu1  ;;  %v5704_v29 = vpop.f32.mrf.mxu0 }
 0x2a3   : > { %v5378_v30 = vadd.f32 %v8137_v2, %v5314_v40  ;;  %6089 = vst [vmem:[%s9369_s26 + $0x10] sm:$0xff] %v6025_v0  ;;  %v6023_v10 = vadd.f32 %v5704_v29, %v5375_v17  ;;  %v6601_v7 = vmul.f32 %v10454_v11, %v6025_v0  ;;  %v10565_v2 = vpop.permute.xlu0 %6391 }
 0x2a4   : > { %v5059_v12 = vpop.f32.mrf.mxu1  ;;  %v8203_v57 = vpop.f32.mrf.mxu0 }
 0x2a5   : > { %v5376_v60 = vadd.f32 %v5312_v24, %v5059_v12  ;;  %6087 = vst [vmem:[%s9369_s26] sm:$0xff] %v6023_v10  ;;  %v6026_v35 = vadd.f32 %v8203_v57, %v5378_v30  ;;  %v6599_v21 = vmul.f32 %v10450_v59, %v6023_v10  ;;  %v5319_v57 = vld [vmem:[%s9369_s26 + $0x40] sm:$0xff] }
 0x2a6   : > { %v8140_v20 = vpop.f32.mrf.mxu1  ;;  %v5707_v63 = vpop.f32.mrf.mxu0 }
 0x2a7   : > { %v5381_v23 = vadd.f32 %v8140_v20, %v5317_v6  ;;  %6090 = vst [vmem:[%s9369_s26 + $0x18] sm:$0xff] %v6026_v35  ;;  %v6024_v43 = vadd.f32 %v5707_v63, %v5376_v60  ;;  %v6602_v32 = vmul.f32 %v10464_v39, %v6026_v35  ;;  %v6732_v53 = vmul.f32 %v6599_v21, %v6023_v10 }
 0x2a8   : > { %v5072_v3 = vpop.f32.mrf.mxu1  ;;  %v8206_v54 = vpop.f32.mrf.mxu0 }
 0x2a9   : > { %v5379_v49 = vadd.f32 %v5315_v25, %v5072_v3  ;;  %6088 = vst [vmem:[%s9369_s26 + $0x8] sm:$0xff] %v6024_v43  ;;  %v6600_v18 = vmul.f32 %v10460_v9, %v6024_v43  ;;  %v6029_v37 = vadd.f32 %v8206_v54, %v5381_v23  ;;  %v6734_v9 = vmul.f32 %v6601_v7, %v6025_v0 }
 0x2aa   : > { %v8141_v59 = vpop.f32.mrf.mxu1  ;;  %v5720_v28 = vpop.f32.mrf.mxu0  ;;  %v6735_v51 = vmul.f32 %v6602_v32, %v6026_v35 }
 0x2ab   : > { %v6663_v36 = vadd.f32 %v6600_v18, %v6599_v21  ;;  %v6733_v48 = vmul.f32 %v6600_v18, %v6024_v43  ;;  %v5382_v26 = vadd.f32 %v8141_v59, %v5318_v47  ;;  %6093 = vst [vmem:[%s9369_s26 + $0x30] sm:$0xff] %v6029_v37  ;;  %v6027_v52 = vadd.f32 %v5720_v28, %v5379_v49  ;;  %v5322_v43 = vld [vmem:[%s9369_s26 + $0x58] sm:$0xff]  ;;  %v5320_v59 = vld [vmem:[%s9369_s26 + $0x48] sm:$0xff] }
 0x2ac   : > { %v5075_v11 = vpop.f32.mrf.mxu1  ;;  %v8207_v50 = vpop.f32.mrf.mxu0  ;;  %v6605_v10 = vmul.f32 %v10480_v16, %v6029_v37 }
 0x2ad   : > { %v6664_v4 = vadd.f32 %v6663_v36, %v6601_v7  ;;  %v6796_v45 = vadd.f32 %v6733_v48, %v6732_v53  ;;  %v5380_v39 = vadd.f32 %v5316_v33, %v5075_v11  ;;  %6091 = vst [vmem:[%s9369_s26 + $0x20] sm:$0xff] %v6027_v52  ;;  %v6603_v42 = vmul.f32 %v10470_v55, %v6027_v52  ;;  %v10570_v55 = vpop.permute.xlu1 %6396  ;;  %v5325_v33 = vld [vmem:[%s9369_s26 + $0x70] sm:$0xff] }
 0x2ae   : > { %v8144_v58 = vpop.f32.mrf.mxu1  ;;  %v6030_v1 = vadd.f32 %v8207_v50, %v5382_v26  ;;  %v5723_v17 = vpop.f32.mrf.mxu0  ;;  %v6738_v18 = vmul.f32 %v6605_v10, %v6029_v37 }
 0x2af   : > { %v6797_v40 = vadd.f32 %v6796_v45, %v6734_v9  ;;  %v6665_v29 = vadd.f32 %v6664_v4, %v6602_v32  ;;  %v5385_v30 = vadd.f32 %v8144_v58, %v5321_v46  ;;  %v6028_v0 = vadd.f32 %v5723_v17, %v5380_v39 }
 0x2b0   : > { %v6736_v12 = vmul.f32 %v6603_v42, %v6027_v52  ;;  %6094 = vst [vmem:[%s9369_s26 + $0x38] sm:$0xff] %v6030_v1  ;;  %v5088_v24 = vpop.f32.mrf.mxu1  ;;  %v8210_v60 = vpop.f32.mrf.mxu0  ;;  %v6606_v21 = vmul.f32 %v10484_v44, %v6030_v1 }
 0x2b1   : > { %v6666_v35 = vadd.f32 %v6665_v29, %v6603_v42  ;;  %v6798_v20 = vadd.f32 %v6797_v40, %v6735_v51  ;;  %v5383_v6 = vadd.f32 %v5319_v57, %v5088_v24  ;;  %6092 = vst [vmem:[%s9369_s26 + $0x28] sm:$0xff] %v6028_v0  ;;  %v6604_v63 = vmul.f32 %v10474_v8, %v6028_v0  ;;  %v10578_v8 = vpop.permute.xlu0 %6401  ;;  %v10583_v37 = vpop.permute.xlu1 %6406  ;;  %v5323_v51 = vld [vmem:[%s9369_s26 + $0x60] sm:$0xff] }
 0x2b2   : > { %v8145_v23 = vpop.f32.mrf.mxu1  ;;  %v6033_v16 = vadd.f32 %v8210_v60, %v5385_v30  ;;  %v5736_v3 = vpop.f32.mrf.mxu0  ;;  %v6739_v50 = vmul.f32 %v6606_v21, %v6030_v1 }
 0x2b3   : > { %v6799_v25 = vadd.f32 %v6798_v20, %v6736_v12  ;;  %v6667_v54 = vadd.f32 %v6666_v35, %v6604_v63  ;;  %v6737_v7 = vmul.f32 %v6604_v63, %v6028_v0  ;;  %v5386_v49 = vadd.f32 %v8145_v23, %v5322_v43  ;;  %v5326_v0 = vld [vmem:[%s9369_s26 + $0x78] sm:$0xff] }
 0x2b4   : > { %6097 = vst [vmem:[%s9369_s26 + $0x50] sm:$0xff] %v6033_v16  ;;  %v5091_v32 = vpop.f32.mrf.mxu1  ;;  %v6031_v47 = vadd.f32 %v5736_v3, %v5383_v6  ;;  %v8211_v28 = vpop.f32.mrf.mxu0  ;;  %v6609_v29 = vmul.f32 %v10500_v27, %v6033_v16 }
 0x2b5   : > { %v6668_v44 = vadd.f32 %v6667_v54, %v6605_v10  ;;  %v6800_v53 = vadd.f32 %v6799_v25, %v6737_v7  ;;  %v5384_v36 = vadd.f32 %v5320_v59, %v5091_v32  ;;  %v6034_v48 = vadd.f32 %v8211_v28, %v5386_v49  ;;  %v10591_v24 = vpop.permute.xlu0 %6411  ;;  %v10596_v23 = vpop.permute.xlu1 %6416 }
 0x2b6   : > { %6095 = vst [vmem:[%s9369_s26 + $0x40] sm:$0xff] %v6031_v47  ;;  %v6607_v26 = vmul.f32 %v10490_v38, %v6031_v47  ;;  %v8148_v11 = vpop.f32.mrf.mxu1  ;;  %v5739_v52 = vpop.f32.mrf.mxu0  ;;  %v6742_v25 = vmul.f32 %v6609_v29, %v6033_v16 }
 0x2b7   : > { %v6801_v9 = vadd.f32 %v6800_v53, %v6738_v18  ;;  %v6669_v4 = vadd.f32 %v6668_v44, %v6606_v21  ;;  %v5389_v45 = vadd.f32 %v8148_v11, %v5325_v33  ;;  %6098 = vst [vmem:[%s9369_s26 + $0x58] sm:$0xff] %v6034_v48  ;;  %v6032_v42 = vadd.f32 %v5739_v52, %v5384_v36  ;;  %v5324_v21 = vld [vmem:[%s9369_s26 + $0x68] sm:$0xff]  ;;  %v5329_v18 = vld [vmem:[%s9369_s26 + $0x90] sm:$0xff] }
 0x2b8   : > { %v5104_v39 = vpop.f32.mrf.mxu1  ;;  %v8214_v58 = vpop.f32.mrf.mxu0  ;;  %v6740_v17 = vmul.f32 %v6607_v26, %v6031_v47  ;;  %v6610_v20 = vmul.f32 %v10504_v14, %v6034_v48 }
 0x2b9   : > { %v6670_v46 = vadd.f32 %v6669_v4, %v6607_v26  ;;  %v6802_v40 = vadd.f32 %v6801_v9, %v6739_v50  ;;  %v5387_v38 = vadd.f32 %v5323_v51, %v5104_v39  ;;  %6096 = vst [vmem:[%s9369_s26 + $0x48] sm:$0xff] %v6032_v42  ;;  %v6608_v1 = vmul.f32 %v10494_v15, %v6032_v42  ;;  %v5327_v26 = vld [vmem:[%s9369_s26 + $0x80] sm:$0xff]  ;;  %v10603_v16 = vpop.permute.xlu0 %6421  ;;  %v5330_v39 = vld [vmem:[%s9369_s26 + $0x98] sm:$0xff] }
 0x2ba   : > { %v8149_v30 = vpop.f32.mrf.mxu1  ;;  %v6037_v10 = vadd.f32 %v8214_v58, %v5389_v45  ;;  %v5752_v12 = vpop.f32.mrf.mxu0  ;;  %v6743_v28 = vmul.f32 %v6610_v20, %v6034_v48 }
 0x2bb   : > { %v6803_v57 = vadd.f32 %v6802_v40, %v6740_v17  ;;  %v5390_v60 = vadd.f32 %v8149_v30, %v5326_v0  ;;  %v6035_v35 = vadd.f32 %v5752_v12, %v5387_v38  ;;  %v6671_v6 = vadd.f32 %v6670_v46, %v6608_v1 }
 0x2bc   : > { %v6741_v63 = vmul.f32 %v6608_v1, %v6032_v42  ;;  %6101 = vst [vmem:[%s9369_s26 + $0x70] sm:$0xff] %v6037_v10  ;;  %v5107_v27 = vpop.f32.mrf.mxu1  ;;  %v8215_v15 = vpop.f32.mrf.mxu0  ;;  %v6613_v50 = vmul.f32 %v10520_v19, %v6037_v10 }
 0x2bd   : > { %v5388_v43 = vadd.f32 %v5324_v21, %v5107_v27  ;;  %6099 = vst [vmem:[%s9369_s26 + $0x60] sm:$0xff] %v6035_v35  ;;  %v6038_v3 = vadd.f32 %v8215_v15, %v5390_v60  ;;  %v6672_v54 = vadd.f32 %v6671_v6, %v6609_v29  ;;  %v6611_v14 = vmul.f32 %v10510_v61, %v6035_v35  ;;  %v10611_v42 = vpop.permute.xlu1 %6426  ;;  %v5328_v29 = vld [vmem:[%s9369_s26 + $0x88] sm:$0xff]  ;;  %v5333_v6 = vld [vmem:[%s9369_s26 + $0xb0] sm:$0xff]  ;;  %v10620_v27 = vpop.permute.xlu0 %6431 }
 0x2be   : > { %v6804_v7 = vadd.f32 %v6803_v57, %v6741_v63  ;;  %v8152_v49 = vpop.f32.mrf.mxu1  ;;  %v5755_v32 = vpop.f32.mrf.mxu0  ;;  %v6746_v12 = vmul.f32 %v6613_v50, %v6037_v10 }
 0x2bf   : > { %v5393_v59 = vadd.f32 %v8152_v49, %v5329_v18  ;;  %6102 = vst [vmem:[%s9369_s26 + $0x78] sm:$0xff] %v6038_v3  ;;  %v6036_v47 = vadd.f32 %v5755_v32, %v5388_v43  ;;  %v6673_v53 = vadd.f32 %v6672_v54, %v6610_v20  ;;  %v6744_v48 = vmul.f32 %v6611_v14, %v6035_v35 }
 0x2c0   : > { %v6805_v44 = vadd.f32 %v6804_v7, %v6742_v25  ;;  %v5120_v36 = vpop.f32.mrf.mxu1  ;;  %v8218_v11 = vpop.f32.mrf.mxu0  ;;  %v6614_v40 = vmul.f32 %v10524_v62, %v6038_v3  ;;  %v5331_v7 = vld [vmem:[%s9369_s26 + $0xa0] sm:$0xff] }
 0x2c1   : > { %v5391_v33 = vadd.f32 %v5327_v26, %v5120_v36  ;;  %6100 = vst [vmem:[%s9369_s26 + $0x68] sm:$0xff] %v6036_v47  ;;  %v6612_v61 = vmul.f32 %v10514_v31, %v6036_v47  ;;  %v10607_v52 = vadd.f32 %v8218_v11, %v5393_v59  ;;  %v6674_v9 = vadd.f32 %v6673_v53, %v6611_v14  ;;  %v10624_v14 = vpop.permute.xlu1 %6436 }
 0x2c2   : > { %v6806_v4 = vadd.f32 %v6805_v44, %v6743_v28  ;;  %v8153_v45 = vpop.f32.mrf.mxu1  ;;  %v5768_v51 = vpop.f32.mrf.mxu0  ;;  %v6747_v15 = vmul.f32 %v6614_v40, %v6038_v3  ;;  %v5334_v44 = vld [vmem:[%s9369_s26 + $0xb8] sm:$0xff] }
 0x2c3   : > { %v6745_v58 = vmul.f32 %v6612_v61, %v6036_v47  ;;  %v5394_v46 = vadd.f32 %v8153_v45, %v5330_v39  ;;  %6105 = vst [vmem:[%s9369_s26 + $0x90] sm:$0xff] %v10607_v52  ;;  %v6039_v31 = vadd.f32 %v5768_v51, %v5391_v33  ;;  %v6675_v19 = vadd.f32 %v6674_v9, %v6612_v61 }
 0x2c4   : > { %v6807_v17 = vadd.f32 %v6806_v4, %v6744_v48  ;;  %v5123_v38 = vpop.f32.mrf.mxu1  ;;  %v8219_v1 = vpop.f32.mrf.mxu0  ;;  %v6617_v32 = vmul.f32 %v10540_v41, %v10607_v52  ;;  %v5332_v41 = vld [vmem:[%s9369_s26 + $0xa8] sm:$0xff] }
 0x2c5   : > { %v5392_v30 = vadd.f32 %v5328_v29, %v5123_v38  ;;  %6103 = vst [vmem:[%s9369_s26 + $0x80] sm:$0xff] %v6039_v31  ;;  %v6042_v0 = vadd.f32 %v8219_v1, %v5394_v46  ;;  %v6676_v57 = vadd.f32 %v6675_v19, %v6613_v50  ;;  %v6615_v35 = vmul.f32 %v10530_v13, %v6039_v31  ;;  %v10637_v48 = vpop.permute.xlu0 %6441 }
 0x2c6   : > { %v6808_v60 = vadd.f32 %v6807_v17, %v6745_v58  ;;  %v8156_v20 = vpop.f32.mrf.mxu1  ;;  %v5771_v63 = vpop.f32.mrf.mxu0  ;;  %v6750_v39 = vmul.f32 %v6617_v32, %v10607_v52 }
 0x2c7   : > { %v5397_v62 = vadd.f32 %v8156_v20, %v5333_v6  ;;  %6106 = vst [vmem:[%s9369_s26 + $0x98] sm:$0xff] %v6042_v0  ;;  %v6040_v21 = vadd.f32 %v5771_v63, %v5392_v30  ;;  %v6677_v25 = vadd.f32 %v6676_v57, %v6614_v40  ;;  %v6748_v59 = vmul.f32 %v6615_v35, %v6039_v31  ;;  %v10643_v40 = vpop.permute.xlu1 %6446  ;;  %v5335_v57 = vld [vmem:[%s9369_s26 + $0xc0] sm:$0xff] }
 0x2c8   : > { %v6809_v43 = vadd.f32 %v6808_v60, %v6746_v12  ;;  %v5136_v54 = vpop.f32.mrf.mxu1  ;;  %v8222_v10 = vpop.f32.mrf.mxu0  ;;  %v6618_v33 = vmul.f32 %v10544_v56, %v6042_v0  ;;  %v5337_v56 = vld [vmem:[%s9369_s26 + $0xd0] sm:$0xff] }
 0x2c9   : > { %v5395_v13 = vadd.f32 %v5331_v7, %v5136_v54  ;;  %6104 = vst [vmem:[%s9369_s26 + $0x88] sm:$0xff] %v6040_v21  ;;  %v6616_v49 = vmul.f32 %v10534_v5, %v6040_v21  ;;  %v10628_v18 = vadd.f32 %v8222_v10, %v5397_v62  ;;  %v6678_v3 = vadd.f32 %v6677_v25, %v6615_v35 }
 0x2ca   : > { %v6810_v47 = vadd.f32 %v6809_v43, %v6747_v15  ;;  %v8157_v28 = vpop.f32.mrf.mxu1  ;;  %v5784_v53 = vpop.f32.mrf.mxu0  ;;  %v6751_v29 = vmul.f32 %v6618_v33, %v6042_v0 }
 0x2cb   : > { %v6749_v36 = vmul.f32 %v6616_v49, %v6040_v21  ;;  %v5398_v26 = vadd.f32 %v8157_v28, %v5334_v44  ;;  %6109 = vst [vmem:[%s9369_s26 + $0xb0] sm:$0xff] %v10628_v18  ;;  %v6043_v11 = vadd.f32 %v5784_v53, %v5395_v13  ;;  %v6679_v61 = vadd.f32 %v6678_v3, %v6616_v49  ;;  %v5338_v21 = vld [vmem:[%s9369_s26 + $0xd8] sm:$0xff]  ;;  %v10654_v43 = vpop.permute.xlu0 %6451  ;;  %v5336_v49 = vld [vmem:[%s9369_s26 + $0xc8] sm:$0xff]  ;;  %v10660_v3 = vpop.permute.xlu1 %6456 }
 0x2cc   : > { %v6811_v5 = vadd.f32 %v6810_v47, %v6748_v59  ;;  %v5139_v50 = vpop.f32.mrf.mxu1  ;;  %v8223_v9 = vpop.f32.mrf.mxu0  ;;  %v6621_v20 = vmul.f32 %v10565_v2, %v10628_v18 }
 0x2cd   : > { %v5396_v4 = vadd.f32 %v5332_v41, %v5139_v50  ;;  %6107 = vst [vmem:[%s9369_s26 + $0xa0] sm:$0xff] %v6043_v11  ;;  %v6046_v45 = vadd.f32 %v8223_v9, %v5398_v26  ;;  %v6680_v51 = vadd.f32 %v6679_v61, %v6617_v32  ;;  %v6619_v46 = vmul.f32 %v10551_v34, %v6043_v11 }
 0x2ce   : > { %v6812_v58 = vadd.f32 %v6811_v5, %v6749_v36  ;;  %v8160_v31 = vpop.f32.mrf.mxu1  ;;  %v5787_v17 = vpop.f32.mrf.mxu0  ;;  %v6754_v28 = vmul.f32 %v6621_v20, %v10628_v18 }
 0x2cf   : > { %v5401_v19 = vadd.f32 %v8160_v31, %v5337_v56  ;;  %6110 = vst [vmem:[%s9369_s26 + $0xb8] sm:$0xff] %v6046_v45  ;;  %v6044_v38 = vadd.f32 %v5787_v17, %v5396_v4  ;;  %v6681_v30 = vadd.f32 %v6680_v51, %v6618_v33  ;;  %v6752_v63 = vmul.f32 %v6619_v46, %v6043_v11  ;;  %v5339_v4 = vld [vmem:[%s9369_s26 + $0xe0] sm:$0xff]  ;;  %v10668_v18 = vpop.permute.xlu0 %6461 }
 0x2d0   : > { %v6813_v1 = vadd.f32 %v6812_v58, %v6750_v39  ;;  %v5152_v12 = vpop.f32.mrf.mxu1  ;;  %v8226_v52 = vpop.f32.mrf.mxu0  ;;  %v6622_v10 = vmul.f32 %v10570_v55, %v6046_v45  ;;  %v5341_v55 = vld [vmem:[%s9369_s26 + $0xf0] sm:$0xff] }
 0x2d1   : > { %v5399_v60 = vadd.f32 %v5335_v57, %v5152_v12  ;;  %6108 = vst [vmem:[%s9369_s26 + $0xa8] sm:$0xff] %v6044_v38  ;;  %v6620_v34 = vmul.f32 %v10558_v22, %v6044_v38  ;;  %v10649_v35 = vadd.f32 %v8226_v52, %v5401_v19  ;;  %v6682_v6 = vadd.f32 %v6681_v30, %v6619_v46  ;;  %v5342_v19 = vld [vmem:[%s9369_s26 + $0xf8] sm:$0xff] }
 0x2d2   : > { %v6814_v62 = vadd.f32 %v6813_v1, %v6751_v29  ;;  %v8161_v0 = vpop.f32.mrf.mxu1  ;;  %v5800_v15 = vpop.f32.mrf.mxu0  ;;  %v6755_v61 = vmul.f32 %v6622_v10, %v6046_v45 }
 0x2d3   : > { %v6753_v25 = vmul.f32 %v6620_v34, %v6044_v38  ;;  %v5402_v54 = vadd.f32 %v8161_v0, %v5338_v21  ;;  %6113 = vst [vmem:[%s9369_s26 + $0xd0] sm:$0xff] %v10649_v35  ;;  %v6047_v22 = vadd.f32 %v5800_v15, %v5399_v60  ;;  %v6683_v2 = vadd.f32 %v6682_v6, %v6620_v34  ;;  %v10677_v29 = vpop.permute.xlu1 %6466  ;;  %v5340_v60 = vld [vmem:[%s9369_s26 + $0xe8] sm:$0xff] }
 0x2d4   : > { %v6815_v7 = vadd.f32 %v6814_v62, %v6752_v63  ;;  %v5155_v13 = vpop.f32.mrf.mxu1  ;;  %v8227_v32 = vpop.f32.mrf.mxu0  ;;  %v6625_v46 = vmul.f32 %v10591_v24, %v10649_v35 }
 0x2d5   : > { %v5400_v59 = vadd.f32 %v5336_v49, %v5155_v13  ;;  %6111 = vst [vmem:[%s9369_s26 + $0xc0] sm:$0xff] %v6047_v22  ;;  %v6050_v47 = vadd.f32 %v8227_v32, %v5402_v54  ;;  %v6684_v44 = vadd.f32 %v6683_v2, %v6621_v20  ;;  %v6623_v36 = vmul.f32 %v10578_v8, %v6047_v22  ;;  %v5343_v32 = vld [vmem:[%s9369_s26 + $0x100] sm:$0xff] }
 0x2d6   : > { %v6816_v53 = vadd.f32 %v6815_v7, %v6753_v25  ;;  %v8164_v26 = vpop.f32.mrf.mxu1  ;;  %v5803_v11 = vpop.f32.mrf.mxu0  ;;  %v6758_v63 = vmul.f32 %v6625_v46, %v10649_v35  ;;  %v5345_v25 = vld [vmem:[%s9369_s26 + $0x110] sm:$0xff] }
 0x2d7   : > { %v5405_v5 = vadd.f32 %v8164_v26, %v5341_v55  ;;  %6114 = vst [vmem:[%s9369_s26 + $0xd8] sm:$0xff] %v6050_v47  ;;  %v6048_v33 = vadd.f32 %v5803_v11, %v5400_v59  ;;  %v6685_v41 = vadd.f32 %v6684_v44, %v6622_v10  ;;  %v6756_v31 = vmul.f32 %v6623_v36, %v6047_v22  ;;  %v10691_v59 = vpop.permute.xlu1 %6476  ;;  %v5346_v11 = vld [vmem:[%s9369_s26 + $0x118] sm:$0xff] }
 0x2d8   : > { %v6817_v50 = vadd.f32 %v6816_v53, %v6754_v28  ;;  %v5168_v9 = vpop.f32.mrf.mxu1  ;;  %v8230_v39 = vpop.f32.mrf.mxu0  ;;  %v6626_v57 = vmul.f32 %v10596_v23, %v6050_v47 }
 0x2d9   : > { %v5403_v51 = vadd.f32 %v5339_v4, %v5168_v9  ;;  %6112 = vst [vmem:[%s9369_s26 + $0xc8] sm:$0xff] %v6048_v33  ;;  %v6624_v8 = vmul.f32 %v10583_v37, %v6048_v33  ;;  %v10672_v58 = vadd.f32 %v8230_v39, %v5405_v5  ;;  %v6686_v45 = vadd.f32 %v6685_v41, %v6623_v36  ;;  %v10687_v23 = vpop.permute.xlu0 %6471 }
 0x2da   : > { %v6818_v56 = vadd.f32 %v6817_v50, %v6755_v61  ;;  %v8165_v17 = vpop.f32.mrf.mxu1  ;;  %v5816_v38 = vpop.f32.mrf.mxu0  ;;  %v6759_v10 = vmul.f32 %v6626_v57, %v6050_v47 }
 0x2db   : > { %v6757_v1 = vmul.f32 %v6624_v8, %v6048_v33  ;;  %v5406_v30 = vadd.f32 %v8165_v17, %v5342_v19  ;;  %6117 = vst [vmem:[%s9369_s26 + $0xf0] sm:$0xff] %v10672_v58  ;;  %v6051_v37 = vadd.f32 %v5816_v38, %v5403_v51  ;;  %v6687_v24 = vadd.f32 %v6686_v45, %v6624_v8 }
 0x2dc   : > { %v6819_v12 = vadd.f32 %v6818_v56, %v6756_v31  ;;  %v5171_v52 = vpop.f32.mrf.mxu1  ;;  %v8231_v34 = vpop.f32.mrf.mxu0  ;;  %v6629_v53 = vmul.f32 %v10620_v27, %v10672_v58  ;;  %v5344_v27 = vld [vmem:[%s9369_s26 + $0x108] sm:$0xff] }
 0x2dd   : > { %v5404_v20 = vadd.f32 %v5340_v60, %v5171_v52  ;;  %6115 = vst [vmem:[%s9369_s26 + $0xe0] sm:$0xff] %v6051_v37  ;;  %v6054_v6 = vadd.f32 %v8231_v34, %v5406_v30  ;;  %v6688_v62 = vadd.f32 %v6687_v24, %v6625_v46  ;;  %v6627_v21 = vmul.f32 %v10603_v16, %v6051_v37  ;;  %v10704_v51 = vpop.permute.xlu0 %6481  ;;  %v5347_v60 = vld [vmem:[%s9369_s26 + $0x120] sm:$0xff] }
 0x2de   : > { %v6820_v0 = vadd.f32 %v6819_v12, %v6757_v1  ;;  %v8168_v15 = vpop.f32.mrf.mxu1  ;;  %v5819_v54 = vpop.f32.mrf.mxu0  ;;  %v6762_v45 = vmul.f32 %v6629_v53, %v10672_v58 }
 0x2df   : > { %v5409_v22 = vadd.f32 %v8168_v15, %v5345_v25  ;;  %6118 = vst [vmem:[%s9369_s26 + $0xf8] sm:$0xff] %v6054_v6  ;;  %v6052_v7 = vadd.f32 %v5819_v54, %v5404_v20  ;;  %v6689_v13 = vadd.f32 %v6688_v62, %v6626_v57  ;;  %v6760_v36 = vmul.f32 %v6627_v21, %v6051_v37  ;;  %v10710_v1 = vpop.permute.xlu1 %6486  ;;  %v5350_v15 = vld [vmem:[%s9369_s26 + $0x138] sm:$0xff] }
 0x2e0   : > { %v6821_v2 = vadd.f32 %v6820_v0, %v6758_v63  ;;  %v5184_v49 = vpop.f32.mrf.mxu1  ;;  %v8234_v35 = vpop.f32.mrf.mxu0  ;;  %v6630_v41 = vmul.f32 %v10624_v14, %v6054_v6  ;;  %v5349_v14 = vld [vmem:[%s9369_s26 + $0x130] sm:$0xff] }
 0x2e1   : > { %v5407_v16 = vadd.f32 %v5343_v32, %v5184_v49  ;;  %6116 = vst [vmem:[%s9369_s26 + $0xe8] sm:$0xff] %v6052_v7  ;;  %v6628_v28 = vmul.f32 %v10611_v42, %v6052_v7  ;;  %v10695_v44 = vadd.f32 %v8234_v35, %v5409_v22  ;;  %v6690_v47 = vadd.f32 %v6689_v13, %v6627_v21  ;;  %v10721_v54 = vpop.permute.xlu0 %6491  ;;  %v5348_v49 = vld [vmem:[%s9369_s26 + $0x128] sm:$0xff] }
 0x2e2   : > { %v6822_v26 = vadd.f32 %v6821_v2, %v6759_v10  ;;  %v8169_v55 = vpop.f32.mrf.mxu1  ;;  %v5832_v5 = vpop.f32.mrf.mxu0  ;;  %v6763_v12 = vmul.f32 %v6630_v41, %v6054_v6 }
 0x2e3   : > { %v6761_v33 = vmul.f32 %v6628_v28, %v6052_v7  ;;  %v5410_v61 = vadd.f32 %v8169_v55, %v5346_v11  ;;  %6121 = vst [vmem:[%s9369_s26 + $0x110] sm:$0xff] %v10695_v44  ;;  %v6055_v50 = vadd.f32 %v5832_v5, %v5407_v16  ;;  %v6691_v9 = vadd.f32 %v6690_v47, %v6628_v28  ;;  %v10727_v35 = vpop.permute.xlu1 %6496 }
 0x2e4   : > { %v6823_v42 = vadd.f32 %v6822_v26, %v6760_v36  ;;  %v5187_v4 = vpop.f32.mrf.mxu1  ;;  %v8235_v39 = vpop.f32.mrf.mxu0  ;;  %v6633_v63 = vmul.f32 %v10654_v43, %v10695_v44 }
 0x2e5   : > { %v5408_v8 = vadd.f32 %v5344_v27, %v5187_v4  ;;  %6119 = vst [vmem:[%s9369_s26 + $0x100] sm:$0xff] %v6055_v50  ;;  %v6058_v46 = vadd.f32 %v8235_v39, %v5410_v61  ;;  %v6692_v31 = vadd.f32 %v6691_v9, %v6629_v53  ;;  %v6631_v17 = vmul.f32 %v10637_v48, %v6055_v50  ;;  %v5351_v9 = vld [vmem:[%s9369_s26 + $0x140] sm:$0xff] }
 0x2e6   : > { %v6824_v56 = vadd.f32 %v6823_v42, %v6761_v33  ;;  %v8172_v19 = vpop.f32.mrf.mxu1  ;;  %v5835_v38 = vpop.f32.mrf.mxu0  ;;  %v6766_v53 = vmul.f32 %v6633_v63, %v10695_v44 }
 0x2e7   : > { %v5413_v30 = vadd.f32 %v8172_v19, %v5349_v14  ;;  %6122 = vst [vmem:[%s9369_s26 + $0x118] sm:$0xff] %v6058_v46  ;;  %v6056_v37 = vadd.f32 %v5835_v38, %v5408_v8  ;;  %v6693_v24 = vadd.f32 %v6692_v31, %v6630_v41  ;;  %v6764_v0 = vmul.f32 %v6631_v17, %v6055_v50  ;;  %v10735_v44 = vpop.permute.xlu0 %6501  ;;  %v10744_v14 = vpop.permute.xlu1 %6506 }
 0x2e8   : > { %v6825_v57 = vadd.f32 %v6824_v56, %v6762_v45  ;;  %v5200_v52 = vpop.f32.mrf.mxu1  ;;  %v8238_v58 = vpop.f32.mrf.mxu0  ;;  %v6634_v2 = vmul.f32 %v10660_v3, %v6058_v46  ;;  %v5353_v3 = vld [vmem:[%s9369_s26 + $0x150] sm:$0xff] }
 0x2e9   : > { %v5411_v34 = vadd.f32 %v5347_v60, %v5200_v52  ;;  %6120 = vst [vmem:[%s9369_s26 + $0x108] sm:$0xff] %v6056_v37  ;;  %v6632_v48 = vmul.f32 %v10643_v40, %v6056_v37  ;;  %v10716_v20 = vadd.f32 %v8238_v58, %v5413_v30  ;;  %v6694_v62 = vadd.f32 %v6693_v24, %v6631_v17  ;;  %v5354_v17 = vld [vmem:[%s9369_s26 + $0x158] sm:$0xff]  ;;  %v5352_v24 = vld [vmem:[%s9369_s26 + $0x148] sm:$0xff] }
 0x2ea   : > { %v6826_v21 = vadd.f32 %v6825_v57, %v6763_v12  ;;  %v8173_v6 = vpop.f32.mrf.mxu1  ;;  %v5848_v25 = vpop.f32.mrf.mxu0  ;;  %v6767_v61 = vmul.f32 %v6634_v2, %v6058_v46 }
 0x2eb   : > { %v6765_v22 = vmul.f32 %v6632_v48, %v6056_v37  ;;  %v5414_v7 = vadd.f32 %v8173_v6, %v5350_v15  ;;  %6125 = vst [vmem:[%s9369_s26 + $0x130] sm:$0xff] %v10716_v20  ;;  %v6059_v40 = vadd.f32 %v5848_v25, %v5411_v34  ;;  %v6695_v43 = vadd.f32 %v6694_v62, %v6632_v48 }
 0x2ec   : > { %v6827_v10 = vadd.f32 %v6826_v21, %v6764_v0  ;;  %v5203_v13 = vpop.f32.mrf.mxu1  ;;  %v8239_v32 = vpop.f32.mrf.mxu0  ;;  %v6637_v8 = vmul.f32 %v10687_v23, %v10716_v20  ;;  %v5357_v21 = vld [vmem:[%s9369_s26 + $0x170] sm:$0xff] }
 0x2ed   : > { %v5412_v16 = vadd.f32 %v5348_v49, %v5203_v13  ;;  %6123 = vst [vmem:[%s9369_s26 + $0x120] sm:$0xff] %v6059_v40  ;;  %v6062_v28 = vadd.f32 %v8239_v32, %v5414_v7  ;;  %v6696_v47 = vadd.f32 %v6695_v43, %v6633_v63  ;;  %v6635_v26 = vmul.f32 %v10668_v18, %v6059_v40  ;;  %v6517_v43 = vpop.permute.xlu1 %6516 }
 0x2ee   : > { %v6828_v36 = vadd.f32 %v6827_v10, %v6765_v22  ;;  %v8176_v55 = vpop.f32.mrf.mxu1  ;;  %v5851_v11 = vpop.f32.mrf.mxu0  ;;  %v6770_v34 = vmul.f32 %v6637_v8, %v10716_v20 }
 0x2ef   : > { %v5417_v5 = vadd.f32 %v8176_v55, %v5353_v3  ;;  %6126 = vst [vmem:[%s9369_s26 + $0x138] sm:$0xff] %v6062_v28  ;;  %v6060_v33 = vadd.f32 %v5851_v11, %v5412_v16  ;;  %v6697_v42 = vadd.f32 %v6696_v47, %v6634_v2  ;;  %v6768_v45 = vmul.f32 %v6635_v26, %v6059_v40  ;;  %v5355_v2 = vld [vmem:[%s9369_s26 + $0x160] sm:$0xff] }
 0x2f0   : > { %v6829_v50 = vadd.f32 %v6828_v36, %v6766_v53  ;;  %v5216_v41 = vpop.f32.mrf.mxu1  ;;  %v8242_v4 = vpop.f32.mrf.mxu0  ;;  %v6638_v12 = vmul.f32 %v10691_v59, %v6062_v28  ;;  %v5358_v36 = vld [vmem:[%s9369_s26 + $0x178] sm:$0xff] }
 0x2f1   : > { %v5415_v27 = vadd.f32 %v5351_v9, %v5216_v41  ;;  %6124 = vst [vmem:[%s9369_s26 + $0x128] sm:$0xff] %v6060_v33  ;;  %v6636_v18 = vmul.f32 %v10677_v29, %v6060_v33  ;;  %v10739_v39 = vadd.f32 %v8242_v4, %v5417_v5  ;;  %v6698_v46 = vadd.f32 %v6697_v42, %v6635_v26  ;;  %v6512_v59 = vpop.permute.xlu0 %6511 }
 0x2f2   : > { %v6830_v31 = vadd.f32 %v6829_v50, %v6767_v61  ;;  %v8177_v56 = vpop.f32.mrf.mxu1  ;;  %v5864_v19 = vpop.f32.mrf.mxu0  ;;  %v6771_v22 = vmul.f32 %v6638_v12, %v6062_v28 }
 0x2f3   : > { %v6769_v38 = vmul.f32 %v6636_v18, %v6060_v33  ;;  %v5418_v30 = vadd.f32 %v8177_v56, %v5354_v17  ;;  %6129 = vst [vmem:[%s9369_s26 + $0x150] sm:$0xff] %v10739_v39  ;;  %v6063_v29 = vadd.f32 %v5864_v19, %v5415_v27  ;;  %v6699_v23 = vadd.f32 %v6698_v46, %v6636_v18 }
 0x2f4   : > { %v6831_v37 = vadd.f32 %v6830_v31, %v6768_v45  ;;  %v5219_v57 = vpop.f32.mrf.mxu1  ;;  %v8243_v52 = vpop.f32.mrf.mxu0  ;;  %v6641_v32 = vmul.f32 %v10721_v54, %v10739_v39  ;;  %v5356_v54 = vld [vmem:[%s9369_s26 + $0x168] sm:$0xff]  ;;  %v5361_v45 = vld [vmem:[%s9369_s26 + $0x190] sm:$0xff] }
 0x2f5   : > { %v5416_v60 = vadd.f32 %v5352_v24, %v5219_v57  ;;  %6127 = vst [vmem:[%s9369_s26 + $0x140] sm:$0xff] %v6063_v29  ;;  %v6066_v58 = vadd.f32 %v8243_v52, %v5418_v30  ;;  %v6700_v48 = vadd.f32 %v6699_v23, %v6637_v8  ;;  %v6639_v62 = vmul.f32 %v10704_v51, %v6063_v29  ;;  %v6522_v42 = vpop.permute.xlu0 %6521  ;;  %v6527_v31 = vpop.permute.xlu1 %6526 }
 0x2f6   : > { %v6832_v63 = vadd.f32 %v6831_v37, %v6769_v38  ;;  %v8180_v0 = vpop.f32.mrf.mxu1  ;;  %v5867_v6 = vpop.f32.mrf.mxu0  ;;  %v6774_v4 = vmul.f32 %v6641_v32, %v10739_v39  ;;  %v5359_v37 = vld [vmem:[%s9369_s26 + $0x180] sm:$0xff] }
 0x2f7   : > { %v5421_v15 = vadd.f32 %v8180_v0, %v5357_v21  ;;  %6130 = vst [vmem:[%s9369_s26 + $0x158] sm:$0xff] %v6066_v58  ;;  %v6064_v25 = vadd.f32 %v5867_v6, %v5416_v60  ;;  %v6701_v40 = vadd.f32 %v6700_v48, %v6638_v12  ;;  %v6772_v28 = vmul.f32 %v6639_v62, %v6063_v29 }
 0x2f8   : > { %v6833_v7 = vadd.f32 %v6832_v63, %v6770_v34  ;;  %v5232_v10 = vpop.f32.mrf.mxu1  ;;  %v8246_v20 = vpop.f32.mrf.mxu0  ;;  %v6642_v5 = vmul.f32 %v10727_v35, %v6066_v58 }
 0x2f9   : > { %v5419_v13 = vadd.f32 %v5355_v2, %v5232_v10  ;;  %6128 = vst [vmem:[%s9369_s26 + $0x148] sm:$0xff] %v6064_v25  ;;  %v6640_v51 = vmul.f32 %v10710_v1, %v6064_v25  ;;  %v10758_v49 = vadd.f32 %v8246_v20, %v5421_v15  ;;  %v6702_v16 = vadd.f32 %v6701_v40, %v6639_v62  ;;  %v6532_v63 = vpop.permute.xlu0 %6531 }
 0x2fa   : > { %v6834_v53 = vadd.f32 %v6833_v7, %v6771_v22  ;;  %v8181_v47 = vpop.f32.mrf.mxu1  ;;  %v5880_v26 = vpop.f32.mrf.mxu0  ;;  %v6775_v19 = vmul.f32 %v6642_v5, %v6066_v58  ;;  %v5362_v58 = vld [vmem:[%s9369_s26 + $0x198] sm:$0xff] }
 0x2fb   : > { %v6773_v55 = vmul.f32 %v6640_v51, %v6064_v25  ;;  %v5422_v3 = vadd.f32 %v8181_v47, %v5358_v36  ;;  %6133 = vst [vmem:[%s9369_s26 + $0x170] sm:$0xff] %v10758_v49  ;;  %v6067_v11 = vadd.f32 %v5880_v26, %v5419_v13  ;;  %v6703_v33 = vadd.f32 %v6702_v16, %v6640_v51  ;;  %v5360_v25 = vld [vmem:[%s9369_s26 + $0x188] sm:$0xff]  ;;  %v6537_v7 = vpop.permute.xlu1 %6536  ;;  %v5365_v16 = vld [vmem:[%s9369_s26 + $0x1b0] sm:$0xff] }
 0x2fc   : > { %v6835_v1 = vadd.f32 %v6834_v53, %v6772_v28  ;;  %v5235_v61 = vpop.f32.mrf.mxu1  ;;  %v8247_v50 = vpop.f32.mrf.mxu0  ;;  %v6645_v57 = vmul.f32 %v6512_v59, %v10758_v49 }
 0x2fd   : > { %v5420_v41 = vadd.f32 %v5356_v54, %v5235_v61  ;;  %6131 = vst [vmem:[%s9369_s26 + $0x160] sm:$0xff] %v6067_v11  ;;  %v6070_v9 = vadd.f32 %v8247_v50, %v5422_v3  ;;  %v6704_v27 = vadd.f32 %v6703_v33, %v6641_v32  ;;  %v6643_v8 = vmul.f32 %v10735_v44, %v6067_v11  ;;  %v5363_v3 = vld [vmem:[%s9369_s26 + $0x1a0] sm:$0xff] }
 0x2fe   : > { %v6836_v18 = vadd.f32 %v6835_v1, %v6773_v55  ;;  %v8184_v46 = vpop.f32.mrf.mxu1  ;;  %v5883_v35 = vpop.f32.mrf.mxu0  ;;  %v6778_v2 = vmul.f32 %v6645_v57, %v10758_v49 }
 0x2ff   : > { %v5425_v56 = vadd.f32 %v8184_v46, %v5361_v45  ;;  %6134 = vst [vmem:[%s9369_s26 + $0x178] sm:$0xff] %v6070_v9  ;;  %v6068_v17 = vadd.f32 %v5883_v35, %v5420_v41  ;;  %v6705_v30 = vadd.f32 %v6704_v27, %v6642_v5  ;;  %v6776_v52 = vmul.f32 %v6643_v8, %v6067_v11  ;;  %v6542_v1 = vpop.permute.xlu0 %6541  ;;  %v6547_v27 = vpop.permute.xlu1 %6546 }
 0x300   : > { %v6837_v38 = vadd.f32 %v6836_v18, %v6774_v4  ;;  %v5248_v29 = vpop.f32.mrf.mxu1  ;;  %v8250_v39 = vpop.f32.mrf.mxu0  ;;  %v6646_v6 = vmul.f32 %v6517_v43, %v6070_v9 }
 0x301   : > { %v5423_v12 = vadd.f32 %v5359_v37, %v5248_v29  ;;  %6132 = vst [vmem:[%s9369_s26 + $0x168] sm:$0xff] %v6068_v17  ;;  %v6644_v23 = vmul.f32 %v10744_v14, %v6068_v17  ;;  %v10775_v44 = vadd.f32 %v8250_v39, %v5425_v56  ;;  %v6706_v24 = vadd.f32 %v6705_v30, %v6643_v8  ;;  %v5364_v56 = vld [vmem:[%s9369_s26 + $0x1a8] sm:$0xff] }
 0x302   : > { %v6838_v60 = vadd.f32 %v6837_v38, %v6775_v19  ;;  %v8185_v34 = vpop.f32.mrf.mxu1  ;;  %v5896_v48 = vpop.f32.mrf.mxu0  ;;  %v6779_v47 = vmul.f32 %v6646_v6, %v6070_v9  ;;  %v5366_v9 = vld [vmem:[%s9369_s26 + $0x1b8] sm:$0xff] }
 0x303   : > { %v6777_v62 = vmul.f32 %v6644_v23, %v6068_v17  ;;  %v5426_v0 = vadd.f32 %v8185_v34, %v5362_v58  ;;  %6137 = vst [vmem:[%s9369_s26 + $0x190] sm:$0xff] %v10775_v44  ;;  %v6071_v21 = vadd.f32 %v5896_v48, %v5423_v12  ;;  %v6707_v15 = vadd.f32 %v6706_v24, %v6644_v23  ;;  %v5369_v12 = vld [vmem:[%s9369_s26 + $0x1d0] sm:$0xff]  ;;  %v6552_v24 = vpop.permute.xlu0 %6551  ;;  %v5367_v58 = vld [vmem:[%s9369_s26 + $0x1c0] sm:$0xff] }
 0x304   : > { %v6839_v14 = vadd.f32 %v6838_v60, %v6776_v52  ;;  %v5251_v59 = vpop.f32.mrf.mxu1  ;;  %v8251_v22 = vpop.f32.mrf.mxu0  ;;  %v6649_v61 = vmul.f32 %v6532_v63, %v10775_v44 }
 0x305   : > { %v5424_v40 = vadd.f32 %v5360_v25, %v5251_v59  ;;  %6135 = vst [vmem:[%s9369_s26 + $0x180] sm:$0xff] %v6071_v21  ;;  %v6074_v10 = vadd.f32 %v8251_v22, %v5426_v0  ;;  %v6708_v20 = vadd.f32 %v6707_v15, %v6645_v57  ;;  %v6647_v51 = vmul.f32 %v6522_v42, %v6071_v21  ;;  %v6557_v0 = vpop.permute.xlu1 %6556  ;;  %v5370_v59 = vld [vmem:[%s9369_s26 + $0x1d8] sm:$0xff] }
 0x306   : > { %v6840_v13 = vadd.f32 %v6839_v14, %v6777_v62  ;;  %v8188_v32 = vpop.f32.mrf.mxu1  ;;  %v5899_v28 = vpop.f32.mrf.mxu0  ;;  %v6782_v29 = vmul.f32 %v6649_v61, %v10775_v44 }
 0x307   : > { %v5429_v43 = vadd.f32 %v8188_v32, %v5365_v16  ;;  %6138 = vst [vmem:[%s9369_s26 + $0x198] sm:$0xff] %v6074_v10  ;;  %v6072_v53 = vadd.f32 %v5899_v28, %v5424_v40  ;;  %v6709_v26 = vadd.f32 %v6708_v20, %v6646_v6  ;;  %v6780_v50 = vmul.f32 %v6647_v51, %v6071_v21  ;;  %v6562_v16 = vpop.permute.xlu0 %6561 }
 0x308   : > { %v6841_v36 = vadd.f32 %v6840_v13, %v6778_v2  ;;  %v5264_v55 = vpop.f32.mrf.mxu1  ;;  %v8254_v11 = vpop.f32.mrf.mxu0  ;;  %v6650_v19 = vmul.f32 %v6537_v7, %v6074_v10 }
 0x309   : > { %v5427_v49 = vadd.f32 %v5363_v3, %v5264_v55  ;;  %6136 = vst [vmem:[%s9369_s26 + $0x188] sm:$0xff] %v6072_v53  ;;  %v6648_v5 = vmul.f32 %v6527_v31, %v6072_v53  ;;  %v6077_v33 = vadd.f32 %v8254_v11, %v5429_v43  ;;  %v6710_v54 = vadd.f32 %v6709_v26, %v6647_v51  ;;  %v5368_v51 = vld [vmem:[%s9369_s26 + $0x1c8] sm:$0xff]  ;;  %v6567_v11 = vpop.permute.xlu1 %6566 }
 0x30a   : > { %v6842_v42 = vadd.f32 %v6841_v36, %v6779_v47  ;;  %v8189_v41 = vpop.f32.mrf.mxu1  ;;  %v5912_v4 = vpop.f32.mrf.mxu0  ;;  %v6783_v44 = vmul.f32 %v6650_v19, %v6074_v10  ;;  %v5373_v36 = vld [vmem:[%s9369_s26 + $0x1f0] sm:$0xff] }
 0x30b   : > { %v6781_v18 = vmul.f32 %v6648_v5, %v6072_v53  ;;  %v5430_v8 = vadd.f32 %v8189_v41, %v5366_v9  ;;  %6141 = vst [vmem:[%s9369_s26 + $0x1b0] sm:$0xff] %v6077_v33  ;;  %v6075_v46 = vadd.f32 %v5912_v4, %v5427_v49  ;;  %v6711_v35 = vadd.f32 %v6710_v54, %v6648_v5  ;;  %v5371_v54 = vld [vmem:[%s9369_s26 + $0x1e0] sm:$0xff] }
 0x30c   : > { %v6843_v45 = vadd.f32 %v6842_v42, %v6780_v50  ;;  %v5267_v31 = vpop.f32.mrf.mxu1  ;;  %v8255_v17 = vpop.f32.mrf.mxu0 }
 0x30d   : > { %v5428_v38 = vadd.f32 %v5364_v56, %v5267_v31  ;;  %6139 = vst [vmem:[%s9369_s26 + $0x1a0] sm:$0xff] %v6075_v46  ;;  %v6078_v30 = vadd.f32 %v8255_v17, %v5430_v8  ;;  %v6712_v57 = vadd.f32 %v6711_v35, %v6649_v61  ;;  %v6651_v21 = vmul.f32 %v6542_v1, %v6075_v46 }
 0x30e   : > { %v6844_v37 = vadd.f32 %v6843_v45, %v6781_v18  ;;  %v8192_v39 = vpop.f32.mrf.mxu1  ;;  %v5915_v23 = vpop.f32.mrf.mxu0  ;;  %v5374_v18 = vld [vmem:[%s9369_s26 + $0x1f8] sm:$0xff] }
 0x30f   : > { %v5433_v52 = vadd.f32 %v8192_v39, %v5369_v12  ;;  %6142 = vst [vmem:[%s9369_s26 + $0x1b8] sm:$0xff] %v6078_v30  ;;  %v6076_v60 = vadd.f32 %v5915_v23, %v5428_v38  ;;  %v6713_v63 = vadd.f32 %v6712_v57, %v6650_v19  ;;  %v6784_v28 = vmul.f32 %v6651_v21, %v6075_v46  ;;  %v6572_v46 = vpop.permute.xlu0 %6571  ;;  %v5372_v19 = vld [vmem:[%s9369_s26 + $0x1e8] sm:$0xff]  ;;  %v6577_v57 = vpop.permute.xlu1 %6576 }
 0x310   : > { %v5280_v34 = vpop.f32.mrf.mxu1  ;;  %v8258_v48 = vpop.f32.mrf.mxu0  ;;  %v6845_v62 = vadd.f32 %v6844_v37, %v6782_v29 }
 0x311   : > { %v5431_v14 = vadd.f32 %v5367_v58, %v5280_v34  ;;  %6140 = vst [vmem:[%s9369_s26 + $0x1a8] sm:$0xff] %v6076_v60  ;;  %v6081_v6 = vadd.f32 %v8258_v48, %v5433_v52  ;;  %v6652_v2 = vmul.f32 %v6547_v27, %v6076_v60  ;;  %v6714_v32 = vadd.f32 %v6713_v63, %v6651_v21 }
 0x312   : > { %v8193_v15 = vpop.f32.mrf.mxu1  ;;  %v5928_v25 = vpop.f32.mrf.mxu0  ;;  %v6205_v40 = vld [vmem:[%s9369_s26 + $0x1b0] sm:$0xff]  ;;  %v6846_v20 = vadd.f32 %v6845_v62, %v6783_v44 }
 0x313   : > { %v5434_v22 = vadd.f32 %v8193_v15, %v5370_v59  ;;  %6145 = vst [vmem:[%s9369_s26 + $0x1d0] sm:$0xff] %v6081_v6  ;;  %v6079_v7 = vadd.f32 %v5928_v25, %v5431_v14  ;;  %v6653_v3 = vmul.f32 %v6552_v24, %v6205_v40  ;;  %v6785_v5 = vmul.f32 %v6652_v2, %v6076_v60 }
 0x314   : > { %v5283_v13 = vpop.f32.mrf.mxu1  ;;  %v8259_v10 = vpop.f32.mrf.mxu0  ;;  %v6847_v33 = vadd.f32 %v6846_v20, %v6784_v28  ;;  %v6715_v42 = vadd.f32 %v6714_v32, %v6652_v2 }
 0x315   : > { %v5432_v43 = vadd.f32 %v5368_v51, %v5283_v13  ;;  %6143 = vst [vmem:[%s9369_s26 + $0x1c0] sm:$0xff] %v6079_v7  ;;  %v6082_v53 = vadd.f32 %v8259_v10, %v5434_v22  ;;  %v6786_v31 = vmul.f32 %v6653_v3, %v6205_v40 }
 0x316   : > { %v8196_v47 = vpop.f32.mrf.mxu1  ;;  %v5931_v26 = vpop.f32.mrf.mxu0  ;;  %v6206_v55 = vld [vmem:[%s9369_s26 + $0x1b8] sm:$0xff]  ;;  %v6848_v56 = vadd.f32 %v6847_v33, %v6785_v5  ;;  %v6716_v29 = vadd.f32 %v6715_v42, %v6653_v3 }
 0x317   : > { %v5437_v1 = vadd.f32 %v8196_v47, %v5373_v36  ;;  %6146 = vst [vmem:[%s9369_s26 + $0x1d8] sm:$0xff] %v6082_v53  ;;  %v6080_v49 = vadd.f32 %v5931_v26, %v5432_v43  ;;  %v6654_v4 = vmul.f32 %v6557_v0, %v6206_v55  ;;  %v6582_v0 = vpop.permute.xlu0 %6581 }
 0x318   : > { %v5296_v61 = vpop.f32.mrf.mxu1  ;;  %v8262_v50 = vpop.f32.mrf.mxu0  ;;  %v6849_v48 = vadd.f32 %v6848_v56, %v6786_v31 }
 0x319   : > { %v5435_v41 = vadd.f32 %v5371_v54, %v5296_v61  ;;  %6144 = vst [vmem:[%s9369_s26 + $0x1c8] sm:$0xff] %v6080_v49  ;;  %v6085_v9 = vadd.f32 %v8262_v50, %v5437_v1  ;;  %v6787_v23 = vmul.f32 %v6654_v4, %v6206_v55  ;;  %v6717_v34 = vadd.f32 %v6716_v29, %v6654_v4 }
 0x31a   : > { %v8197_v27 = vpop.f32.mrf.mxu1  ;;  %v5944_v8 = vpop.f32.mrf.mxu0  ;;  %v6209_v52 = vld [vmem:[%s9369_s26 + $0x1d0] sm:$0xff] }
 0x31b   : > { %v5438_v45 = vadd.f32 %v8197_v27, %v5374_v18  ;;  %6149 = vst [vmem:[%s9369_s26 + $0x1f0] sm:$0xff] %v6085_v9  ;;  %v6083_v35 = vadd.f32 %v5944_v8, %v5435_v41  ;;  %v6657_v21 = vmul.f32 %v6572_v46, %v6209_v52  ;;  %v6850_v6 = vadd.f32 %v6849_v48, %v6787_v23 }
 0x31c   : > { %v5299_v17 = vpop.f32.mrf.mxu1  ;;  %v8263_v38 = vpop.f32.mrf.mxu0  ;;  %v6207_v30 = vld [vmem:[%s9369_s26 + $0x1c0] sm:$0xff] }
 0x31d   : > { %v5436_v37 = vadd.f32 %v5372_v19, %v5299_v17  ;;  %6147 = vst [vmem:[%s9369_s26 + $0x1e0] sm:$0xff] %v6083_v35  ;;  %v6086_v39 = vadd.f32 %v8263_v38, %v5438_v45  ;;  %v6655_v12 = vmul.f32 %v6562_v16, %v6207_v30 }
 0x31e   : > { %v5947_v24 = vpop.f32.mrf.mxu0  ;;  %v6210_v62 = vld [vmem:[%s9369_s26 + $0x1d8] sm:$0xff] }
 0x31f   : > { %6150 = vst [vmem:[%s9369_s26 + $0x1f8] sm:$0xff] %v6086_v39  ;;  %v6084_v60 = vadd.f32 %v5947_v24, %v5436_v37  ;;  %v6788_v58 = vmul.f32 %v6655_v12, %v6207_v30  ;;  %v6718_v14 = vadd.f32 %v6717_v34, %v6655_v12 }
 0x320   : > { %v6208_v63 = vld [vmem:[%s9369_s26 + $0x1c8] sm:$0xff] }
 0x321   : > { %6148 = vst [vmem:[%s9369_s26 + $0x1e8] sm:$0xff] %v6084_v60  ;;  %v6656_v44 = vmul.f32 %v6567_v11, %v6208_v63 }
 0x322   : > { %8438 = shalt.err (!%p8435_p7)
}
 0x323   : > { %s8439_s8 = scalar_lea.hbm %s10818_s14, 8192  ;;  %s8443_s12 = scalar_lea.hbm %s10899_s4, 16384 }
 0x324   : > { %p8440_p8 = scmp.ne.s32.totalorder %s10818_s14, %s8439_s8  ;;  %p8444_p11 = scmp.lt.s32.totalorder %s10818_s14, %s10899_s4 }
 0x325   : > { %p8445_p12 = scmp.lt.s32.totalorder %s8443_s12, %s8439_s8 }
 0x326   : > { %p8441_p9 = pnand %p8440_p8, %p8590_p5 }
 0x327   : > { %p8446_p13 = por %p8445_p12, %p8444_p11 }
 0x328   : > { %p8442_p10 = pneg %p8441_p9 }
 0x32a   : > { %p8447_p0 = pnand %p8446_p13, %p8442_p10 }
 0x32c   : > { %8450 = shalt.err (!%p8447_p0)
}
 0x32d   : > { %s8519_s13 = smov 128   ;;  %s8520_s23 = smov 8   ;;  %v6658_v15 = vmul.f32 %v6577_v57, %v6210_v62  ;;  %v6719_v59 = vadd.f32 %v6718_v14, %v6656_v44  ;;  %v6789_v25 = vmul.f32 %v6656_v44, %v6208_v63  ;;  %v6851_v22 = vadd.f32 %v6850_v6, %v6788_v58  ;;  %v6587_v7 = vpop.permute.xlu1 %6586  ;;  %v6211_v40 = vld [vmem:[%s9369_s26 + $0x1e0] sm:$0xff]  ;;  %v6213_v2 = vld [vmem:[%s9369_s26 + $0x1f0] sm:$0xff]  ;;  %v6592_v32 = vpop.permute.xlu0 %6591  ;;  %v6212_v53 = vld [vmem:[%s9369_s26 + $0x1e8] sm:$0xff] }
 0x32e   : > { %8276 = dma.vmem_to_hbm [thread:$0]  (%p8590_p5), %s10820_s16, 8192, %s10818_s14, %s6869_s17, %s8519_s13, %s8519_s13, %s8520_s23   ;;  %v6659_v20 = vmul.f32 %v6582_v0, %v6211_v40  ;;  %v6790_v51 = vmul.f32 %v6657_v21, %v6209_v52  ;;  %v6661_v36 = vmul.f32 %v6592_v32, %v6213_v2  ;;  %v6660_v26 = vmul.f32 %v6587_v7, %v6212_v53 }
 0x32f   : > { %v6720_v13 = vadd.f32 %v6719_v59, %v6657_v21  ;;  %v6852_v10 = vadd.f32 %v6851_v22, %v6789_v25  ;;  %v6791_v28 = vmul.f32 %v6658_v15, %v6210_v62  ;;  %v6214_v47 = vld [vmem:[%s9369_s26 + $0x1f8] sm:$0xff]  ;;  %s7023_s26 = sshll.u32 %s9343_s15, 1  ;;  %s7367_s16 = sshll.u32 %s8573_s22, 5  ;;  %vm6865_vm8 = vcmask 1040384  }
 0x330   : > { %v6792_v3 = vmul.f32 %v6659_v20, %v6211_v40  ;;  %v6793_v33 = vmul.f32 %v6660_v26, %v6212_v53  ;;  %v6794_v50 = vmul.f32 %v6661_v36, %v6213_v2  ;;  %s266_s14 = scalar_lea.vmem [#allocation4], %s7023_s26  ;;  %s10859_s6 = scalar_lea.hbm %s10900_s5, %s7367_s16 }
 0x331   : > { %v6721_v16 = vadd.f32 %v6720_v13, %v6658_v15  ;;  %v6853_v43 = vadd.f32 %v6852_v10, %v6790_v51  ;;  %v6597_v1 = vpop.permute.xlu1 %6596  ;;  %s6903_s17 = sshll.u32 %s266_s14, 4  ;;  %s6874_s8 = scalar_lea.sflag [#allocation5], %s9343_s15  ;;  %s6904_s17 = int_to_ptr.vmem [resolvable:$true] %s6903_s17 }
 0x332   : > { %v6662_v49 = vmul.f32 %v6597_v1, %v6214_v47  ;;  %s8451_s9 = scalar_lea.vmem %s6904_s17, 32  ;;  %s8521_s22 = smov [#allocation4]  }
 0x333   : > { %v6722_v55 = vadd.f32 %v6721_v16, %v6659_v20  ;;  %v6854_v11 = vadd.f32 %v6853_v43, %v6791_v28  ;;  %p8452_p1 = scmp.ne.s32.totalorder %s6904_s17, %s8451_s9  ;;  %s8455_s11 = sshll.u32 %s8521_s22, 4  ;;  %s8456_s11 = int_to_ptr.vmem [resolvable:$false] %s8455_s11 }
 0x334   : > { %v6795_v9 = vmul.f32 %v6662_v49, %v6214_v47  ;;  %s8457_s12 = scalar_lea.vmem %s8456_s11, 64  ;;  %p8458_p4 = scmp.lt.s32.totalorder %s6904_s17, %s8456_s11 }
 0x335   : > { %v6723_v5 = vadd.f32 %v6722_v55, %v6660_v26  ;;  %v6855_v61 = vadd.f32 %v6854_v11, %v6792_v3  ;;  %p8453_p2 = pnand %p8452_p1, %p8590_p5  ;;  %p8459_p7 = scmp.lt.s32.totalorder %s8457_s12, %s8451_s9 }
 0x337   : > { %v6724_v54 = vadd.f32 %v6723_v5, %v6661_v36  ;;  %v6856_v42 = vadd.f32 %v6855_v61, %v6793_v33  ;;  %p8454_p3 = pneg %p8453_p2  ;;  %p8460_p8 = por %p8459_p7, %p8458_p4 }
 0x339   : > { %v6725_v41 = vadd.f32 %v6724_v54, %v6662_v49  ;;  %v6857_v4 = vadd.f32 %v6856_v42, %v6794_v50  ;;  %p8461_p9 = pnand %p8460_p8, %p8454_p3 }
 0x33b   : > { %v6726_v27 = vrot.slane %v6725_v41, 4  ;;  %v6858_v18 = vadd.f32 %v6857_v4, %v6795_v9 }
 0x33d   : > { %v6727_v8 = vadd.f32 %v6726_v27, %v6725_v41  ;;  %v6859_v46 = vrot.slane %v6858_v18, 4 }
 0x33f   : > { %v6728_v45 = vrot.slane %v6727_v8, 2  ;;  %v6860_v35 = vadd.f32 %v6859_v46, %v6858_v18 }
 0x341   : > { %v6729_v31 = vadd.f32 %v6728_v45, %v6727_v8  ;;  %v6861_v56 = vrot.slane %v6860_v35, 2 }
 0x343   : > { %v6730_v17 = vrot.slane %v6729_v31, 1  ;;  %v6862_v19 = vadd.f32 %v6861_v56, %v6860_v35 }
 0x345   : > { %v6863_v38 = vrot.slane %v6862_v19, 1  ;;  %v6731_v30 = vadd.f32 %v6730_v17, %v6729_v31 }
 0x347   : > { %v6864_v29 = vadd.f32 %v6863_v38, %v6862_v19 }
 0x349   : > { %v6866_v37 = vsel %vm6865_vm8, %v6731_v30, %v6864_v29 }
 0x34a   : > { %6867 = vst [vmem:[%s266_s14] sm:$0x3] %v6866_v37 }
 0x34b   : > { %8464 = shalt.err (!%p8461_p9)
}
 0x34c   : > { %s8465_s7 = scalar_lea.hbm %s10859_s6, 32  ;;  %s8469_s13 = scalar_lea.hbm %s10900_s5, 64 }
 0x34d   : > { %p8466_p10 = scmp.ne.s32.totalorder %s10859_s6, %s8465_s7  ;;  %p8470_p13 = scmp.lt.s32.totalorder %s10859_s6, %s10900_s5 }
 0x34e   : > { %p8471_p0 = scmp.lt.s32.totalorder %s8469_s13, %s8465_s7 }
 0x34f   : > { %p8467_p11 = pnand %p8466_p10, %p8590_p5 }
 0x350   : > { %p8472_p1 = por %p8471_p0, %p8470_p13 }
 0x351   : > { %p8468_p12 = pneg %p8467_p11 }
 0x353   : > { %p8473_p2 = pnand %p8472_p1, %p8468_p12 }
 0x355   : > { %8476 = shalt.err (!%p8473_p2)
}
 0x356   : > { %8277 = dma.vmem_to_hbm [thread:$0]  (%p8590_p5), %s6904_s17, 32, %s10859_s6, %s6874_s8  }
 0x357 PF: > { %p8287_p3 = scmp.ge.s32.totalorder %s8515_s21, 2  ;;  %s6915_s16 = sand.u32 1, %s8503_s18  }
 0x358   : > { %s6916_s14 = scalar_lea.sflag [#allocation3], %s6915_s16 }
 0x359   : > { %p8281_p4 = pnand %p8287_p3, %p8594_p6 }
 0x35b   : > { %p8282_p7 = pneg %p8281_p4 }
 0x35d   : > { %8494 = dma.done.wait (%p8282_p7), %s6916_s14, 8192  }
 0x35e   : > { %8496 = vsyncadd (%p8282_p7), %s6916_s14, 4294959104  ;;  %s6925_s25 = scalar_lea.sflag [#allocation5], %s6915_s16 }
 0x35f   : > { %8498 = dma.done.wait (%p8282_p7), %s6925_s25, 32  }
 0x360   : > { %8500 = vsyncadd (%p8282_p7), %s6925_s25, 4294967264  ;;  %p19_p5 = scmp.ge.s32.totalorder %s8577_s24, 4   ;;  %s11168_s18 = smov %s8507_s19 }
 0x361   : > { %s11169_s19 = smov %s8511_s20  ;;  %s11170_s20 = smov %s8588_s27 }
 0x362   : > { %s11171_s21 = smov %s8577_s24  ;;  %21 = sbr.rel (!%p19_p5) target bundleno = 5 (0x5), region = 102 }
 0x367   :  { %6930 = vsyncpa [#allocation3], 1 }
 0x368   :  { %6932 = vsyncpa [#allocation3 + $0x1], 1 }
 0x369   :  { %6933 = vsyncpa [#allocation5], 1 }
 0x36a   :  { %6935 = vsyncpa [#allocation5 + $0x1], 1 }

</bundles_post_ra>
